<compile_context>
chip_gen: v6e
topology: v6e:2x2x1
jax: 0.10.0
libtpu: 0.0.40
codegen_flags: <defaults>
</compile_context>

<pallas_src>
import numpy as np
import jax
import jax.numpy as jnp
from jax.experimental import pallas as pl
from jax.experimental.pallas import tpu as pltpu


# ----------------------------- in-kernel helpers -----------------------------

def _tent_weights(coord, size):
    """coord: [1, TP] normalized grid_sample coord -> [size, TP] f32 tent weights
    (align_corners=False; out-of-range voxels get zero weight == padding_mode='zeros')."""
    i = (coord + 1.0) * (0.5 * size) - 0.5
    idx = jax.lax.broadcasted_iota(jnp.int32, (size, 1), 0).astype(jnp.float32)
    return jnp.maximum(1.0 - jnp.abs(i - idx), 0.0)


def _trilinear_sample_cp(px, py, pz, vol2d, dims, nchan, mm_dtype):
    """Separable trilinear grid_sample, channel-first.
    px/py/pz: [1, TP] f32;  vol2d: [nchan*Dd, Hh*Ww];  returns [nchan, TP] f32."""
    Dd, Hh, Ww = dims
    tp = px.shape[-1]
    wx = _tent_weights(px, Ww)                                   # [Ww, TP]
    wy = _tent_weights(py, Hh)                                   # [Hh, TP]
    wz = _tent_weights(pz, Dd)                                   # [Dd, TP]
    if mm_dtype != jnp.float32:
        wx = wx.astype(mm_dtype)
        wy = wy.astype(mm_dtype)
    wyx = (wy[:, None, :] * wx[None, :, :]).reshape(Hh * Ww, tp)  # [Hh*Ww, TP]
    m = jnp.dot(vol2d, wyx, preferred_element_type=jnp.float32)   # [nchan*Dd, TP] (MXU)
    m = m.reshape(nchan, Dd, tp)
    return jnp.sum(m * wz[None, :, :], axis=1)                    # [nchan, TP]


def _make_kernel(use_gwarp, use_warp, displacementwarp, warp_dims, tmpl_dims,
                 nchan, ty, nk, wyx_dtype):
    Dt, Ht, Wt = tmpl_dims

    def kernel(*refs):
        it = iter(refs)
        gp_ref = next(it) if use_gwarp else None
        pos_ref = next(it)
        warp_ref = next(it) if use_warp else None
        tmpl_ref = next(it)
        out_ref = next(it)
        acc_ref = next(it)      # [C*Dt, TP] f32 accumulator (over Ht*Wt K-chunks)
        crd_ref = next(it)      # [4, TP] f32: warped px, py, pz, valid

        n = pl.program_id(0)
        k = pl.program_id(2)
        tp = crd_ref.shape[-1]

        # ---- once per (n, p) tile: gwarp transform + warp resample, stash coords ----
        @pl.when(k == 0)
        def _init():
            acc_ref[...] = jnp.zeros_like(acc_ref)
            pos = pos_ref[0]                                     # [3, TP] f32, lane-dense
            px, py, pz = pos[0:1, :], pos[1:2, :], pos[2:3, :]
            if use_gwarp:
                # pos = (R @ (pos - t)) * s  ; params read as SMEM scalars
                dx = px - gp_ref[n, 0]
                dy = py - gp_ref[n, 1]
                dz = pz - gp_ref[n, 2]
                px = (gp_ref[n, 6] * dx + gp_ref[n, 7] * dy + gp_ref[n, 8] * dz) * gp_ref[n, 3]
                py = (gp_ref[n, 9] * dx + gp_ref[n, 10] * dy + gp_ref[n, 11] * dz) * gp_ref[n, 4]
                pz = (gp_ref[n, 12] * dx + gp_ref[n, 13] * dy + gp_ref[n, 14] * dz) * gp_ref[n, 5]
            vmask = jnp.ones_like(px)
            if use_warp:
                if not displacementwarp:
                    inb = ((px > -1.0) & (px < 1.0) & (py > -1.0) & (py < 1.0)
                           & (pz > -1.0) & (pz < 1.0))
                    vmask = inb.astype(jnp.float32)
                # Warp-field resample stays f32: its output is reused as the sampling
                # coordinates for the template; bf16 here would quantize position (~0.25 voxel
                # at 128^3). The matmul is tiny (M = 3*Dw) so f32 is nearly free.
                ws = _trilinear_sample_cp(px, py, pz, warp_ref[0], warp_dims, 3,
                                          mm_dtype=jnp.float32)  # [3, TP]
                if displacementwarp:
                    px = px + ws[0:1, :]
                    py = py + ws[1:2, :]
                    pz = pz + ws[2:3, :]
                else:
                    px, py, pz = ws[0:1, :], ws[1:2, :], ws[2:3, :]
            crd_ref[0:1, :] = px
            crd_ref[1:2, :] = py
            crd_ref[2:3, :] = pz
            crd_ref[3:4, :] = vmask

        # ---- every K-chunk: build only that chunk of wyx, MXU-accumulate ----
        px = crd_ref[0:1, :]
        py = crd_ref[1:2, :]
        wx = _tent_weights(px, Wt)                                           # [Wt, TP] f32
        iy = (py + 1.0) * (0.5 * Ht) - 0.5
        y0 = (k * ty).astype(jnp.float32)
        ys = jax.lax.broadcasted_iota(jnp.int32, (ty, 1), 0).astype(jnp.float32) + y0
        wy = jnp.maximum(1.0 - jnp.abs(iy - ys), 0.0)                        # [ty, TP] f32
        if wyx_dtype != jnp.float32:
            # build wyx directly in compute_dtype: only one copy of the largest tensor is live
            wx = wx.astype(wyx_dtype)
            wy = wy.astype(wyx_dtype)
        # NOTE: layout-free collapse needs Wt to be a multiple of the sublane packing; for other
        # sizes Mosaic inserts a relayout copy (correct, but slower).
        wyx = (wy[:, None, :] * wx[None, :, :]).reshape(ty * Wt, tp)         # [tile_k, TP]
        acc_ref[...] += jnp.dot(tmpl_ref[0], wyx, preferred_element_type=jnp.float32)

        # ---- last K-chunk: z-contraction, validity mask, lane-dense store ----
        @pl.when(k == nk - 1)
        def _finalize():
            pz = crd_ref[2:3, :]
            wz = _tent_weights(pz, Dt)                                       # [Dt, TP] f32
            m = acc_ref[...].reshape(nchan, Dt, tp)
            val = jnp.sum(m * wz[None, :, :], axis=1)                        # [C, TP]
            if use_warp and not displacementwarp:
                val = val * crd_ref[3:4, :]
            out_ref[0] = val.astype(out_ref.dtype)

    return kernel


# ----------------------------- host-side wrapper -----------------------------

def vol_sampler_forward(pos, template, warp=None, gwarps=None, gwarprot=None,
                        gwarpt=None, viewtemplate=False, displacementwarp=False,
                        tile_p=1024, tile_k=None, compute_dtype=jnp.bfloat16,
                        out_dtype=jnp.float32):
    """Matches VolSampler.forward: returns (val[:, :3], val[:, 3:]) in NCDHW.

    compute_dtype: dtype fed to the MXU for the template / tent-weight operands (accumulation
    is always f32; the warp-field resample is always f32 to keep coordinates exact).
    tile_k: optional K-chunk (multiple of Wt, and of 128 unless it spans Ht*Wt) for templates
    too large to sit resident in VMEM; auto-chosen from the per-generation VMEM budget.
    """
    N, D, H, W, _ = pos.shape
    C, Dt, Ht, Wt = template.shape[1:]
    P = D * H * W

    # pick a lane-aligned tile_p (or the full axis)
    tile_p = min(tile_p, P)
    if tile_p < P:
        tile_p = max((tile_p // 128) * 128, 128)
        while tile_p > 128 and P % tile_p:
            tile_p -= 128
        if tile_p < 128 or P % tile_p:
            tile_p = P
    assert tile_p == P or (P % tile_p == 0 and tile_p % 128 == 0)

    use_gwarp = (gwarps is not None) and (not viewtemplate)
    use_warp = (warp is not None) and (not viewtemplate)
    itemsize = int(np.dtype(compute_dtype).itemsize)

    # channel-first, lane-dense point coords: [N, 3, P]
    # TODO(synk): accept channel-first pos from the caller (or allow_input_fusion) to elide this
    # standalone HBM transpose when the kernel is overhead-bound.
    pos_cf = jnp.transpose(pos.reshape(N, P, 3), (0, 2, 1)).astype(jnp.float32)
    # template as [N, C*Dt, Ht*Wt]: a pure (free) reshape of NCDHW
    tmpl2d = template.reshape(N, C * Dt, Ht * Wt).astype(compute_dtype)

    if use_warp:
        Dw, Hw, Ww = warp.shape[2:]
        warp_dims = (Dw, Hw, Ww)
        warp2d = warp.reshape(N, 3 * Dw, Hw * Ww).astype(jnp.float32)   # f32 on purpose
        warp_bytes = 3 * Dw * Hw * Ww * 4
    else:
        warp_dims, warp2d, warp_bytes = None, None, 0
        Dw = Hw = Ww = 0

    gp = None
    if use_gwarp:
        gp = jnp.concatenate([gwarpt.reshape(N, 3).astype(jnp.float32),
                              gwarps.reshape(N, 3).astype(jnp.float32),
                              gwarprot.reshape(N, 9).astype(jnp.float32)], axis=1)  # [N, 15]

    # ---- per-generation VMEM budget ----
    try:
        vmem_cap = int(pltpu.get_tpu_info().vmem_capacity_bytes)
    except Exception:
        vmem_cap = 64 << 20
    vmem_budget = (vmem_cap * 7) // 8   # leave Mosaic internal-scratch headroom

    def _est_vmem(ty_):
        nk_ = Ht // ty_
        tk_ = ty_ * Wt
        tmpl_buf = (1 if nk_ == 1 else 2) * C * Dt * tk_ * itemsize      # Buffered(1) if resident
        io = 2 * 3 * tile_p * 4 + 2 * C * tile_p * 4
        acc = C * Dt * tile_p * 4
        crd = 4 * tile_p * 4
        inter = tile_p * ((Wt + ty_) * (4 + itemsize) + tk_ * itemsize
                          + C * Dt * 4 + Dt * 4)
        if use_warp:
            inter = max(inter, tile_p * 4 * (2 * (Dw + Hw + Ww) + Hw * Ww + 3 * Dw + 8))
        return tmpl_buf + warp_bytes + io + acc + crd + (3 * inter) // 2 + (2 << 20)

    # ---- choose K-chunking over Ht*Wt (rows of y per chunk) ----
    if tile_k is not None:
        assert tile_k % Wt == 0 and Ht % (tile_k // Wt) == 0
        ty = tile_k // Wt
        assert ty == Ht or (ty * Wt) % 128 == 0, "tile_k must be 128-aligned or span Ht*Wt"
    else:
        cands = [d for d in range(Ht, 0, -1)
                 if Ht % d == 0 and (d == Ht or (d * Wt) % 128 == 0)]
        ty = cands[-1]
        for d in cands:
            if _est_vmem(d) <= vmem_budget:
                ty = d
                break
    nk = Ht // ty
    tk = ty * Wt

    vmem_limit = int(min(max(_est_vmem(ty) + (4 << 20), 32 << 20), vmem_budget))

    kernel = _make_kernel(use_gwarp, use_warp, displacementwarp, warp_dims,
                          (Dt, Ht, Wt), C, ty, nk, compute_dtype)

    grid = (N, P // tile_p, nk)
    # k is a reduction -> "arbitrary". On v7x (2 TCs) prefer sharding the n axis so each core
    # holds one resident template copy; when N == 1 let megacore split p instead.
    dim_sem = ("parallel", "parallel" if N == 1 else "arbitrary", "arbitrary")

    flops = 2 * N * P * C * Dt * Ht * Wt + (2 * N * P * 3 * Dw * Hw * Ww if use_warp else 0)
    bytes_accessed = (pos_cf.size * 4 + N * C * P * int(np.dtype(out_dtype).itemsize)
                      + tmpl2d.size * itemsize * (P // tile_p if nk > 1 else 1)
                      + (warp2d.size * 4 if use_warp else 0))

    def _build_specs(single_buffer_resident):
        args, in_specs = [], []
        if use_gwarp:
            args.append(gp)
            in_specs.append(pl.BlockSpec(memory_space=pltpu.MemorySpace.SMEM))
        args.append(pos_cf)
        in_specs.append(pl.BlockSpec((1, 3, tile_p), lambda n, p, k: (n, 0, p)))
        if use_warp:
            args.append(warp2d)
            if single_buffer_resident:
                in_specs.append(pl.BlockSpec((1, 3 * Dw, Hw * Ww),
                                             lambda n, p, k: (n, 0, 0),
                                             pipeline_mode=pl.Buffered(1)))
            else:
                in_specs.append(pl.BlockSpec((1, 3 * Dw, Hw * Ww),
                                             lambda n, p, k: (n, 0, 0)))
        args.append(tmpl2d)
        if single_buffer_resident and nk == 1:
            # resident template: block only changes when n does -> single buffer halves VMEM
            in_specs.append(pl.BlockSpec((1, C * Dt, tk), lambda n, p, k: (n, 0, k),
                                         pipeline_mode=pl.Buffered(1)))
        else:
            in_specs.append(pl.BlockSpec((1, C * Dt, tk), lambda n, p, k: (n, 0, k)))
        return args, in_specs

    def _run(single_buffer_resident):
        args, in_specs = _build_specs(single_buffer_resident)
        return pl.pallas_call(
            kernel,
            out_shape=jax.ShapeDtypeStruct((N, C, P), out_dtype),
            grid=grid,
            in_specs=in_specs,
            out_specs=pl.BlockSpec((1, C, tile_p), lambda n, p, k: (n, 0, p)),
            scratch_shapes=[pltpu.VMEM((C * Dt, tile_p), jnp.float32),
                            pltpu.VMEM((4, tile_p), jnp.float32)],
            compiler_params=pltpu.CompilerParams(
                dimension_semantics=dim_sem,
                vmem_limit_bytes=vmem_limit),
            cost_estimate=pl.CostEstimate(flops=int(flops), transcendentals=0,
                                          bytes_accessed=int(bytes_accessed)),
        )(*args)

    try:
        out = _run(single_buffer_resident=True)
    except Exception:
        # pipeline_mode / Buffered(1) not supported on this jax version -> default buffering
        out = _run(single_buffer_resident=False)

    val = out.reshape(N, C, D, H, W)   # lane-dense [N, C, P] -> NCDHW is a free reshape
    return val[:, :3], val[:, 3:]


# ---------------- pure-JAX reference (dense formulation, for sanity checks) ----------------

def _ref_grid_sample(vol, pos):
    # vol: [N, C, Dd, Hh, Ww]; pos: [N, P, 3] -> [N, P, C]
    N, C, Dd, Hh, Ww = vol.shape
    V = Dd * Hh * Ww
    vol_flat = jnp.transpose(vol, (0, 2, 3, 4, 1)).reshape(N, V, C)
    ix = ((pos[..., 0:1] + 1.0) * Ww - 1.0) * 0.5
    iy = ((pos[..., 1:2] + 1.0) * Hh - 1.0) * 0.5
    iz = ((pos[..., 2:3] + 1.0) * Dd - 1.0) * 0.5
    v = jnp.arange(V)
    xv = (v % Ww).astype(jnp.float32)
    yv = ((v // Ww) % Hh).astype(jnp.float32)
    zv = (v // (Ww * Hh)).astype(jnp.float32)
    w = (jnp.maximum(1.0 - jnp.abs(ix - xv), 0.0)
         * jnp.maximum(1.0 - jnp.abs(iy - yv), 0.0)
         * jnp.maximum(1.0 - jnp.abs(iz - zv), 0.0))
    return jnp.einsum('npv,nvc->npc', w, vol_flat, precision=jax.lax.Precision.HIGHEST)


def _ref_forward(pos, template, warp, gwarps, gwarprot, gwarpt, displacementwarp=False):
    N, D, H, W, _ = pos.shape
    C = template.shape[1]
    P = D * H * W
    p = pos.reshape(N, P, 3)
    if gwarps is not None:
        p = jnp.einsum('npj,nij->npi', p - gwarpt[:, None, :], gwarprot,
                       precision=jax.lax.Precision.HIGHEST) * gwarps[:, None, :]
    valid = None
    if warp is not None:
        if displacementwarp:
            p = p + _ref_grid_sample(warp, p)
        else:
            valid = jnp.all((p > -1.0) & (p < 1.0), axis=-1).astype(jnp.float32)
            p = _ref_grid_sample(warp, p)
    val = _ref_grid_sample(template, p)
    if valid is not None:
        val = val * valid[..., None]
    val = jnp.transpose(val.reshape(N, D, H, W, C), (0, 4, 1, 2, 3))
    return val[:, :3], val[:, 3:]


if __name__ == "__main__":
    key = jax.random.PRNGKey(0)
    ks = jax.random.split(key, 8)

    N, C = 2, 4
    D = H = W = 8        # output sample grid -> P = 512 points
    Dt = Ht = Wt = 8     # template volume
    Dw = Hw = Ww = 8     # warp volume

    pos = jax.random.uniform(ks[0], (N, D, H, W, 3), jnp.float32, -1.1, 1.1)
    template = jax.random.normal(ks[1], (N, C, Dt, Ht, Wt), jnp.float32)
    warp = jax.random.uniform(ks[2], (N, 3, Dw, Hw, Ww), jnp.float32, -1.0, 1.0)
    gwarps = 1.0 + 0.1 * jax.random.normal(ks[3], (N, 3), jnp.float32)
    gwarpt = 0.1 * jax.random.normal(ks[4], (N, 3), jnp.float32)
    gwarprot = (jnp.eye(3, dtype=jnp.float32)[None]
                + 0.05 * jax.random.normal(ks[5], (N, 3, 3), jnp.float32))

    def _maxerr(a, b):
        return float(jnp.max(jnp.abs(a - b)))

    # 1) f32 MXU path, full gwarp+warp pipeline: tight check of layout / separable math.
    rgb32, a32 = vol_sampler_forward(pos, template, warp=warp, gwarps=gwarps,
                                     gwarprot=gwarprot, gwarpt=gwarpt,
                                     compute_dtype=jnp.float32)
    rgb32 = jax.block_until_ready(rgb32)
    a32 = jax.block_until_ready(a32)
    assert rgb32.shape == (N, 3, D, H, W) and a32.shape == (N, C - 3, D, H, W)
    rgb_ref, a_ref = _ref_forward(pos, template, warp, gwarps, gwarprot, gwarpt)
    err = max(_maxerr(rgb32, rgb_ref), _maxerr(a32, a_ref))
    assert err < 1e-3, f"f32 kernel mismatch vs reference: {err}"

    # 2) K-tiled path (nk=2 over Ht*Wt) on a wider template, f32.
    template_big = jax.random.normal(ks[6], (N, C, 8, 8, 32), jnp.float32)
    rgb_kt, a_kt = vol_sampler_forward(pos, template_big, warp=warp, gwarps=gwarps,
                                       gwarprot=gwarprot, gwarpt=gwarpt,
                                       compute_dtype=jnp.float32, tile_k=128)
    rgb_kt = jax.block_until_ready(rgb_kt)
    rgb_refb, a_refb = _ref_forward(pos, template_big, warp, gwarps, gwarprot, gwarpt)
    err = max(_maxerr(rgb_kt, rgb_refb), _maxerr(a_kt, a_refb))
    assert err < 1e-3, f"K-tiled kernel mismatch vs reference: {err}"

    # 3) displacement-warp branch (f32).
    rgb_d, a_d = vol_sampler_forward(pos, template, warp=warp, gwarps=gwarps,
                                     gwarprot=gwarprot, gwarpt=gwarpt,
                                     displacementwarp=True, compute_dtype=jnp.float32)
    rgb_d = jax.block_until_ready(rgb_d)
    rgb_refd, a_refd = _ref_forward(pos, template, warp, gwarps, gwarprot, gwarpt,
                                    displacementwarp=True)
    err = max(_maxerr(rgb_d, rgb_refd), _maxerr(a_d, a_refd))
    assert err < 1e-3, f"displacementwarp kernel mismatch vs reference: {err}"

    # 4) viewtemplate branch (no gwarp / warp refs in the kernel).
    rgb_v, a_v = vol_sampler_forward(pos, template, warp=warp, gwarps=gwarps,
                                     gwarprot=gwarprot, gwarpt=gwarpt,
                                     viewtemplate=True, compute_dtype=jnp.float32)
    rgb_v = jax.block_until_ready(rgb_v)
    rgb_refv, a_refv = _ref_forward(pos, template, None, None, None, None)
    err = max(_maxerr(rgb_v, rgb_refv), _maxerr(a_v, a_refv))
    assert err < 1e-3, f"viewtemplate kernel mismatch vs reference: {err}"

    # 5) default bf16-MXU perf path. Warp resample stays f32 so coords are exact; residual
    #    error is bf16 template values + bf16 tent weights on the MXU.
    rgb16, a16 = vol_sampler_forward(pos, template, warp=warp, gwarps=gwarps,
                                     gwarprot=gwarprot, gwarpt=gwarpt)
    rgb16 = jax.block_until_ready(rgb16)
    a16 = jax.block_until_ready(a16)
    d_rgb = jnp.abs(rgb16 - rgb32)
    d_a = jnp.abs(a16 - a32)
    max16 = max(float(jnp.max(d_rgb)), float(jnp.max(d_a)))
    mean16 = float((jnp.sum(d_rgb) + jnp.sum(d_a)) / (d_rgb.size + d_a.size))
    assert max16 < 1e-1 and mean16 < 1e-2, f"bf16 path off: max={max16} mean={mean16}"

    print("KERNEL_OK")
</pallas_src>

<mosaic_0001>
module attributes {stable_mosaic.version = 11 : i64} {
  func.func @kernel(%arg0: i32, %arg1: i32, %arg2: i32, %arg3: memref<2x15xf32, #tpu.memory_space<smem>>, %arg4: memref<1x3x512xf32, #tpu.memory_space<vmem>>, %arg5: memref<1x24x64xf32, #tpu.memory_space<vmem>>, %arg6: memref<1x32x64xf32, #tpu.memory_space<vmem>>, %arg7: memref<1x4x512xf32, #tpu.memory_space<vmem>>, %arg8: memref<32x512xf32, #tpu.memory_space<vmem>>, %arg9: memref<4x512xf32, #tpu.memory_space<vmem>>) attributes {dimension_semantics = [#tpu.dimension_semantics<parallel>, #tpu.dimension_semantics<arbitrary>, #tpu.dimension_semantics<arbitrary>], iteration_bounds = array<i64: 2, 1, 1>, scalar_prefetch = 0 : i64, scratch_operands = 2 : i64, tpu.core_type = #tpu.core_type<tc>, window_params = [{transform_indices = @transform_0, window_bounds = array<i64: 2, 15>}, {transform_indices = @transform_1, window_bounds = array<i64: 1, 3, 512>}, {pipeline_mode = #tpu.pipeline_mode<synchronous>, transform_indices = @transform_2, window_bounds = array<i64: 1, 24, 64>}, {pipeline_mode = #tpu.pipeline_mode<synchronous>, transform_indices = @transform_3, window_bounds = array<i64: 1, 32, 64>}, {transform_indices = @transform_4, window_bounds = array<i64: 1, 4, 512>}]} {
    %c0_i32 = arith.constant 0 : i32
    %0 = arith.cmpi eq, %arg2, %c0_i32 : i32
    %1 = arith.extui %0 : i1 to i32
    %c0_i32_0 = arith.constant 0 : i32
    %2 = arith.cmpi ne, %1, %c0_i32_0 : i32
    scf.if %2 {
      %cst_22 = arith.constant 0.000000e+00 : f32
      %56 = vector.broadcast %cst_22 : f32 to vector<32x512xf32>
      %c0_23 = arith.constant 0 : index
      %c0_24 = arith.constant 0 : index
      %57 = vector.load %arg8[%c0_23, %c0_24] : memref<32x512xf32, #tpu.memory_space<vmem>>, vector<32x512xf32>
      tpu.vector_store %arg8[%c0_23, %c0_24], %56 {strides = array<i32>} : memref<32x512xf32, #tpu.memory_space<vmem>>, vector<32x512xf32>,
      %c0_25 = arith.constant 0 : index
      %c0_26 = arith.constant 0 : index
      %c0_27 = arith.constant 0 : index
      %58 = vector.load %arg4[%c0_25, %c0_26, %c0_27] : memref<1x3x512xf32, #tpu.memory_space<vmem>>, vector<1x3x512xf32>
      %59 = vector.shape_cast %58 : vector<1x3x512xf32> to vector<3x512xf32>
      %60 = vector.extract_strided_slice %59 {offsets = [0, 0], sizes = [1, 512], strides = [1, 1]} : vector<3x512xf32> to vector<1x512xf32>
      %61 = vector.extract_strided_slice %59 {offsets = [1, 0], sizes = [1, 512], strides = [1, 1]} : vector<3x512xf32> to vector<1x512xf32>
      %62 = vector.extract_strided_slice %59 {offsets = [2, 0], sizes = [1, 512], strides = [1, 1]} : vector<3x512xf32> to vector<1x512xf32>
      %63 = arith.index_cast %arg0 : i32 to index
      %c0_28 = arith.constant 0 : index
      %64 = memref.load %arg3[%63, %c0_28] : memref<2x15xf32, #tpu.memory_space<smem>>
      %65 = vector.broadcast %64 : f32 to vector<1x512xf32>
      %66 = arith.subf %60, %65 : vector<1x512xf32>
      %67 = arith.index_cast %arg0 : i32 to index
      %c1_29 = arith.constant 1 : index
      %68 = memref.load %arg3[%67, %c1_29] : memref<2x15xf32, #tpu.memory_space<smem>>
      %69 = vector.broadcast %68 : f32 to vector<1x512xf32>
      %70 = arith.subf %61, %69 : vector<1x512xf32>
      %71 = arith.index_cast %arg0 : i32 to index
      %c2 = arith.constant 2 : index
      %72 = memref.load %arg3[%71, %c2] : memref<2x15xf32, #tpu.memory_space<smem>>
      %73 = vector.broadcast %72 : f32 to vector<1x512xf32>
      %74 = arith.subf %62, %73 : vector<1x512xf32>
      %75 = arith.index_cast %arg0 : i32 to index
      %c6 = arith.constant 6 : index
      %76 = memref.load %arg3[%75, %c6] : memref<2x15xf32, #tpu.memory_space<smem>>
      %77 = vector.broadcast %76 : f32 to vector<1x512xf32>
      %78 = arith.mulf %77, %66 : vector<1x512xf32>
      %79 = arith.index_cast %arg0 : i32 to index
      %c7 = arith.constant 7 : index
      %80 = memref.load %arg3[%79, %c7] : memref<2x15xf32, #tpu.memory_space<smem>>
      %81 = vector.broadcast %80 : f32 to vector<1x512xf32>
      %82 = arith.mulf %81, %70 : vector<1x512xf32>
      %83 = arith.addf %78, %82 : vector<1x512xf32>
      %84 = arith.index_cast %arg0 : i32 to index
      %c8 = arith.constant 8 : index
      %85 = memref.load %arg3[%84, %c8] : memref<2x15xf32, #tpu.memory_space<smem>>
      %86 = vector.broadcast %85 : f32 to vector<1x512xf32>
      %87 = arith.mulf %86, %74 : vector<1x512xf32>
      %88 = arith.addf %83, %87 : vector<1x512xf32>
      %89 = arith.index_cast %arg0 : i32 to index
      %c3 = arith.constant 3 : index
      %90 = memref.load %arg3[%89, %c3] : memref<2x15xf32, #tpu.memory_space<smem>>
      %91 = vector.broadcast %90 : f32 to vector<1x512xf32>
      %92 = arith.mulf %88, %91 : vector<1x512xf32>
      %93 = arith.index_cast %arg0 : i32 to index
      %c9 = arith.constant 9 : index
      %94 = memref.load %arg3[%93, %c9] : memref<2x15xf32, #tpu.memory_space<smem>>
      %95 = vector.broadcast %94 : f32 to vector<1x512xf32>
      %96 = arith.mulf %95, %66 : vector<1x512xf32>
      %97 = arith.index_cast %arg0 : i32 to index
      %c10 = arith.constant 10 : index
      %98 = memref.load %arg3[%97, %c10] : memref<2x15xf32, #tpu.memory_space<smem>>
      %99 = vector.broadcast %98 : f32 to vector<1x512xf32>
      %100 = arith.mulf %99, %70 : vector<1x512xf32>
      %101 = arith.addf %96, %100 : vector<1x512xf32>
      %102 = arith.index_cast %arg0 : i32 to index
      %c11 = arith.constant 11 : index
      %103 = memref.load %arg3[%102, %c11] : memref<2x15xf32, #tpu.memory_space<smem>>
      %104 = vector.broadcast %103 : f32 to vector<1x512xf32>
      %105 = arith.mulf %104, %74 : vector<1x512xf32>
      %106 = arith.addf %101, %105 : vector<1x512xf32>
      %107 = arith.index_cast %arg0 : i32 to index
      %c4 = arith.constant 4 : index
      %108 = memref.load %arg3[%107, %c4] : memref<2x15xf32, #tpu.memory_space<smem>>
      %109 = vector.broadcast %108 : f32 to vector<1x512xf32>
      %110 = arith.mulf %106, %109 : vector<1x512xf32>
      %111 = arith.index_cast %arg0 : i32 to index
      %c12 = arith.constant 12 : index
      %112 = memref.load %arg3[%111, %c12] : memref<2x15xf32, #tpu.memory_space<smem>>
      %113 = vector.broadcast %112 : f32 to vector<1x512xf32>
      %114 = arith.mulf %113, %66 : vector<1x512xf32>
      %115 = arith.index_cast %arg0 : i32 to index
      %c13 = arith.constant 13 : index
      %116 = memref.load %arg3[%115, %c13] : memref<2x15xf32, #tpu.memory_space<smem>>
      %117 = vector.broadcast %116 : f32 to vector<1x512xf32>
      %118 = arith.mulf %117, %70 : vector<1x512xf32>
      %119 = arith.addf %114, %118 : vector<1x512xf32>
      %120 = arith.index_cast %arg0 : i32 to index
      %c14 = arith.constant 14 : index
      %121 = memref.load %arg3[%120, %c14] : memref<2x15xf32, #tpu.memory_space<smem>>
      %122 = vector.broadcast %121 : f32 to vector<1x512xf32>
      %123 = arith.mulf %122, %74 : vector<1x512xf32>
      %124 = arith.addf %119, %123 : vector<1x512xf32>
      %125 = arith.index_cast %arg0 : i32 to index
      %c5 = arith.constant 5 : index
      %126 = memref.load %arg3[%125, %c5] : memref<2x15xf32, #tpu.memory_space<smem>>
      %127 = vector.broadcast %126 : f32 to vector<1x512xf32>
      %128 = arith.mulf %124, %127 : vector<1x512xf32>
      %cst_30 = arith.constant -1.000000e+00 : f32
      %129 = vector.broadcast %cst_30 : f32 to vector<1x512xf32>
      %130 = arith.cmpf ogt, %92, %129 : vector<1x512xf32>
      %cst_31 = arith.constant 1.000000e+00 : f32
      %131 = vector.broadcast %cst_31 : f32 to vector<1x512xf32>
      %132 = arith.cmpf olt, %92, %131 : vector<1x512xf32>
      %133 = arith.andi %130, %132 : vector<1x512xi1>
      %cst_32 = arith.constant -1.000000e+00 : f32
      %134 = vector.broadcast %cst_32 : f32 to vector<1x512xf32>
      %135 = arith.cmpf ogt, %110, %134 : vector<1x512xf32>
      %136 = arith.andi %133, %135 : vector<1x512xi1>
      %cst_33 = arith.constant 1.000000e+00 : f32
      %137 = vector.broadcast %cst_33 : f32 to vector<1x512xf32>
      %138 = arith.cmpf olt, %110, %137 : vector<1x512xf32>
      %139 = arith.andi %136, %138 : vector<1x512xi1>
      %cst_34 = arith.constant -1.000000e+00 : f32
      %140 = vector.broadcast %cst_34 : f32 to vector<1x512xf32>
      %141 = arith.cmpf ogt, %128, %140 : vector<1x512xf32>
      %142 = arith.andi %139, %141 : vector<1x512xi1>
      %cst_35 = arith.constant 1.000000e+00 : f32
      %143 = vector.broadcast %cst_35 : f32 to vector<1x512xf32>
      %144 = arith.cmpf olt, %128, %143 : vector<1x512xf32>
      %145 = arith.andi %142, %144 : vector<1x512xi1>
      %146 = arith.extui %145 : vector<1x512xi1> to vector<1x512xi32>
      %147 = arith.sitofp %146 : vector<1x512xi32> to vector<1x512xf32>
      %c0_36 = arith.constant 0 : index
      %c0_37 = arith.constant 0 : index
      %c0_38 = arith.constant 0 : index
      %148 = vector.load %arg5[%c0_36, %c0_37, %c0_38] : memref<1x24x64xf32, #tpu.memory_space<vmem>>, vector<1x24x64xf32>
      %149 = vector.shape_cast %148 : vector<1x24x64xf32> to vector<24x64xf32>
      %cst_39 = arith.constant 1.000000e+00 : f32
      %150 = vector.broadcast %cst_39 : f32 to vector<1x512xf32>
      %151 = arith.addf %92, %150 : vector<1x512xf32>
      %cst_40 = arith.constant 4.000000e+00 : f32
      %152 = vector.broadcast %cst_40 : f32 to vector<1x512xf32>
      %153 = arith.mulf %151, %152 : vector<1x512xf32>
      %cst_41 = arith.constant 5.000000e-01 : f32
      %154 = vector.broadcast %cst_41 : f32 to vector<1x512xf32>
      %155 = arith.subf %153, %154 : vector<1x512xf32>
      %156 = tpu.iota {dimensions = array<i32: 0>} : vector<8x1xi32>
      %157 = arith.sitofp %156 : vector<8x1xi32> to vector<8x1xf32>
      %158 = vector.broadcast %155 : vector<1x512xf32> to vector<8x512xf32>
      %159 = vector.broadcast %157 : vector<8x1xf32> to vector<8x512xf32>
      %160 = arith.subf %158, %159 : vector<8x512xf32>
      %161 = math.absf %160 : vector<8x512xf32>
      %cst_42 = arith.constant 1.000000e+00 : f32
      %162 = vector.broadcast %cst_42 : f32 to vector<8x512xf32>
      %163 = arith.subf %162, %161 : vector<8x512xf32>
      %cst_43 = arith.constant 0.000000e+00 : f32
      %164 = vector.broadcast %cst_43 : f32 to vector<8x512xf32>
      %165 = arith.maximumf %163, %164 : vector<8x512xf32>
      %cst_44 = arith.constant 1.000000e+00 : f32
      %166 = vector.broadcast %cst_44 : f32 to vector<1x512xf32>
      %167 = arith.addf %110, %166 : vector<1x512xf32>
      %cst_45 = arith.constant 4.000000e+00 : f32
      %168 = vector.broadcast %cst_45 : f32 to vector<1x512xf32>
      %169 = arith.mulf %167, %168 : vector<1x512xf32>
      %cst_46 = arith.constant 5.000000e-01 : f32
      %170 = vector.broadcast %cst_46 : f32 to vector<1x512xf32>
      %171 = arith.subf %169, %170 : vector<1x512xf32>
      %172 = tpu.iota {dimensions = array<i32: 0>} : vector<8x1xi32>
      %173 = arith.sitofp %172 : vector<8x1xi32> to vector<8x1xf32>
      %174 = vector.broadcast %171 : vector<1x512xf32> to vector<8x512xf32>
      %175 = vector.broadcast %173 : vector<8x1xf32> to vector<8x512xf32>
      %176 = arith.subf %174, %175 : vector<8x512xf32>
      %177 = math.absf %176 : vector<8x512xf32>
      %cst_47 = arith.constant 1.000000e+00 : f32
      %178 = vector.broadcast %cst_47 : f32 to vector<8x512xf32>
      %179 = arith.subf %178, %177 : vector<8x512xf32>
      %cst_48 = arith.constant 0.000000e+00 : f32
      %180 = vector.broadcast %cst_48 : f32 to vector<8x512xf32>
      %181 = arith.maximumf %179, %180 : vector<8x512xf32>
      %cst_49 = arith.constant 1.000000e+00 : f32
      %182 = vector.broadcast %cst_49 : f32 to vector<1x512xf32>
      %183 = arith.addf %128, %182 : vector<1x512xf32>
      %cst_50 = arith.constant 4.000000e+00 : f32
      %184 = vector.broadcast %cst_50 : f32 to vector<1x512xf32>
      %185 = arith.mulf %183, %184 : vector<1x512xf32>
      %cst_51 = arith.constant 5.000000e-01 : f32
      %186 = vector.broadcast %cst_51 : f32 to vector<1x512xf32>
      %187 = arith.subf %185, %186 : vector<1x512xf32>
      %188 = tpu.iota {dimensions = array<i32: 0>} : vector<8x1xi32>
      %189 = arith.sitofp %188 : vector<8x1xi32> to vector<8x1xf32>
      %190 = vector.broadcast %187 : vector<1x512xf32> to vector<8x512xf32>
      %191 = vector.broadcast %189 : vector<8x1xf32> to vector<8x512xf32>
      %192 = arith.subf %190, %191 : vector<8x512xf32>
      %193 = math.absf %192 : vector<8x512xf32>
      %cst_52 = arith.constant 1.000000e+00 : f32
      %194 = vector.broadcast %cst_52 : f32 to vector<8x512xf32>
      %195 = arith.subf %194, %193 : vector<8x512xf32>
      %cst_53 = arith.constant 0.000000e+00 : f32
      %196 = vector.broadcast %cst_53 : f32 to vector<8x512xf32>
      %197 = arith.maximumf %195, %196 : vector<8x512xf32>
      %198 = vector.shape_cast %181 : vector<8x512xf32> to vector<8x1x512xf32>
      %199 = vector.shape_cast %165 : vector<8x512xf32> to vector<1x8x512xf32>
      %200 = vector.broadcast %198 : vector<8x1x512xf32> to vector<8x8x512xf32>
      %201 = vector.broadcast %199 : vector<1x8x512xf32> to vector<8x8x512xf32>
      %202 = arith.mulf %200, %201 : vector<8x8x512xf32>
      %203 = vector.shape_cast %202 : vector<8x8x512xf32> to vector<64x512xf32>
      %cst_54 = arith.constant dense<0.000000e+00> : vector<24x512xf32>
      %204 = tpu.matmul %149, %203, %cst_54 {dimension_numbers = #tpu.dot_dimension_numbers<[1], [0], [0], [1], [0, 0, 1, 1], [], []>} : vector<24x64xf32>, vector<64x512xf32>, vector<24x512xf32> -> vector<24x512xf32>
      %205 = vector.shape_cast %204 : vector<24x512xf32> to vector<3x8x512xf32>
      %206 = vector.shape_cast %197 : vector<8x512xf32> to vector<1x8x512xf32>
      %207 = vector.broadcast %206 : vector<1x8x512xf32> to vector<3x8x512xf32>
      %208 = arith.mulf %205, %207 : vector<3x8x512xf32>
      %cst_55 = arith.constant dense<0.000000e+00> : vector<3x512xf32>
      %209 = vector.multi_reduction <add>, %208, %cst_55 [1] : vector<3x8x512xf32> to vector<3x512xf32>
      %210 = vector.extract_strided_slice %209 {offsets = [0, 0], sizes = [1, 512], strides = [1, 1]} : vector<3x512xf32> to vector<1x512xf32>
      %211 = vector.extract_strided_slice %209 {offsets = [1, 0], sizes = [1, 512], strides = [1, 1]} : vector<3x512xf32> to vector<1x512xf32>
      %212 = vector.extract_strided_slice %209 {offsets = [2, 0], sizes = [1, 512], strides = [1, 1]} : vector<3x512xf32> to vector<1x512xf32>
      %c0_56 = arith.constant 0 : index
      %c0_57 = arith.constant 0 : index
      %213 = vector.load %arg9[%c0_56, %c0_57] : memref<4x512xf32, #tpu.memory_space<vmem>>, vector<1x512xf32>
      tpu.vector_store %arg9[%c0_56, %c0_57], %210 {strides = array<i32>} : memref<4x512xf32, #tpu.memory_space<vmem>>, vector<1x512xf32>,
      %c1_58 = arith.constant 1 : index
      %c0_59 = arith.constant 0 : index
      %214 = vector.load %arg9[%c1_58, %c0_59] : memref<4x512xf32, #tpu.memory_space<vmem>>, vector<1x512xf32>
      tpu.vector_store %arg9[%c1_58, %c0_59], %211 {strides = array<i32>} : memref<4x512xf32, #tpu.memory_space<vmem>>, vector<1x512xf32>,
      %c2_60 = arith.constant 2 : index
      %c0_61 = arith.constant 0 : index
      %215 = vector.load %arg9[%c2_60, %c0_61] : memref<4x512xf32, #tpu.memory_space<vmem>>, vector<1x512xf32>
      tpu.vector_store %arg9[%c2_60, %c0_61], %212 {strides = array<i32>} : memref<4x512xf32, #tpu.memory_space<vmem>>, vector<1x512xf32>,
      %c3_62 = arith.constant 3 : index
      %c0_63 = arith.constant 0 : index
      %216 = vector.load %arg9[%c3_62, %c0_63] : memref<4x512xf32, #tpu.memory_space<vmem>>, vector<1x512xf32>
      tpu.vector_store %arg9[%c3_62, %c0_63], %147 {strides = array<i32>} : memref<4x512xf32, #tpu.memory_space<vmem>>, vector<1x512xf32>,
    } else {
    }
    %c0 = arith.constant 0 : index
    %c0_1 = arith.constant 0 : index
    %3 = vector.load %arg9[%c0, %c0_1] : memref<4x512xf32, #tpu.memory_space<vmem>>, vector<1x512xf32>
    %c1 = arith.constant 1 : index
    %c0_2 = arith.constant 0 : index
    %4 = vector.load %arg9[%c1, %c0_2] : memref<4x512xf32, #tpu.memory_space<vmem>>, vector<1x512xf32>
    %cst = arith.constant 1.000000e+00 : f32
    %5 = vector.broadcast %cst : f32 to vector<1x512xf32>
    %6 = arith.addf %3, %5 : vector<1x512xf32>
    %cst_3 = arith.constant 4.000000e+00 : f32
    %7 = vector.broadcast %cst_3 : f32 to vector<1x512xf32>
    %8 = arith.mulf %6, %7 : vector<1x512xf32>
    %cst_4 = arith.constant 5.000000e-01 : f32
    %9 = vector.broadcast %cst_4 : f32 to vector<1x512xf32>
    %10 = arith.subf %8, %9 : vector<1x512xf32>
    %11 = tpu.iota {dimensions = array<i32: 0>} : vector<8x1xi32>
    %12 = arith.sitofp %11 : vector<8x1xi32> to vector<8x1xf32>
    %13 = vector.broadcast %10 : vector<1x512xf32> to vector<8x512xf32>
    %14 = vector.broadcast %12 : vector<8x1xf32> to vector<8x512xf32>
    %15 = arith.subf %13, %14 : vector<8x512xf32>
    %16 = math.absf %15 : vector<8x512xf32>
    %cst_5 = arith.constant 1.000000e+00 : f32
    %17 = vector.broadcast %cst_5 : f32 to vector<8x512xf32>
    %18 = arith.subf %17, %16 : vector<8x512xf32>
    %cst_6 = arith.constant 0.000000e+00 : f32
    %19 = vector.broadcast %cst_6 : f32 to vector<8x512xf32>
    %20 = arith.maximumf %18, %19 : vector<8x512xf32>
    %cst_7 = arith.constant 1.000000e+00 : f32
    %21 = vector.broadcast %cst_7 : f32 to vector<1x512xf32>
    %22 = arith.addf %4, %21 : vector<1x512xf32>
    %cst_8 = arith.constant 4.000000e+00 : f32
    %23 = vector.broadcast %cst_8 : f32 to vector<1x512xf32>
    %24 = arith.mulf %22, %23 : vector<1x512xf32>
    %cst_9 = arith.constant 5.000000e-01 : f32
    %25 = vector.broadcast %cst_9 : f32 to vector<1x512xf32>
    %26 = arith.subf %24, %25 : vector<1x512xf32>
    %c8_i32 = arith.constant 8 : i32
    %27 = arith.muli %arg2, %c8_i32 : i32
    %28 = arith.sitofp %27 : i32 to f32
    %29 = tpu.iota {dimensions = array<i32: 0>} : vector<8x1xi32>
    %30 = arith.sitofp %29 : vector<8x1xi32> to vector<8x1xf32>
    %31 = vector.broadcast %28 : f32 to vector<8x1xf32>
    %32 = arith.addf %30, %31 : vector<8x1xf32>
    %33 = vector.broadcast %26 : vector<1x512xf32> to vector<8x512xf32>
    %34 = vector.broadcast %32 : vector<8x1xf32> to vector<8x512xf32>
    %35 = arith.subf %33, %34 : vector<8x512xf32>
    %36 = math.absf %35 : vector<8x512xf32>
    %cst_10 = arith.constant 1.000000e+00 : f32
    %37 = vector.broadcast %cst_10 : f32 to vector<8x512xf32>
    %38 = arith.subf %37, %36 : vector<8x512xf32>
    %cst_11 = arith.constant 0.000000e+00 : f32
    %39 = vector.broadcast %cst_11 : f32 to vector<8x512xf32>
    %40 = arith.maximumf %38, %39 : vector<8x512xf32>
    %41 = vector.shape_cast %40 : vector<8x512xf32> to vector<8x1x512xf32>
    %42 = vector.shape_cast %20 : vector<8x512xf32> to vector<1x8x512xf32>
    %43 = vector.broadcast %41 : vector<8x1x512xf32> to vector<8x8x512xf32>
    %44 = vector.broadcast %42 : vector<1x8x512xf32> to vector<8x8x512xf32>
    %45 = arith.mulf %43, %44 : vector<8x8x512xf32>
    %46 = vector.shape_cast %45 : vector<8x8x512xf32> to vector<64x512xf32>
    %c0_12 = arith.constant 0 : index
    %c0_13 = arith.constant 0 : index
    %47 = vector.load %arg8[%c0_12, %c0_13] : memref<32x512xf32, #tpu.memory_space<vmem>>, vector<32x512xf32>
    %c0_14 = arith.constant 0 : index
    %c0_15 = arith.constant 0 : index
    %c0_16 = arith.constant 0 : index
    %48 = vector.load %arg6[%c0_14, %c0_15, %c0_16] : memref<1x32x64xf32, #tpu.memory_space<vmem>>, vector<1x32x64xf32>
    %49 = vector.shape_cast %48 : vector<1x32x64xf32> to vector<32x64xf32>
    %cst_17 = arith.constant dense<0.000000e+00> : vector<32x512xf32>
    %50 = tpu.matmul %49, %46, %cst_17 {dimension_numbers = #tpu.dot_dimension_numbers<[1], [0], [0], [1], [0, 0, 1, 1], [], []>} : vector<32x64xf32>, vector<64x512xf32>, vector<32x512xf32> -> vector<32x512xf32>
    %51 = arith.addf %47, %50 : vector<32x512xf32>
    %c0_18 = arith.constant 0 : index
    %c0_19 = arith.constant 0 : index
    %52 = vector.load %arg8[%c0_18, %c0_19] : memref<32x512xf32, #tpu.memory_space<vmem>>, vector<32x512xf32>
    tpu.vector_store %arg8[%c0_18, %c0_19], %51 {strides = array<i32>} : memref<32x512xf32, #tpu.memory_space<vmem>>, vector<32x512xf32>,
    %c0_i32_20 = arith.constant 0 : i32
    %53 = arith.cmpi eq, %arg2, %c0_i32_20 : i32
    %54 = arith.extui %53 : i1 to i32
    %c0_i32_21 = arith.constant 0 : i32
    %55 = arith.cmpi ne, %54, %c0_i32_21 : i32
    scf.if %55 {
      %c2 = arith.constant 2 : index
      %c0_22 = arith.constant 0 : index
      %56 = vector.load %arg9[%c2, %c0_22] : memref<4x512xf32, #tpu.memory_space<vmem>>, vector<1x512xf32>
      %cst_23 = arith.constant 1.000000e+00 : f32
      %57 = vector.broadcast %cst_23 : f32 to vector<1x512xf32>
      %58 = arith.addf %56, %57 : vector<1x512xf32>
      %cst_24 = arith.constant 4.000000e+00 : f32
      %59 = vector.broadcast %cst_24 : f32 to vector<1x512xf32>
      %60 = arith.mulf %58, %59 : vector<1x512xf32>
      %cst_25 = arith.constant 5.000000e-01 : f32
      %61 = vector.broadcast %cst_25 : f32 to vector<1x512xf32>
      %62 = arith.subf %60, %61 : vector<1x512xf32>
      %63 = tpu.iota {dimensions = array<i32: 0>} : vector<8x1xi32>
      %64 = arith.sitofp %63 : vector<8x1xi32> to vector<8x1xf32>
      %65 = vector.broadcast %62 : vector<1x512xf32> to vector<8x512xf32>
      %66 = vector.broadcast %64 : vector<8x1xf32> to vector<8x512xf32>
      %67 = arith.subf %65, %66 : vector<8x512xf32>
      %68 = math.absf %67 : vector<8x512xf32>
      %cst_26 = arith.constant 1.000000e+00 : f32
      %69 = vector.broadcast %cst_26 : f32 to vector<8x512xf32>
      %70 = arith.subf %69, %68 : vector<8x512xf32>
      %cst_27 = arith.constant 0.000000e+00 : f32
      %71 = vector.broadcast %cst_27 : f32 to vector<8x512xf32>
      %72 = arith.maximumf %70, %71 : vector<8x512xf32>
      %c0_28 = arith.constant 0 : index
      %c0_29 = arith.constant 0 : index
      %73 = vector.load %arg8[%c0_28, %c0_29] : memref<32x512xf32, #tpu.memory_space<vmem>>, vector<32x512xf32>
      %74 = vector.shape_cast %73 : vector<32x512xf32> to vector<4x8x512xf32>
      %75 = vector.shape_cast %72 : vector<8x512xf32> to vector<1x8x512xf32>
      %76 = vector.broadcast %75 : vector<1x8x512xf32> to vector<4x8x512xf32>
      %77 = arith.mulf %74, %76 : vector<4x8x512xf32>
      %cst_30 = arith.constant dense<0.000000e+00> : vector<4x512xf32>
      %78 = vector.multi_reduction <add>, %77, %cst_30 [1] : vector<4x8x512xf32> to vector<4x512xf32>
      %c3 = arith.constant 3 : index
      %c0_31 = arith.constant 0 : index
      %79 = vector.load %arg9[%c3, %c0_31] : memref<4x512xf32, #tpu.memory_space<vmem>>, vector<1x512xf32>
      %80 = vector.broadcast %79 : vector<1x512xf32> to vector<4x512xf32>
      %81 = arith.mulf %78, %80 : vector<4x512xf32>
      %c0_32 = arith.constant 0 : index
      %c0_33 = arith.constant 0 : index
      %c0_34 = arith.constant 0 : index
      %82 = vector.load %arg7[%c0_32, %c0_33, %c0_34] : memref<1x4x512xf32, #tpu.memory_space<vmem>>, vector<1x4x512xf32>
      %83 = vector.shape_cast %82 : vector<1x4x512xf32> to vector<4x512xf32>
      %84 = vector.shape_cast %81 : vector<4x512xf32> to vector<1x4x512xf32>
      tpu.vector_store %arg7[%c0_32, %c0_33, %c0_34], %84 {strides = array<i32>} : memref<1x4x512xf32, #tpu.memory_space<vmem>>, vector<1x4x512xf32>,
    } else {
    }
    return
  }
  func.func @transform_0(%arg0: i32, %arg1: i32, %arg2: i32) -> (i32, i32) {
    %c0_i32 = arith.constant 0 : i32
    %c0_i32_0 = arith.constant 0 : i32
    %c0_i32_1 = arith.constant 0 : i32
    return %c0_i32, %c0_i32_0 : i32, i32
  }
  func.func @transform_1(%arg0: i32, %arg1: i32, %arg2: i32) -> (i32, i32, i32) {
    %c0_i32 = arith.constant 0 : i32
    %c0_i32_0 = arith.constant 0 : i32
    return %arg0, %c0_i32, %arg1 : i32, i32, i32
  }
  func.func @transform_2(%arg0: i32, %arg1: i32, %arg2: i32) -> (i32, i32, i32) {
    %c0_i32 = arith.constant 0 : i32
    %c0_i32_0 = arith.constant 0 : i32
    %c0_i32_1 = arith.constant 0 : i32
    return %arg0, %c0_i32, %c0_i32_0 : i32, i32, i32
  }
  func.func @transform_3(%arg0: i32, %arg1: i32, %arg2: i32) -> (i32, i32, i32) {
    %c0_i32 = arith.constant 0 : i32
    %c0_i32_0 = arith.constant 0 : i32
    return %arg0, %c0_i32, %arg2 : i32, i32, i32
  }
  func.func @transform_4(%arg0: i32, %arg1: i32, %arg2: i32) -> (i32, i32, i32) {
    %c0_i32 = arith.constant 0 : i32
    %c0_i32_0 = arith.constant 0 : i32
    return %arg0, %c0_i32, %arg1 : i32, i32, i32
  }
}

module attributes {stable_mosaic.version = 11 : i64} {
  func.func @kernel(%arg0: i32, %arg1: i32, %arg2: i32, %arg3: memref<2x15xf32, #tpu.memory_space<smem>>, %arg4: memref<1x3x512xf32, #tpu.memory_space<vmem>>, %arg5: memref<1x24x64xf32, #tpu.memory_space<vmem>>, %arg6: memref<1x32x64xf32, #tpu.memory_space<vmem>>, %arg7: memref<1x4x512xf32, #tpu.memory_space<vmem>>, %arg8: memref<32x512xf32, #tpu.memory_space<vmem>>, %arg9: memref<4x512xf32, #tpu.memory_space<vmem>>) attributes {dimension_semantics = [#tpu.dimension_semantics<parallel>, #tpu.dimension_semantics<arbitrary>, #tpu.dimension_semantics<arbitrary>], iteration_bounds = array<i64: 2, 1, 1>, scalar_prefetch = 0 : i64, scratch_operands = 2 : i64, tpu.core_type = #tpu.core_type<tc>, window_params = [{transform_indices = @transform_0, window_bounds = array<i64: 2, 15>}, {transform_indices = @transform_1, window_bounds = array<i64: 1, 3, 512>}, {transform_indices = @transform_2, window_bounds = array<i64: 1, 24, 64>}, {transform_indices = @transform_3, window_bounds = array<i64: 1, 32, 64>}, {transform_indices = @transform_4, window_bounds = array<i64: 1, 4, 512>}]} {
    %c0_i32 = arith.constant 0 : i32
    %0 = arith.cmpi eq, %arg2, %c0_i32 : i32
    %1 = arith.extui %0 : i1 to i32
    %c0_i32_0 = arith.constant 0 : i32
    %2 = arith.cmpi ne, %1, %c0_i32_0 : i32
    scf.if %2 {
      %cst_22 = arith.constant 0.000000e+00 : f32
      %56 = vector.broadcast %cst_22 : f32 to vector<32x512xf32>
      %c0_23 = arith.constant 0 : index
      %c0_24 = arith.constant 0 : index
      %57 = vector.load %arg8[%c0_23, %c0_24] : memref<32x512xf32, #tpu.memory_space<vmem>>, vector<32x512xf32>
      tpu.vector_store %arg8[%c0_23, %c0_24], %56 {strides = array<i32>} : memref<32x512xf32, #tpu.memory_space<vmem>>, vector<32x512xf32>,
      %c0_25 = arith.constant 0 : index
      %c0_26 = arith.constant 0 : index
      %c0_27 = arith.constant 0 : index
      %58 = vector.load %arg4[%c0_25, %c0_26, %c0_27] : memref<1x3x512xf32, #tpu.memory_space<vmem>>, vector<1x3x512xf32>
      %59 = vector.shape_cast %58 : vector<1x3x512xf32> to vector<3x512xf32>
      %60 = vector.extract_strided_slice %59 {offsets = [0, 0], sizes = [1, 512], strides = [1, 1]} : vector<3x512xf32> to vector<1x512xf32>
      %61 = vector.extract_strided_slice %59 {offsets = [1, 0], sizes = [1, 512], strides = [1, 1]} : vector<3x512xf32> to vector<1x512xf32>
      %62 = vector.extract_strided_slice %59 {offsets = [2, 0], sizes = [1, 512], strides = [1, 1]} : vector<3x512xf32> to vector<1x512xf32>
      %63 = arith.index_cast %arg0 : i32 to index
      %c0_28 = arith.constant 0 : index
      %64 = memref.load %arg3[%63, %c0_28] : memref<2x15xf32, #tpu.memory_space<smem>>
      %65 = vector.broadcast %64 : f32 to vector<1x512xf32>
      %66 = arith.subf %60, %65 : vector<1x512xf32>
      %67 = arith.index_cast %arg0 : i32 to index
      %c1_29 = arith.constant 1 : index
      %68 = memref.load %arg3[%67, %c1_29] : memref<2x15xf32, #tpu.memory_space<smem>>
      %69 = vector.broadcast %68 : f32 to vector<1x512xf32>
      %70 = arith.subf %61, %69 : vector<1x512xf32>
      %71 = arith.index_cast %arg0 : i32 to index
      %c2 = arith.constant 2 : index
      %72 = memref.load %arg3[%71, %c2] : memref<2x15xf32, #tpu.memory_space<smem>>
      %73 = vector.broadcast %72 : f32 to vector<1x512xf32>
      %74 = arith.subf %62, %73 : vector<1x512xf32>
      %75 = arith.index_cast %arg0 : i32 to index
      %c6 = arith.constant 6 : index
      %76 = memref.load %arg3[%75, %c6] : memref<2x15xf32, #tpu.memory_space<smem>>
      %77 = vector.broadcast %76 : f32 to vector<1x512xf32>
      %78 = arith.mulf %77, %66 : vector<1x512xf32>
      %79 = arith.index_cast %arg0 : i32 to index
      %c7 = arith.constant 7 : index
      %80 = memref.load %arg3[%79, %c7] : memref<2x15xf32, #tpu.memory_space<smem>>
      %81 = vector.broadcast %80 : f32 to vector<1x512xf32>
      %82 = arith.mulf %81, %70 : vector<1x512xf32>
      %83 = arith.addf %78, %82 : vector<1x512xf32>
      %84 = arith.index_cast %arg0 : i32 to index
      %c8 = arith.constant 8 : index
      %85 = memref.load %arg3[%84, %c8] : memref<2x15xf32, #tpu.memory_space<smem>>
      %86 = vector.broadcast %85 : f32 to vector<1x512xf32>
      %87 = arith.mulf %86, %74 : vector<1x512xf32>
      %88 = arith.addf %83, %87 : vector<1x512xf32>
      %89 = arith.index_cast %arg0 : i32 to index
      %c3 = arith.constant 3 : index
      %90 = memref.load %arg3[%89, %c3] : memref<2x15xf32, #tpu.memory_space<smem>>
      %91 = vector.broadcast %90 : f32 to vector<1x512xf32>
      %92 = arith.mulf %88, %91 : vector<1x512xf32>
      %93 = arith.index_cast %arg0 : i32 to index
      %c9 = arith.constant 9 : index
      %94 = memref.load %arg3[%93, %c9] : memref<2x15xf32, #tpu.memory_space<smem>>
      %95 = vector.broadcast %94 : f32 to vector<1x512xf32>
      %96 = arith.mulf %95, %66 : vector<1x512xf32>
      %97 = arith.index_cast %arg0 : i32 to index
      %c10 = arith.constant 10 : index
      %98 = memref.load %arg3[%97, %c10] : memref<2x15xf32, #tpu.memory_space<smem>>
      %99 = vector.broadcast %98 : f32 to vector<1x512xf32>
      %100 = arith.mulf %99, %70 : vector<1x512xf32>
      %101 = arith.addf %96, %100 : vector<1x512xf32>
      %102 = arith.index_cast %arg0 : i32 to index
      %c11 = arith.constant 11 : index
      %103 = memref.load %arg3[%102, %c11] : memref<2x15xf32, #tpu.memory_space<smem>>
      %104 = vector.broadcast %103 : f32 to vector<1x512xf32>
      %105 = arith.mulf %104, %74 : vector<1x512xf32>
      %106 = arith.addf %101, %105 : vector<1x512xf32>
      %107 = arith.index_cast %arg0 : i32 to index
      %c4 = arith.constant 4 : index
      %108 = memref.load %arg3[%107, %c4] : memref<2x15xf32, #tpu.memory_space<smem>>
      %109 = vector.broadcast %108 : f32 to vector<1x512xf32>
      %110 = arith.mulf %106, %109 : vector<1x512xf32>
      %111 = arith.index_cast %arg0 : i32 to index
      %c12 = arith.constant 12 : index
      %112 = memref.load %arg3[%111, %c12] : memref<2x15xf32, #tpu.memory_space<smem>>
      %113 = vector.broadcast %112 : f32 to vector<1x512xf32>
      %114 = arith.mulf %113, %66 : vector<1x512xf32>
      %115 = arith.index_cast %arg0 : i32 to index
      %c13 = arith.constant 13 : index
      %116 = memref.load %arg3[%115, %c13] : memref<2x15xf32, #tpu.memory_space<smem>>
      %117 = vector.broadcast %116 : f32 to vector<1x512xf32>
      %118 = arith.mulf %117, %70 : vector<1x512xf32>
      %119 = arith.addf %114, %118 : vector<1x512xf32>
      %120 = arith.index_cast %arg0 : i32 to index
      %c14 = arith.constant 14 : index
      %121 = memref.load %arg3[%120, %c14] : memref<2x15xf32, #tpu.memory_space<smem>>
      %122 = vector.broadcast %121 : f32 to vector<1x512xf32>
      %123 = arith.mulf %122, %74 : vector<1x512xf32>
      %124 = arith.addf %119, %123 : vector<1x512xf32>
      %125 = arith.index_cast %arg0 : i32 to index
      %c5 = arith.constant 5 : index
      %126 = memref.load %arg3[%125, %c5] : memref<2x15xf32, #tpu.memory_space<smem>>
      %127 = vector.broadcast %126 : f32 to vector<1x512xf32>
      %128 = arith.mulf %124, %127 : vector<1x512xf32>
      %cst_30 = arith.constant -1.000000e+00 : f32
      %129 = vector.broadcast %cst_30 : f32 to vector<1x512xf32>
      %130 = arith.cmpf ogt, %92, %129 : vector<1x512xf32>
      %cst_31 = arith.constant 1.000000e+00 : f32
      %131 = vector.broadcast %cst_31 : f32 to vector<1x512xf32>
      %132 = arith.cmpf olt, %92, %131 : vector<1x512xf32>
      %133 = arith.andi %130, %132 : vector<1x512xi1>
      %cst_32 = arith.constant -1.000000e+00 : f32
      %134 = vector.broadcast %cst_32 : f32 to vector<1x512xf32>
      %135 = arith.cmpf ogt, %110, %134 : vector<1x512xf32>
      %136 = arith.andi %133, %135 : vector<1x512xi1>
      %cst_33 = arith.constant 1.000000e+00 : f32
      %137 = vector.broadcast %cst_33 : f32 to vector<1x512xf32>
      %138 = arith.cmpf olt, %110, %137 : vector<1x512xf32>
      %139 = arith.andi %136, %138 : vector<1x512xi1>
      %cst_34 = arith.constant -1.000000e+00 : f32
      %140 = vector.broadcast %cst_34 : f32 to vector<1x512xf32>
      %141 = arith.cmpf ogt, %128, %140 : vector<1x512xf32>
      %142 = arith.andi %139, %141 : vector<1x512xi1>
      %cst_35 = arith.constant 1.000000e+00 : f32
      %143 = vector.broadcast %cst_35 : f32 to vector<1x512xf32>
      %144 = arith.cmpf olt, %128, %143 : vector<1x512xf32>
      %145 = arith.andi %142, %144 : vector<1x512xi1>
      %146 = arith.extui %145 : vector<1x512xi1> to vector<1x512xi32>
      %147 = arith.sitofp %146 : vector<1x512xi32> to vector<1x512xf32>
      %c0_36 = arith.constant 0 : index
      %c0_37 = arith.constant 0 : index
      %c0_38 = arith.constant 0 : index
      %148 = vector.load %arg5[%c0_36, %c0_37, %c0_38] : memref<1x24x64xf32, #tpu.memory_space<vmem>>, vector<1x24x64xf32>
      %149 = vector.shape_cast %148 : vector<1x24x64xf32> to vector<24x64xf32>
      %cst_39 = arith.constant 1.000000e+00 : f32
      %150 = vector.broadcast %cst_39 : f32 to vector<1x512xf32>
      %151 = arith.addf %92, %150 : vector<1x512xf32>
      %cst_40 = arith.constant 4.000000e+00 : f32
      %152 = vector.broadcast %cst_40 : f32 to vector<1x512xf32>
      %153 = arith.mulf %151, %152 : vector<1x512xf32>
      %cst_41 = arith.constant 5.000000e-01 : f32
      %154 = vector.broadcast %cst_41 : f32 to vector<1x512xf32>
      %155 = arith.subf %153, %154 : vector<1x512xf32>
      %156 = tpu.iota {dimensions = array<i32: 0>} : vector<8x1xi32>
      %157 = arith.sitofp %156 : vector<8x1xi32> to vector<8x1xf32>
      %158 = vector.broadcast %155 : vector<1x512xf32> to vector<8x512xf32>
      %159 = vector.broadcast %157 : vector<8x1xf32> to vector<8x512xf32>
      %160 = arith.subf %158, %159 : vector<8x512xf32>
      %161 = math.absf %160 : vector<8x512xf32>
      %cst_42 = arith.constant 1.000000e+00 : f32
      %162 = vector.broadcast %cst_42 : f32 to vector<8x512xf32>
      %163 = arith.subf %162, %161 : vector<8x512xf32>
      %cst_43 = arith.constant 0.000000e+00 : f32
      %164 = vector.broadcast %cst_43 : f32 to vector<8x512xf32>
      %165 = arith.maximumf %163, %164 : vector<8x512xf32>
      %cst_44 = arith.constant 1.000000e+00 : f32
      %166 = vector.broadcast %cst_44 : f32 to vector<1x512xf32>
      %167 = arith.addf %110, %166 : vector<1x512xf32>
      %cst_45 = arith.constant 4.000000e+00 : f32
      %168 = vector.broadcast %cst_45 : f32 to vector<1x512xf32>
      %169 = arith.mulf %167, %168 : vector<1x512xf32>
      %cst_46 = arith.constant 5.000000e-01 : f32
      %170 = vector.broadcast %cst_46 : f32 to vector<1x512xf32>
      %171 = arith.subf %169, %170 : vector<1x512xf32>
      %172 = tpu.iota {dimensions = array<i32: 0>} : vector<8x1xi32>
      %173 = arith.sitofp %172 : vector<8x1xi32> to vector<8x1xf32>
      %174 = vector.broadcast %171 : vector<1x512xf32> to vector<8x512xf32>
      %175 = vector.broadcast %173 : vector<8x1xf32> to vector<8x512xf32>
      %176 = arith.subf %174, %175 : vector<8x512xf32>
      %177 = math.absf %176 : vector<8x512xf32>
      %cst_47 = arith.constant 1.000000e+00 : f32
      %178 = vector.broadcast %cst_47 : f32 to vector<8x512xf32>
      %179 = arith.subf %178, %177 : vector<8x512xf32>
      %cst_48 = arith.constant 0.000000e+00 : f32
      %180 = vector.broadcast %cst_48 : f32 to vector<8x512xf32>
      %181 = arith.maximumf %179, %180 : vector<8x512xf32>
      %cst_49 = arith.constant 1.000000e+00 : f32
      %182 = vector.broadcast %cst_49 : f32 to vector<1x512xf32>
      %183 = arith.addf %128, %182 : vector<1x512xf32>
      %cst_50 = arith.constant 4.000000e+00 : f32
      %184 = vector.broadcast %cst_50 : f32 to vector<1x512xf32>
      %185 = arith.mulf %183, %184 : vector<1x512xf32>
      %cst_51 = arith.constant 5.000000e-01 : f32
      %186 = vector.broadcast %cst_51 : f32 to vector<1x512xf32>
      %187 = arith.subf %185, %186 : vector<1x512xf32>
      %188 = tpu.iota {dimensions = array<i32: 0>} : vector<8x1xi32>
      %189 = arith.sitofp %188 : vector<8x1xi32> to vector<8x1xf32>
      %190 = vector.broadcast %187 : vector<1x512xf32> to vector<8x512xf32>
      %191 = vector.broadcast %189 : vector<8x1xf32> to vector<8x512xf32>
      %192 = arith.subf %190, %191 : vector<8x512xf32>
      %193 = math.absf %192 : vector<8x512xf32>
      %cst_52 = arith.constant 1.000000e+00 : f32
      %194 = vector.broadcast %cst_52 : f32 to vector<8x512xf32>
      %195 = arith.subf %194, %193 : vector<8x512xf32>
      %cst_53 = arith.constant 0.000000e+00 : f32
      %196 = vector.broadcast %cst_53 : f32 to vector<8x512xf32>
      %197 = arith.maximumf %195, %196 : vector<8x512xf32>
      %198 = vector.shape_cast %181 : vector<8x512xf32> to vector<8x1x512xf32>
      %199 = vector.shape_cast %165 : vector<8x512xf32> to vector<1x8x512xf32>
      %200 = vector.broadcast %198 : vector<8x1x512xf32> to vector<8x8x512xf32>
      %201 = vector.broadcast %199 : vector<1x8x512xf32> to vector<8x8x512xf32>
      %202 = arith.mulf %200, %201 : vector<8x8x512xf32>
      %203 = vector.shape_cast %202 : vector<8x8x512xf32> to vector<64x512xf32>
      %cst_54 = arith.constant dense<0.000000e+00> : vector<24x512xf32>
      %204 = tpu.matmul %149, %203, %cst_54 {dimension_numbers = #tpu.dot_dimension_numbers<[1], [0], [0], [1], [0, 0, 1, 1], [], []>} : vector<24x64xf32>, vector<64x512xf32>, vector<24x512xf32> -> vector<24x512xf32>
      %205 = vector.shape_cast %204 : vector<24x512xf32> to vector<3x8x512xf32>
      %206 = vector.shape_cast %197 : vector<8x512xf32> to vector<1x8x512xf32>
      %207 = vector.broadcast %206 : vector<1x8x512xf32> to vector<3x8x512xf32>
      %208 = arith.mulf %205, %207 : vector<3x8x512xf32>
      %cst_55 = arith.constant dense<0.000000e+00> : vector<3x512xf32>
      %209 = vector.multi_reduction <add>, %208, %cst_55 [1] : vector<3x8x512xf32> to vector<3x512xf32>
      %210 = vector.extract_strided_slice %209 {offsets = [0, 0], sizes = [1, 512], strides = [1, 1]} : vector<3x512xf32> to vector<1x512xf32>
      %211 = vector.extract_strided_slice %209 {offsets = [1, 0], sizes = [1, 512], strides = [1, 1]} : vector<3x512xf32> to vector<1x512xf32>
      %212 = vector.extract_strided_slice %209 {offsets = [2, 0], sizes = [1, 512], strides = [1, 1]} : vector<3x512xf32> to vector<1x512xf32>
      %c0_56 = arith.constant 0 : index
      %c0_57 = arith.constant 0 : index
      %213 = vector.load %arg9[%c0_56, %c0_57] : memref<4x512xf32, #tpu.memory_space<vmem>>, vector<1x512xf32>
      tpu.vector_store %arg9[%c0_56, %c0_57], %210 {strides = array<i32>} : memref<4x512xf32, #tpu.memory_space<vmem>>, vector<1x512xf32>,
      %c1_58 = arith.constant 1 : index
      %c0_59 = arith.constant 0 : index
      %214 = vector.load %arg9[%c1_58, %c0_59] : memref<4x512xf32, #tpu.memory_space<vmem>>, vector<1x512xf32>
      tpu.vector_store %arg9[%c1_58, %c0_59], %211 {strides = array<i32>} : memref<4x512xf32, #tpu.memory_space<vmem>>, vector<1x512xf32>,
      %c2_60 = arith.constant 2 : index
      %c0_61 = arith.constant 0 : index
      %215 = vector.load %arg9[%c2_60, %c0_61] : memref<4x512xf32, #tpu.memory_space<vmem>>, vector<1x512xf32>
      tpu.vector_store %arg9[%c2_60, %c0_61], %212 {strides = array<i32>} : memref<4x512xf32, #tpu.memory_space<vmem>>, vector<1x512xf32>,
      %c3_62 = arith.constant 3 : index
      %c0_63 = arith.constant 0 : index
      %216 = vector.load %arg9[%c3_62, %c0_63] : memref<4x512xf32, #tpu.memory_space<vmem>>, vector<1x512xf32>
      tpu.vector_store %arg9[%c3_62, %c0_63], %147 {strides = array<i32>} : memref<4x512xf32, #tpu.memory_space<vmem>>, vector<1x512xf32>,
    } else {
    }
    %c0 = arith.constant 0 : index
    %c0_1 = arith.constant 0 : index
    %3 = vector.load %arg9[%c0, %c0_1] : memref<4x512xf32, #tpu.memory_space<vmem>>, vector<1x512xf32>
    %c1 = arith.constant 1 : index
    %c0_2 = arith.constant 0 : index
    %4 = vector.load %arg9[%c1, %c0_2] : memref<4x512xf32, #tpu.memory_space<vmem>>, vector<1x512xf32>
    %cst = arith.constant 1.000000e+00 : f32
    %5 = vector.broadcast %cst : f32 to vector<1x512xf32>
    %6 = arith.addf %3, %5 : vector<1x512xf32>
    %cst_3 = arith.constant 4.000000e+00 : f32
    %7 = vector.broadcast %cst_3 : f32 to vector<1x512xf32>
    %8 = arith.mulf %6, %7 : vector<1x512xf32>
    %cst_4 = arith.constant 5.000000e-01 : f32
    %9 = vector.broadcast %cst_4 : f32 to vector<1x512xf32>
    %10 = arith.subf %8, %9 : vector<1x512xf32>
    %11 = tpu.iota {dimensions = array<i32: 0>} : vector<8x1xi32>
    %12 = arith.sitofp %11 : vector<8x1xi32> to vector<8x1xf32>
    %13 = vector.broadcast %10 : vector<1x512xf32> to vector<8x512xf32>
    %14 = vector.broadcast %12 : vector<8x1xf32> to vector<8x512xf32>
    %15 = arith.subf %13, %14 : vector<8x512xf32>
    %16 = math.absf %15 : vector<8x512xf32>
    %cst_5 = arith.constant 1.000000e+00 : f32
    %17 = vector.broadcast %cst_5 : f32 to vector<8x512xf32>
    %18 = arith.subf %17, %16 : vector<8x512xf32>
    %cst_6 = arith.constant 0.000000e+00 : f32
    %19 = vector.broadcast %cst_6 : f32 to vector<8x512xf32>
    %20 = arith.maximumf %18, %19 : vector<8x512xf32>
    %cst_7 = arith.constant 1.000000e+00 : f32
    %21 = vector.broadcast %cst_7 : f32 to vector<1x512xf32>
    %22 = arith.addf %4, %21 : vector<1x512xf32>
    %cst_8 = arith.constant 4.000000e+00 : f32
    %23 = vector.broadcast %cst_8 : f32 to vector<1x512xf32>
    %24 = arith.mulf %22, %23 : vector<1x512xf32>
    %cst_9 = arith.constant 5.000000e-01 : f32
    %25 = vector.broadcast %cst_9 : f32 to vector<1x512xf32>
    %26 = arith.subf %24, %25 : vector<1x512xf32>
    %c8_i32 = arith.constant 8 : i32
    %27 = arith.muli %arg2, %c8_i32 : i32
    %28 = arith.sitofp %27 : i32 to f32
    %29 = tpu.iota {dimensions = array<i32: 0>} : vector<8x1xi32>
    %30 = arith.sitofp %29 : vector<8x1xi32> to vector<8x1xf32>
    %31 = vector.broadcast %28 : f32 to vector<8x1xf32>
    %32 = arith.addf %30, %31 : vector<8x1xf32>
    %33 = vector.broadcast %26 : vector<1x512xf32> to vector<8x512xf32>
    %34 = vector.broadcast %32 : vector<8x1xf32> to vector<8x512xf32>
    %35 = arith.subf %33, %34 : vector<8x512xf32>
    %36 = math.absf %35 : vector<8x512xf32>
    %cst_10 = arith.constant 1.000000e+00 : f32
    %37 = vector.broadcast %cst_10 : f32 to vector<8x512xf32>
    %38 = arith.subf %37, %36 : vector<8x512xf32>
    %cst_11 = arith.constant 0.000000e+00 : f32
    %39 = vector.broadcast %cst_11 : f32 to vector<8x512xf32>
    %40 = arith.maximumf %38, %39 : vector<8x512xf32>
    %41 = vector.shape_cast %40 : vector<8x512xf32> to vector<8x1x512xf32>
    %42 = vector.shape_cast %20 : vector<8x512xf32> to vector<1x8x512xf32>
    %43 = vector.broadcast %41 : vector<8x1x512xf32> to vector<8x8x512xf32>
    %44 = vector.broadcast %42 : vector<1x8x512xf32> to vector<8x8x512xf32>
    %45 = arith.mulf %43, %44 : vector<8x8x512xf32>
    %46 = vector.shape_cast %45 : vector<8x8x512xf32> to vector<64x512xf32>
    %c0_12 = arith.constant 0 : index
    %c0_13 = arith.constant 0 : index
    %47 = vector.load %arg8[%c0_12, %c0_13] : memref<32x512xf32, #tpu.memory_space<vmem>>, vector<32x512xf32>
    %c0_14 = arith.constant 0 : index
    %c0_15 = arith.constant 0 : index
    %c0_16 = arith.constant 0 : index
    %48 = vector.load %arg6[%c0_14, %c0_15, %c0_16] : memref<1x32x64xf32, #tpu.memory_space<vmem>>, vector<1x32x64xf32>
    %49 = vector.shape_cast %48 : vector<1x32x64xf32> to vector<32x64xf32>
    %cst_17 = arith.constant dense<0.000000e+00> : vector<32x512xf32>
    %50 = tpu.matmul %49, %46, %cst_17 {dimension_numbers = #tpu.dot_dimension_numbers<[1], [0], [0], [1], [0, 0, 1, 1], [], []>} : vector<32x64xf32>, vector<64x512xf32>, vector<32x512xf32> -> vector<32x512xf32>
    %51 = arith.addf %47, %50 : vector<32x512xf32>
    %c0_18 = arith.constant 0 : index
    %c0_19 = arith.constant 0 : index
    %52 = vector.load %arg8[%c0_18, %c0_19] : memref<32x512xf32, #tpu.memory_space<vmem>>, vector<32x512xf32>
    tpu.vector_store %arg8[%c0_18, %c0_19], %51 {strides = array<i32>} : memref<32x512xf32, #tpu.memory_space<vmem>>, vector<32x512xf32>,
    %c0_i32_20 = arith.constant 0 : i32
    %53 = arith.cmpi eq, %arg2, %c0_i32_20 : i32
    %54 = arith.extui %53 : i1 to i32
    %c0_i32_21 = arith.constant 0 : i32
    %55 = arith.cmpi ne, %54, %c0_i32_21 : i32
    scf.if %55 {
      %c2 = arith.constant 2 : index
      %c0_22 = arith.constant 0 : index
      %56 = vector.load %arg9[%c2, %c0_22] : memref<4x512xf32, #tpu.memory_space<vmem>>, vector<1x512xf32>
      %cst_23 = arith.constant 1.000000e+00 : f32
      %57 = vector.broadcast %cst_23 : f32 to vector<1x512xf32>
      %58 = arith.addf %56, %57 : vector<1x512xf32>
      %cst_24 = arith.constant 4.000000e+00 : f32
      %59 = vector.broadcast %cst_24 : f32 to vector<1x512xf32>
      %60 = arith.mulf %58, %59 : vector<1x512xf32>
      %cst_25 = arith.constant 5.000000e-01 : f32
      %61 = vector.broadcast %cst_25 : f32 to vector<1x512xf32>
      %62 = arith.subf %60, %61 : vector<1x512xf32>
      %63 = tpu.iota {dimensions = array<i32: 0>} : vector<8x1xi32>
      %64 = arith.sitofp %63 : vector<8x1xi32> to vector<8x1xf32>
      %65 = vector.broadcast %62 : vector<1x512xf32> to vector<8x512xf32>
      %66 = vector.broadcast %64 : vector<8x1xf32> to vector<8x512xf32>
      %67 = arith.subf %65, %66 : vector<8x512xf32>
      %68 = math.absf %67 : vector<8x512xf32>
      %cst_26 = arith.constant 1.000000e+00 : f32
      %69 = vector.broadcast %cst_26 : f32 to vector<8x512xf32>
      %70 = arith.subf %69, %68 : vector<8x512xf32>
      %cst_27 = arith.constant 0.000000e+00 : f32
      %71 = vector.broadcast %cst_27 : f32 to vector<8x512xf32>
      %72 = arith.maximumf %70, %71 : vector<8x512xf32>
      %c0_28 = arith.constant 0 : index
      %c0_29 = arith.constant 0 : index
      %73 = vector.load %arg8[%c0_28, %c0_29] : memref<32x512xf32, #tpu.memory_space<vmem>>, vector<32x512xf32>
      %74 = vector.shape_cast %73 : vector<32x512xf32> to vector<4x8x512xf32>
      %75 = vector.shape_cast %72 : vector<8x512xf32> to vector<1x8x512xf32>
      %76 = vector.broadcast %75 : vector<1x8x512xf32> to vector<4x8x512xf32>
      %77 = arith.mulf %74, %76 : vector<4x8x512xf32>
      %cst_30 = arith.constant dense<0.000000e+00> : vector<4x512xf32>
      %78 = vector.multi_reduction <add>, %77, %cst_30 [1] : vector<4x8x512xf32> to vector<4x512xf32>
      %c3 = arith.constant 3 : index
      %c0_31 = arith.constant 0 : index
      %79 = vector.load %arg9[%c3, %c0_31] : memref<4x512xf32, #tpu.memory_space<vmem>>, vector<1x512xf32>
      %80 = vector.broadcast %79 : vector<1x512xf32> to vector<4x512xf32>
      %81 = arith.mulf %78, %80 : vector<4x512xf32>
      %c0_32 = arith.constant 0 : index
      %c0_33 = arith.constant 0 : index
      %c0_34 = arith.constant 0 : index
      %82 = vector.load %arg7[%c0_32, %c0_33, %c0_34] : memref<1x4x512xf32, #tpu.memory_space<vmem>>, vector<1x4x512xf32>
      %83 = vector.shape_cast %82 : vector<1x4x512xf32> to vector<4x512xf32>
      %84 = vector.shape_cast %81 : vector<4x512xf32> to vector<1x4x512xf32>
      tpu.vector_store %arg7[%c0_32, %c0_33, %c0_34], %84 {strides = array<i32>} : memref<1x4x512xf32, #tpu.memory_space<vmem>>, vector<1x4x512xf32>,
    } else {
    }
    return
  }
  func.func @transform_0(%arg0: i32, %arg1: i32, %arg2: i32) -> (i32, i32) {
    %c0_i32 = arith.constant 0 : i32
    %c0_i32_0 = arith.constant 0 : i32
    %c0_i32_1 = arith.constant 0 : i32
    return %c0_i32, %c0_i32_0 : i32, i32
  }
  func.func @transform_1(%arg0: i32, %arg1: i32, %arg2: i32) -> (i32, i32, i32) {
    %c0_i32 = arith.constant 0 : i32
    %c0_i32_0 = arith.constant 0 : i32
    return %arg0, %c0_i32, %arg1 : i32, i32, i32
  }
  func.func @transform_2(%arg0: i32, %arg1: i32, %arg2: i32) -> (i32, i32, i32) {
    %c0_i32 = arith.constant 0 : i32
    %c0_i32_0 = arith.constant 0 : i32
    %c0_i32_1 = arith.constant 0 : i32
    return %arg0, %c0_i32, %c0_i32_0 : i32, i32, i32
  }
  func.func @transform_3(%arg0: i32, %arg1: i32, %arg2: i32) -> (i32, i32, i32) {
    %c0_i32 = arith.constant 0 : i32
    %c0_i32_0 = arith.constant 0 : i32
    return %arg0, %c0_i32, %arg2 : i32, i32, i32
  }
  func.func @transform_4(%arg0: i32, %arg1: i32, %arg2: i32) -> (i32, i32, i32) {
    %c0_i32 = arith.constant 0 : i32
    %c0_i32_0 = arith.constant 0 : i32
    return %arg0, %c0_i32, %arg1 : i32, i32, i32
  }
}

</mosaic_0001>

<bundles_post_ra>
// kernel: tpu_custom_call.1
= control target key start
LH: loop header
LB: loop body
LE: loop exit
PB: predicated region body
PF: predicated region fallthrough
CT: control target
= control target key end

     0   :  { %s3301_s0 = inlined_call_operand.vmem [shape: f32[2,15], index: 0, kind: input, shape index: {}]   ;;  %s3302_s1 = inlined_call_operand.vmem [shape: f32[2,3,512], index: 1, kind: input, shape index: {}]   ;;  %s3303_s2 = inlined_call_operand.vmem [shape: f32[2,24,64], index: 2, kind: input, shape index: {}]   ;;  %s3304_s3 = inlined_call_operand.hbm [shape: f32[2,32,64], index: 3, kind: input, shape index: {}]   ;;  %s3305_s4 = inlined_call_operand.hbm [shape: f32[2,4,512], index: 4, kind: output, shape index: {}]  }
   0x1   :  { %3312 = sst [smem:[#allocation13_spill]] %s3301_s0 }
   0x2   :  { %9 = vsyncpa [#allocation7], 0 }
   0x3   :  { %10 = vsyncpa [#allocation5], 0 }
   0x4   :  { %11 = vsyncpa [#allocation6], 0 }
   0x5   :  { %13 = vsyncpa [#allocation6 + $0x1], 0  ;;  %s2607_s15 = smov 0   ;;  %s2609_s16 = smov 0  }
   0x6   :  { %s2611_s17 = smov 0   ;;  %s2613_s18 = smov 0  }
   0x7   :  { %s2615_s19 = smov 0   ;;  %s2617_s20 = smov 0  }
   0x8 LB: > { %s2310_s21 = sadd.s32 4294967295, %s2573_s20   ;;  %s2311_s22 = sadd.s32 4294967294, %s2573_s20   ;;  %s2573_s20 = sphi %s2617_s20, %s19_s20   ;;  %s2569_s19 = sphi %s2615_s19, %s3338_s19   ;;  %s2565_s18 = sphi %s2613_s18, %s3337_s18   ;;  %s2561_s17 = sphi %s2611_s17, %s3336_s17   ;;  %s2557_s16 = sphi %s2609_s16, %s3335_s16   ;;  %s2553_s15 = sphi %s2607_s15, %s3334_s15  }
   0x9   : > { %s38_s23 = sadd.s32 1, %s2569_s19  ;;  %s122_s24 = sadd.s32 1, %s2561_s17 }
   0xa   : > { %p40_p0 = scmp.ge.s32.totalorder %s38_s23, 2  ;;  %p135_p1 = scmp.ne.s32.totalorder %s2557_s16, %s2553_s15 }
   0xb   : > { %p2643_p2 = scmp.eq.s32.totalorder %s2310_s21, 0  ;;  %p160_p3 = scmp.ne.s32.totalorder %s2561_s17, %s2557_s16 }
   0xc   : > { %s3340_s23 = smov (%p40_p0, %s38_s23), 0  ;;  %p161_p5 = scmp.eq.s32.totalorder %s2310_s21, 1 }
   0xd   : > { %s3313_s25 = scalar_select %p2643_p2, 1, 0 }
   0xe   : > { %p2653_p4 = por %p2643_p2, %p135_p1  ;;  %s117_s27 = ssub.s32 %s2569_s19, %s3340_s23 }
   0xf   : > { %p167_p6 = scmp.eq.s32.totalorder %s2311_s22, 1  ;;  %p120_p7 = scmp.eq.s32.totalorder %s117_s27, 0 }
  0x10   : > { %s3314_s26 = scalar_select %p2653_p4, 1, 0 }
  0x11   : > { %p2659_p8 = por %p161_p5, %p160_p3  ;;  %p2663_p9 = por %p167_p6, %p135_p1 }
  0x12   : > { %p2312_p10 = scmp.ge.s32.totalorder %s2573_s20, 1  ;;  %p174_p11 = scmp.lt.s32.totalorder %s2573_s20, 3 }
  0x13   : > { %s3315_s28 = scalar_select %p2659_p8, 1, 0 }
  0x14   : > { %s3316_s29 = scalar_select %p2663_p9, 1, 0 }
  0x15   : > { %s2669_s30 = scalar_select %p120_p7, %s2561_s17, %s122_s24  }
  0x16   : > { %s3317_s0 = sld [smem:[#allocation13_spill]]  ;;  %p2675_p12 = pnand %p2312_p10, %p174_p11 }
  0x17   : > { %s2366_s9 = sshll.u32 %s2565_s18, 9  ;;  %s2575_s10 = smov [#allocation8]  }
  0x18   : > { %s3318_s8 = scalar_select %p2675_p12, 1, 0 }
  0x19   : > { %p2378_p13 = pneg %p2675_p12  ;;  %s209_s11 = sshll.u32 %s2575_s10, 4  ;;  %s2699_s11 = int_to_ptr.vmem [resolvable:$true] %s209_s11 }
  0x1a   : > { %s2697_s22 = scalar_lea.hbm %s3304_s3, %s2366_s9 }
  0x1b   : > { %p2684_p0 = pnand %p2378_p13, %p2643_p2  ;;  %p2690_p1 = pnand %p2378_p13, %p2653_p4 }
  0x1c   : > { %s187_s7 = sshll.u32 %s3317_s0, 4  ;;  %s188_s7 = int_to_ptr.vmem [resolvable:$true] %s187_s7 }
  0x1d   : > { %s2446_s24 = scalar_lea.vmem %s188_s7, 32  ;;  %p2448_p5 = pneg %p2684_p0 }
  0x1e   : > { %p2447_p3 = scmp.ne.s32.totalorder %s188_s7, %s2446_s24  ;;  %p2454_p10 = scmp.lt.s32.totalorder %s188_s7, %s188_s7 }
  0x1f   : > { %p2455_p11 = scmp.lt.s32.totalorder %s2446_s24, %s2446_s24 }
  0x20   : > { %p2449_p6 = pnand %p2448_p5, %p2447_p3 }
  0x21   : > { %p2456_p9 = por %p2455_p11, %p2454_p10 }
  0x22   : > { %p2450_p7 = pneg %p2449_p6 }
  0x24   : > { %p2457_p13 = pnand %p2456_p9, %p2450_p7 }
  0x26   : > { %2460 = shalt.err (!%p2457_p13)
}
  0x27   : > { %s2576_s27 = smov [#allocation4]   ;;  %s2461_s5 = scalar_lea.hbm %s2697_s22, 512 }
  0x28   : > { %2381 = dma.vmem_to_smem (!%p2684_p0), %s188_s7, 32, %s2576_s27, [#allocation7]  }
  0x29   : > { %p2462_p8 = scmp.ne.s32.totalorder %s2697_s22, %s2461_s5  ;;  %p2463_p4 = pneg %p2690_p1 }
  0x2a   : > { %s2466_s10 = scalar_lea.hbm %s3304_s3, 1024  ;;  %p2467_p9 = scmp.lt.s32.totalorder %s2697_s22, %s3304_s3 }
  0x2b   : > { %p2464_p2 = pnand %p2463_p4, %p2462_p8  ;;  %p2468_p5 = scmp.lt.s32.totalorder %s2466_s10, %s2461_s5 }
  0x2d   : > { %p2465_p3 = pneg %p2464_p2  ;;  %p2469_p6 = por %p2468_p5, %p2467_p9 }
  0x2f   : > { %p2470_p7 = pnand %p2469_p6, %p2465_p3 }
  0x31   : > { %2473 = shalt.err (!%p2470_p7)
}
  0x32   : > { %s2474_s7 = scalar_lea.vmem %s2699_s11, 512  ;;  %p2482_p2 = scmp.lt.s32.totalorder %s2699_s11, %s2699_s11 }
  0x33   : > { %p2475_p0 = scmp.ne.s32.totalorder %s2699_s11, %s2474_s7  ;;  %p2483_p11 = scmp.lt.s32.totalorder %s2474_s7, %s2474_s7 }
  0x35   : > { %p2477_p10 = pnand %p2475_p0, %p2463_p4  ;;  %p2484_p13 = por %p2483_p11, %p2482_p2 }
  0x37   : > { %p2478_p8 = pneg %p2477_p10 }
  0x39   : > { %p2485_p12 = pnand %p2484_p13, %p2478_p8 }
  0x3b   : > { %2488 = shalt.err (!%p2485_p12)
}
  0x3c   : > { %s2577_s12 = smov 128   ;;  %s2578_s24 = smov 8  }
  0x3d   : > { %2384 = dma.hbm_to_vmem [thread:$0]  (!%p2690_p1), %s2697_s22, 512, %s2699_s11, [#allocation5], %s2577_s12, %s2577_s12, %s2578_s24  }
  0x3e   : > { %p3321_p3 = scmp.ne.s32.totalorder %s3318_s8, 0 }
  0x3f   : > { %p3322_p9 = scmp.ne.s32.totalorder (!%p3321_p3), %s3313_s25, 0 }
  0x40   : > { %238 = sbr.rel (%p3321_p3) target bundleno = 685 (0x2ad), region = 36 }
  0x45   : > { %2540 = dma.done.wait (%p3322_p9), [#allocation7], 32  }
  0x46   : > { %2542 = vsyncadd (%p3322_p9), [#allocation7], 4294967264  ;;  %p3323_p4 = scmp.ne.s32.totalorder %s3314_s26, 0 }
  0x48   : > { %2544 = dma.done.wait (%p3323_p4), [#allocation5], 512  }
  0x49   : > { %2546 = vsyncadd (%p3323_p4), [#allocation5], 4294966784 }
  0x4a   : > { %248 = sfence }
  0x4b   : > { %p279_p12 = scmp.lt.s32.totalorder %s2565_s18, 1  ;;  %s2736_s11 = sshll.u32 %s2565_s18, 7  ;;  %v2579_v0 = vmov 0.0   ;;  %v486_v1 = vlaneseq }
  0x4c   : > { %s2739_s25 = sld [smem:[#allocation4 + %s2736_s11]]  ;;  %s321_s8 = sadd.s32 1, %s2736_s11  ;;  %1001 = vmatprep.mubr.f32.mxu0 %v2579_v0  ;;  %1084 = vmatprep.mubr.f32.mxu1 %v2579_v0 }
  0x4d   : > { %s2745_s26 = scalar_select %p279_p12, %s2565_s18, 1  ;;  %v2776_v7 = vshrl.u32 %v486_v1, 7 }
  0x4e   : > { %s322_s13 = sld [smem:[#allocation4 + %s321_s8]]  ;;  %s326_s22 = sadd.s32 2, %s2736_s11 }
  0x4f   : > { %s2367_s27 = sshll.u32 %s2745_s26, 4  ;;  %s2749_s5 = sld [smem:[#allocation4 + %s326_s22]]  ;;  %v2797_v21 = vsub.s32 0, %v2776_v7 }
  0x50   : > { %s286_s10 = scalar_lea.vmem %s3302_s1, %s2367_s27  ;;  %s331_s14 = sadd.s32 6, %s2736_s11 }
  0x51   : > { %s2755_s21 = sld [smem:[#allocation4 + %s331_s14]]  ;;  %s336_s7 = sadd.s32 7, %s2736_s11  ;;  %v314_v2 = vld [vmem:[%s286_s10] sm:$0x77]  ;;  %v315_v3 = vld [vmem:[%s286_s10 + $0x8] sm:$0x77] }
  0x52   : > { %s2758_s12 = sld [smem:[#allocation4 + %s336_s7]]  ;;  %s351_s24 = sadd.s32 8, %s2736_s11  ;;  %v318_v4 = vstv %s2739_s25 }
  0x53   : > { %s2761_s8 = sld [smem:[#allocation4 + %s351_s24]]  ;;  %s366_s0 = sadd.s32 3, %s2736_s11  ;;  %v319_v8 = vsub.f32 %v314_v2, %v318_v4  ;;  %v320_v12 = vsub.f32 %v315_v3, %v318_v4 }
  0x54   : > { %v323_v5 = vstv %s322_s13  ;;  %s2765_s22 = sld [smem:[#allocation4 + %s366_s0]]  ;;  %s371_s27 = sadd.s32 9, %s2736_s11 }
  0x55   : > { %v328_v6 = vstv %s2749_s5  ;;  %s2769_s6 = sld [smem:[#allocation4 + %s371_s27]]  ;;  %s376_s9 = sadd.s32 10, %s2736_s11  ;;  %v324_v9 = vsub.f32 %v314_v2, %v323_v5  ;;  %v2778_v10 = vsub.f32 %v315_v3, %v323_v5 }
  0x56   : > { %s2772_s14 = sld [smem:[#allocation4 + %s376_s9]]  ;;  %s391_s7 = sadd.s32 11, %s2736_s11  ;;  %v329_v13 = vsub.f32 %v314_v2, %v328_v6  ;;  %v330_v19 = vsub.f32 %v315_v3, %v328_v6 }
  0x57   : > { %v333_v11 = vstv %s2755_s21  ;;  %s2781_s0 = sld [smem:[#allocation4 + %s391_s7]]  ;;  %s406_s25 = sadd.s32 4, %s2736_s11 }
  0x58   : > { %v338_v14 = vstv %s2758_s12  ;;  %s2785_s13 = sld [smem:[#allocation4 + %s406_s25]]  ;;  %s411_s5 = sadd.s32 12, %s2736_s11  ;;  %v334_v15 = vmul.f32 %v333_v11, %v319_v8  ;;  %v335_v22 = vmul.f32 %v333_v11, %v320_v12 }
  0x59   : > { %v339_v16 = vmul.f32 %v338_v14, %v324_v9  ;;  %v353_v17 = vstv %s2761_s8  ;;  %s2789_s10 = sld [smem:[#allocation4 + %s411_s5]]  ;;  %s416_s24 = sadd.s32 13, %s2736_s11  ;;  %v340_v18 = vmul.f32 %v338_v14, %v2778_v10 }
  0x5a   : > { %v354_v20 = vmul.f32 %v353_v17, %v329_v13  ;;  %s2793_s21 = sld [smem:[#allocation4 + %s416_s24]]  ;;  %s431_s12 = sadd.s32 14, %s2736_s11  ;;  %v368_v24 = vstv %s2765_s22  ;;  %v355_v38 = vmul.f32 %v353_v17, %v330_v19 }
  0x5b   : > { %v2324_v23 = vrot.slane %v339_v16, 9  ;;  %v373_v25 = vstv %s2769_s6  ;;  %s2801_s8 = sld [smem:[#allocation4 + %s431_s12]]  ;;  %s446_s27 = sadd.s32 5, %s2736_s11  ;;  %v2325_v26 = vrot.slane %v340_v18, 9 }
  0x5c   : > { %v2326_v27 = vrot.slane %v354_v20, 10  ;;  %v374_v28 = vmul.f32 %v373_v25, %v319_v8  ;;  %v375_v29 = vmul.f32 %v373_v25, %v320_v12  ;;  %v378_v30 = vstv %s2772_s14  ;;  %s2807_s22 = sld [smem:[#allocation4 + %s446_s27]]  ;;  %s2369_s11 = smul.u32 24, %s2745_s26 }
  0x5d   : > { %v349_v31 = vadd.f32 %v2324_v23, %v334_v15  ;;  %v379_v32 = vmul.f32 %v378_v30, %v324_v9  ;;  %v380_v33 = vmul.f32 %v378_v30, %v2778_v10  ;;  %v393_v34 = vstv %s2781_s0  ;;  %s275_s14 = sand.u32 1, %s2557_s16   ;;  %s2368_s0 = sshll.u32 %s2565_s18, 8 }
  0x5e   : > { %v394_v35 = vmul.f32 %v393_v34, %v329_v13  ;;  %v395_v36 = vmul.f32 %v393_v34, %v330_v19  ;;  %v350_v37 = vadd.f32 %v2325_v26, %v335_v22  ;;  %v408_v51 = vstv %s2785_s13  ;;  %s292_s9 = scalar_lea.vmem %s3303_s2, %s2369_s11  ;;  %s2319_s7 = sshll.u32 %s275_s14, 4 }
  0x5f   : > { %v364_v39 = vadd.f32 %v2326_v27, %v349_v31  ;;  %v2328_v40 = vrot.slane %v379_v32, 9  ;;  %v2329_v41 = vrot.slane %v380_v33, 9  ;;  %v413_v42 = vstv %s2789_s10  ;;  %s277_s25 = scalar_lea.vmem [#allocation9], %s2319_s7  ;;  %s3253_s24 = scalar_lea.hbm %s3305_s4, %s2368_s0 }
  0x60   : > { %v2330_v43 = vrot.slane %v394_v35, 10  ;;  %v2331_v44 = vrot.slane %v395_v36, 10  ;;  %v414_v45 = vmul.f32 %v413_v42, %v319_v8  ;;  %v418_v46 = vstv %s2793_s21  ;;  %s2188_s13 = sshll.u32 %s277_s25, 4  ;;  %s2172_s18 = scalar_lea.sflag [#allocation6], %s275_s14  ;;  %s3255_s13 = int_to_ptr.vmem [resolvable:$true] %s2188_s13 }
  0x61   : > { %v369_v47 = vmul.f32 %v368_v24, %v364_v39  ;;  %v389_v48 = vadd.f32 %v2328_v40, %v374_v28  ;;  %v390_v49 = vadd.f32 %v2329_v41, %v375_v29  ;;  %v419_v50 = vmul.f32 %v418_v46, %v324_v9  ;;  %s2489_s21 = scalar_lea.vmem %s3255_s13, 256  ;;  %p3332_p5 = scmp.ne.s32.totalorder %s3315_s28, 0 }
  0x62   : > { %v433_v52 = vstv %s2801_s8  ;;  %v2327_v53 = vrot.slane %v355_v38, 10  ;;  %v415_v54 = vmul.f32 %v413_v42, %v320_v12  ;;  %v448_v3 = vstv %s2807_s22  ;;  %p2490_p1 = scmp.ne.s32.totalorder %s3255_s13, %s2489_s21  ;;  %s2581_s12 = smov [#allocation9]  }
  0x63   : > { %v404_v55 = vadd.f32 %v2330_v43, %v389_v48  ;;  %v405_v56 = vadd.f32 %v2331_v44, %v390_v49  ;;  %v2332_v57 = vrot.slane %v419_v50, 9  ;;  %v434_v58 = vmul.f32 %v433_v52, %v329_v13  ;;  %s2493_s8 = sshll.u32 %s2581_s12, 4  ;;  %s2494_s8 = int_to_ptr.vmem [resolvable:$false] %s2493_s8 }
  0x64   : > { %vm451_vm0 = vcmp.gt.f32.partialorder %v369_v47, -1.0  ;;  %vm453_vm1 = vcmp.lt.f32.partialorder %v369_v47, 1.0  ;;  %v480_v59 = vadd.f32 1.0, %v369_v47  ;;  %v365_v60 = vadd.f32 %v2327_v53, %v350_v37  ;;  %p2491_p6 = pnand %p2490_p1, %p3332_p5  ;;  %s2495_s27 = scalar_lea.vmem %s2494_s8, 512 }
  0x65   : > { %v409_v61 = vmul.f32 %v408_v51, %v404_v55  ;;  %v410_v62 = vmul.f32 %v408_v51, %v405_v56  ;;  %v429_v63 = vadd.f32 %v2332_v57, %v414_v45  ;;  %v2334_v2 = vrot.slane %v434_v58, 10  ;;  %vm455_vm2 = vmand %vm451_vm0, %vm453_vm1  ;;  %p2496_p0 = scmp.lt.s32.totalorder %s3255_s13, %s2494_s8  ;;  %p2497_p10 = scmp.lt.s32.totalorder %s2495_s27, %s2489_s21 }
  0x66   : > { %v482_v4 = vmul.f32 4.0, %v480_v59  ;;  %v420_v5 = vmul.f32 %v418_v46, %v2778_v10  ;;  %v435_v6 = vmul.f32 %v433_v52, %v330_v19  ;;  %v370_v9 = vmul.f32 %v368_v24, %v365_v60  ;;  %p2492_p7 = pneg %p2491_p6 }
  0x67   : > { %v444_v8 = vadd.f32 %v2334_v2, %v429_v63  ;;  %vm457_vm3 = vcmp.gt.f32.partialorder %v409_v61, -1.0  ;;  %vm461_vm4 = vcmp.lt.f32.partialorder %v409_v61, 1.0  ;;  %v2816_v12 = vsub.s32 4, %v2776_v7  ;;  %p2498_p8 = por %p2497_p10, %p2496_p0 }
  0x68   : > { %vm459_vm5 = vmand %vm455_vm2, %vm457_vm3  ;;  %v2338_v11 = vadd.f32 -0.5, %v482_v4  ;;  %v543_v13 = vadd.f32 1.0, %v409_v61  ;;  %v544_v14 = vadd.f32 1.0, %v410_v62  ;;  %v2333_v16 = vrot.slane %v420_v5, 9 }
  0x69   : > { %v2818_v15 = vmul.f32 %v448_v3, %v444_v8  ;;  %vm463_vm6 = vmand %vm459_vm5, %vm461_vm4  ;;  %v2335_v17 = vrot.slane %v435_v6, 10  ;;  %vm452_vm7 = vcmp.gt.f32.partialorder %v370_v9, -1.0  ;;  %vm458_vm8 = vcmp.gt.f32.partialorder %v410_v62, -1.0  ;;  %p2499_p2 = pnand %p2498_p8, %p2492_p7 }
  0x6a   : > { %v545_v10 = vmul.f32 4.0, %v543_v13  ;;  %v546_v18 = vmul.f32 4.0, %v544_v14  ;;  %vm454_vm9 = vcmp.lt.f32.partialorder %v370_v9, 1.0  ;;  %v430_v19 = vadd.f32 %v2333_v16, %v415_v54 }
  0x6b   : > { %vm465_vm10 = vcmp.gt.f32.partialorder %v2818_v15, -1.0  ;;  %vm469_vm11 = vcmp.lt.f32.partialorder %v2818_v15, 1.0  ;;  %vm2822_vm12 = vmand %vm452_vm7, %vm454_vm9  ;;  %v481_v22 = vadd.f32 1.0, %v370_v9  ;;  %vm462_vm13 = vcmp.lt.f32.partialorder %v410_v62, 1.0 }
  0x6c   : > { %vm467_vm14 = vmand %vm463_vm6, %vm465_vm10  ;;  %v498_v23 = vrot.slane %v2338_v11, %v2816_v12  ;;  %v2340_v24 = vadd.f32 -0.5, %v545_v10  ;;  %v2341_v25 = vadd.f32 -0.5, %v546_v18  ;;  %v445_v27 = vadd.f32 %v2335_v17, %v430_v19 }
  0x6d   : > { %vm2827_vm15 = vmand %vm467_vm14, %vm469_vm11  ;;  %v483_v28 = vmul.f32 4.0, %v481_v22  ;;  %v2832_v29 = vcvt.s32.f32 %v2776_v7  ;;  %v2580_v32 = vmov 1966171168   ;;  %v494_v37 = vrot.slane %v2338_v11, %v2797_v21 }
  0x6e   : > { %v554_v30 = vrot.slane %v2340_v24, %v2797_v21  ;;  %v558_v31 = vrot.slane %v2340_v24, %v2816_v12  ;;  %v672_v33 = vunpack.c.l.s4 %v2580_v32  ;;  %vm460_vm0 = vmand %vm2822_vm12, %vm458_vm8  ;;  %v562_v34 = vrot.slane %v2341_v25, %v2797_v21 }
  0x6f   : > { %v566_v35 = vrot.slane %v2341_v25, %v2816_v12  ;;  %v2841_v36 = vmul.f32 %v448_v3, %v445_v27  ;;  %vm464_vm1 = vmand %vm460_vm0, %vm462_vm13  ;;  %v518_v38 = vrot.slane %v498_v23, %v2797_v21  ;;  %v2339_v41 = vadd.f32 -0.5, %v483_v28 }
  0x70   : > { %v574_v39 = vrot.slane %v554_v30, %v2797_v21  ;;  %v578_v40 = vrot.slane %v558_v31, %v2797_v21  ;;  %v582_v42 = vrot.slane %v562_v34, %v2797_v21  ;;  %v514_v50 = vrot.slane %v494_v37, %v2797_v21 }
  0x71   : > { %v586_v43 = vrot.slane %v566_v35, %v2797_v21  ;;  %vm466_vm2 = vcmp.gt.f32.partialorder %v2841_v36, -1.0  ;;  %vm470_vm3 = vcmp.lt.f32.partialorder %v2841_v36, 1.0  ;;  %v506_v46 = vrot.slane %v2339_v41, %v2816_v12 }
  0x72   : > { %v587_v44 = vsub.f32 %v574_v39, %v2832_v29  ;;  %v588_v45 = vsub.f32 %v578_v40, %v2832_v29  ;;  %vm468_vm4 = vmand %vm464_vm1, %vm466_vm2  ;;  %v589_v47 = vsub.f32 %v582_v42, %v2832_v29  ;;  %v502_v51 = vrot.slane %v2339_v41, %v2797_v21 }
  0x73   : > { %v590_v48 = vsub.f32 %v586_v43, %v2832_v29  ;;  %vm2857_vm5 = vmand %vm468_vm4, %vm470_vm3  ;;  %v673_v54 = vunpack.c.0.s8 %v672_v33  ;;  %v528_v55 = vsub.f32 %v518_v38, %v2832_v29  ;;  %v526_v58 = vrot.slane %v506_v46, %v2797_v21 }
  0x74   : > { %v591_v52 = vand.u32 2147483647, %v587_v44  ;;  %v592_v53 = vand.u32 2147483647, %v588_v45  ;;  %v593_v56 = vand.u32 2147483647, %v589_v47  ;;  %v527_v61 = vsub.f32 %v514_v50, %v2832_v29 }
  0x75   : > { %v594_v57 = vand.u32 2147483647, %v590_v48  ;;  %v522_v62 = vrot.slane %v502_v51, %v2797_v21  ;;  %v530_v3 = vsub.f32 %v526_v58, %v2832_v29  ;;  %v2869_v6 = vsub.s32 %v673_v54, %v2776_v7 }
  0x76   : > { %v595_v59 = vsub.f32 1.0, %v591_v52  ;;  %v596_v60 = vsub.f32 1.0, %v592_v53  ;;  %v597_v63 = vsub.f32 1.0, %v593_v56  ;;  %v532_v9 = vand.u32 2147483647, %v528_v55 }
  0x77   : > { %v598_v2 = vsub.f32 1.0, %v594_v57  ;;  %v529_v8 = vsub.f32 %v522_v62, %v2832_v29  ;;  %v531_v14 = vand.u32 2147483647, %v527_v61  ;;  %v534_v17 = vand.u32 2147483647, %v530_v3 }
  0x78   : > { %v599_v4 = vmax.f32 %v595_v59, 0.0  ;;  %v600_v5 = vmax.f32 %v596_v60, 0.0  ;;  %v601_v11 = vmax.f32 %v597_v63, 0.0  ;;  %v536_v24 = vsub.f32 1.0, %v532_v9 }
  0x79   : > { %v602_v13 = vmax.f32 %v598_v2, 0.0  ;;  %v533_v10 = vand.u32 2147483647, %v529_v8  ;;  %v535_v27 = vsub.f32 1.0, %v531_v14  ;;  %v538_v30 = vsub.f32 1.0, %v534_v17 }
  0x7a   : > { %v668_v16 = vcombine.high %v599_v4, %v600_v5  ;;  %v667_v18 = vcombine.low %v599_v4, %v600_v5  ;;  %v2877_v37 = vsub.s32 1, %v2776_v7  ;;  %v2880_v38 = vsub.s32 2, %v2776_v7 }
  0x7b   : > { %v670_v19 = vcombine.high %v601_v11, %v602_v13  ;;  %v669_v20 = vcombine.low %v601_v11, %v602_v13  ;;  %v537_v31 = vsub.f32 1.0, %v533_v10  ;;  %v2883_v39 = vsub.s32 3, %v2776_v7 }
  0x7c   : > { %v684_v22 = vrot.slane %v668_v16, %v2869_v6  ;;  %v677_v23 = vrot.slane %v667_v18, %v2869_v6  ;;  %v2885_v40 = vmax.f32 %v536_v24, 0.0  ;;  %v2888_v42 = vmax.f32 %v535_v27, 0.0 }
  0x7d   : > { %v698_v25 = vrot.slane %v670_v19, %v2869_v6  ;;  %v691_v28 = vrot.slane %v669_v20, %v2869_v6  ;;  %v2891_v44 = vmax.f32 %v538_v30, 0.0  ;;  %v2893_v45 = vmax.f32 %v537_v31, 0.0 }
  0x7e   : > { %vm927_vm6 = vcmask 523264   ;;  %vm3021_vm7 = vcmp.lt.s32.totalorder %v486_v1, 512  ;;  %vm2144_vm8 = vcmask 1041409   ;;  %vm2146_vm9 = vcmask 1045509  }
  0x7f   : > { %v702_v32 = vcombine.high %v684_v22, %v698_v25  ;;  %v701_v33 = vcombine.low %v684_v22, %v698_v25  ;;  %v700_v34 = vcombine.high %v677_v23, %v691_v28  ;;  %v699_v35 = vcombine.low %v677_v23, %v691_v28 }
  0x80   : > { %vm2149_vm10 = vcmask 1042434   ;;  %vm2151_vm11 = vcmask 1046534   ;;  %vm2154_vm12 = vcmask 1043459   ;;  %vm2156_vm13 = vcmask 1047559  }
  0x81   : > { %v730_v41 = vrot.slane %v702_v32, %v2869_v6  ;;  %v716_v43 = vrot.slane %v701_v33, %v2869_v6  ;;  %v2896_v46 = vrot.slane %v700_v34, %v2869_v6  ;;  %v2899_v47 = vrot.slane %v699_v35, %v2869_v6 }
  0x83   : > { %v734_v7 = vcombine.high %v730_v41, %v730_v41  ;;  %v732_v48 = vcombine.high %v716_v43, %v716_v43  ;;  %v822_v50 = vrot.slane %v730_v41, %v2877_v37  ;;  %v830_v51 = vrot.slane %v730_v41, %v2883_v39 }
  0x84   : > { %v818_v52 = vrot.slane %v730_v41, %v2797_v21  ;;  %v826_v53 = vrot.slane %v730_v41, %v2880_v38  ;;  %v806_v54 = vrot.slane %v716_v43, %v2877_v37  ;;  %v814_v55 = vrot.slane %v716_v43, %v2883_v39 }
  0x85   : > { %v854_v56 = vrot.slane %v734_v7, %v2877_v37  ;;  %v862_v57 = vrot.slane %v734_v7, %v2883_v39  ;;  %v850_v58 = vrot.slane %v734_v7, %v2797_v21  ;;  %v858_v59 = vrot.slane %v734_v7, %v2880_v38 }
  0x86   : > { %v838_v60 = vrot.slane %v732_v48, %v2877_v37  ;;  %v846_v61 = vrot.slane %v732_v48, %v2883_v39  ;;  %v834_v62 = vrot.slane %v732_v48, %v2797_v21  ;;  %v842_v63 = vrot.slane %v732_v48, %v2880_v38 }
  0x87   : > { %v924_v2 = vmul.f32 %v854_v56, %v2885_v40  ;;  %v926_v3 = vmul.f32 %v862_v57, %v2891_v44  ;;  %v923_v4 = vmul.f32 %v850_v58, %v2888_v42  ;;  %v925_v5 = vmul.f32 %v858_v59, %v2893_v45 }
  0x88   : > { %v920_v8 = vmul.f32 %v838_v60, %v2885_v40  ;;  %v922_v9 = vmul.f32 %v846_v61, %v2891_v44  ;;  %v919_v11 = vmul.f32 %v834_v62, %v2888_v42  ;;  %v921_v13 = vmul.f32 %v842_v63, %v2893_v45 }
  0x89   : > { %953 = vmatprep.subr.mxu0 %v924_v2  ;;  %1036 = vmatprep.subr.mxu1 %v926_v3  ;;  %v916_v14 = vmul.f32 %v822_v50, %v2885_v40  ;;  %v918_v16 = vmul.f32 %v830_v51, %v2891_v44  ;;  %v915_v17 = vmul.f32 %v818_v52, %v2888_v42 }
  0x8a   : > { %954 = vmatpush1.msra.mxu0 %v923_v4  ;;  %1037 = vmatpush1.msra.mxu1 %v925_v5  ;;  %v917_v10 = vmul.f32 %v826_v53, %v2893_v45  ;;  %v912_v18 = vmul.f32 %v806_v54, %v2885_v40  ;;  %v914_v19 = vmul.f32 %v814_v55, %v2891_v44 }
  0x8b   : > { %955 = vmatprep.subr.mxu0 %v920_v8  ;;  %1038 = vmatprep.subr.mxu1 %v922_v9  ;;  %v802_v20 = vrot.slane %v716_v43, %v2797_v21  ;;  %v810_v22 = vrot.slane %v716_v43, %v2880_v38  ;;  %v733_v23 = vcombine.high %v2896_v46, %v2896_v46 }
  0x8c   : > { %956 = vmatpush1.msra.mxu0 %v919_v11  ;;  %1039 = vmatpush1.msra.mxu1 %v921_v13  ;;  %v731_v24 = vcombine.high %v2899_v47, %v2899_v47  ;;  %v758_v25 = vrot.slane %v2896_v46, %v2877_v37  ;;  %v766_v27 = vrot.slane %v2896_v46, %v2883_v39  ;;  %v477_v11 = vld [vmem:[%s292_s9] sm:$0xff] }
  0x8d   : > { %957 = vmatprep.subr.mxu0 %v916_v14  ;;  %1040 = vmatprep.subr.mxu1 %v918_v16  ;;  %v911_v28 = vmul.f32 %v802_v20, %v2888_v42  ;;  %v913_v30 = vmul.f32 %v810_v22, %v2893_v45  ;;  %v790_v31 = vrot.slane %v733_v23, %v2877_v37 }
  0x8e   : > { %958 = vmatpush1.msra.mxu0 %v915_v17  ;;  %1041 = vmatpush1.msra.mxu1 %v917_v10  ;;  %v798_v32 = vrot.slane %v733_v23, %v2883_v39  ;;  %v786_v33 = vrot.slane %v733_v23, %v2797_v21  ;;  %v794_v34 = vrot.slane %v733_v23, %v2880_v38 }
  0x8f   : > { %959 = vmatprep.subr.mxu0 %v912_v18  ;;  %1042 = vmatprep.subr.mxu1 %v914_v19  ;;  %v908_v35 = vmul.f32 %v790_v31, %v2885_v40  ;;  %v774_v41 = vrot.slane %v731_v24, %v2877_v37  ;;  %v782_v43 = vrot.slane %v731_v24, %v2883_v39 }
  0x90   : > { %960 = vmatpush1.msra.mxu0 %v911_v28  ;;  %1043 = vmatpush1.msra.mxu1 %v913_v30  ;;  %v910_v7 = vmul.f32 %v798_v32, %v2891_v44  ;;  %v907_v48 = vmul.f32 %v786_v33, %v2888_v42  ;;  %v909_v50 = vmul.f32 %v794_v34, %v2893_v45 }
  0x91   : > { %961 = vmatprep.subr.mxu0 %v908_v35  ;;  %v904_v51 = vmul.f32 %v774_v41, %v2885_v40  ;;  %v906_v52 = vmul.f32 %v782_v43, %v2891_v44  ;;  %v770_v53 = vrot.slane %v731_v24, %v2797_v21  ;;  %v778_v54 = vrot.slane %v731_v24, %v2880_v38 }
  0x92   : > { %1044 = vmatprep.subr.mxu1 %v910_v7  ;;  %962 = vmatpush1.msra.mxu0 %v907_v48  ;;  %v900_v55 = vmul.f32 %v758_v25, %v2885_v40  ;;  %v902_v56 = vmul.f32 %v766_v27, %v2891_v44  ;;  %v754_v57 = vrot.slane %v2896_v46, %v2797_v21  ;;  %v2336_v25 = vsel %vm2827_vm15, 1.0, %v2579_v0 }
  0x93   : > { %1045 = vmatpush1.msra.mxu1 %v909_v50  ;;  %963 = vmatprep.subr.mxu0 %v904_v51  ;;  %v903_v58 = vmul.f32 %v770_v53, %v2888_v42  ;;  %v905_v59 = vmul.f32 %v778_v54, %v2893_v45  ;;  %v762_v60 = vrot.slane %v2896_v46, %v2880_v38 }
  0x94   : > { %1046 = vmatprep.subr.mxu1 %v906_v52  ;;  %v899_v61 = vmul.f32 %v754_v57, %v2888_v42  ;;  %v742_v62 = vrot.slane %v2899_v47, %v2877_v37  ;;  %v750_v63 = vrot.slane %v2899_v47, %v2883_v39  ;;  %v738_v2 = vrot.slane %v2899_v47, %v2797_v21 }
  0x95   : > { %964 = vmatpush1.msra.mxu0 %v903_v58  ;;  %1047 = vmatpush1.msra.mxu1 %v905_v59  ;;  %v901_v46 = vmul.f32 %v762_v60, %v2893_v45  ;;  %v746_v3 = vrot.slane %v2899_v47, %v2880_v38  ;;  %v1291_v32 = vrot.slane %v2336_v25, %v2869_v6 }
  0x96   : > { %965 = vmatprep.subr.mxu0 %v900_v55  ;;  %1048 = vmatprep.subr.mxu1 %v902_v56  ;;  %v896_v4 = vmul.f32 %v742_v62, %v2885_v40  ;;  %v898_v5 = vmul.f32 %v750_v63, %v2891_v44  ;;  %v895_v8 = vmul.f32 %v738_v2, %v2888_v42  ;;  %v478_v40 = vld [vmem:[%s292_s9 + $0x8] sm:$0xff]  ;;  %v479_v42 = vld [vmem:[%s292_s9 + $0x10] sm:$0xff]  ;;  %v603_v44 = vadd.f32 1.0, %v2818_v15 }
  0x97   : > { %966 = vmatpush1.msra.mxu0 %v899_v61  ;;  %1049 = vmatpush1.msra.mxu1 %v901_v46  ;;  %v897_v9 = vmul.f32 %v746_v3, %v2893_v45  ;;  %v604_v45 = vadd.f32 1.0, %v2841_v36 }
  0x98   : > { %967 = vmatprep.subr.mxu0 %v896_v4  ;;  %1050 = vmatprep.subr.mxu1 %v898_v5  ;;  %v605_v47 = vmul.f32 4.0, %v603_v44 }
  0x99   : > { %968 = vmatpush1.msra.mxu0 %v895_v8  ;;  %1051 = vmatpush1.msra.mxu1 %v897_v9  ;;  %v606_v13 = vmul.f32 4.0, %v604_v45 }
  0x9a   : > { %2344 = vmatmul.mubr.msk.f32.vlgmr.msra.gmra.mxu0 %vm927_vm6, %v477_v11  ;;  %2347 = vmatmul.mubr.msk.f32.vlgmr.msra.gmra.mxu1 %vm927_vm6, %v477_v11  ;;  %v2342_v14 = vadd.f32 -0.5, %v605_v47 }
  0x9b   : > { %1007 = vmatprep.mubr.f32.mxu0 %v2579_v0  ;;  %1090 = vmatprep.mubr.f32.mxu1 %v2579_v0  ;;  %v2343_v16 = vadd.f32 -0.5, %v606_v13 }
  0x9c   : > { %v614_v17 = vrot.slane %v2342_v14, %v2797_v21  ;;  %v618_v18 = vrot.slane %v2342_v14, %v2816_v12 }
  0x9d   : > { %v622_v10 = vrot.slane %v2343_v16, %v2797_v21  ;;  %v626_v19 = vrot.slane %v2343_v16, %v2816_v12  ;;  %v2337_v12 = vsel %vm2857_vm5, 1.0, %v2579_v0 }
  0x9e   : > { %2345 = vmatmul.mubr.msk.f32.gmra.mxu0 %vm927_vm6, %v478_v40  ;;  %2348 = vmatmul.mubr.msk.f32.gmra.mxu1 %vm927_vm6, %v478_v40  ;;  %v634_v20 = vrot.slane %v614_v17, %v2797_v21  ;;  %v638_v15 = vrot.slane %v618_v18, %v2797_v21  ;;  %v1298_v33 = vrot.slane %v2337_v12, %v2869_v6 }
  0x9f   : > { %1013 = vmatprep.mubr.f32.mxu0 %v2579_v0  ;;  %1096 = vmatprep.mubr.f32.mxu1 %v2579_v0  ;;  %v642_v22 = vrot.slane %v622_v10, %v2797_v21  ;;  %v646_v36 = vrot.slane %v626_v19, %v2797_v21 }
  0xa0   : > { %v647_v23 = vsub.f32 %v634_v20, %v2832_v29  ;;  %v648_v27 = vsub.f32 %v638_v15, %v2832_v29  ;;  %v1299_v26 = vcombine.low %v1291_v32, %v1298_v33 }
  0xa1   : > { %v649_v24 = vsub.f32 %v642_v22, %v2832_v29  ;;  %v650_v28 = vsub.f32 %v646_v36, %v2832_v29 }
  0xa2   : > { %2346 = vmatmul.mubr.msk.f32.gmra.mxu0 %vm927_vm6, %v479_v42  ;;  %2349 = vmatmul.mubr.msk.f32.gmra.mxu1 %vm927_vm6, %v479_v42  ;;  %v651_v30 = vand.u32 2147483647, %v647_v23  ;;  %v652_v34 = vand.u32 2147483647, %v648_v27  ;;  %v1306_v49 = vrot.slane %v1299_v26, %v2869_v6 }
  0xa3   : > { %1761 = vmatprep.mubr.f32.mxu0 %v2579_v0  ;;  %1850 = vmatprep.mubr.f32.mxu1 %v2579_v0  ;;  %v653_v31 = vand.u32 2147483647, %v649_v24  ;;  %v654_v35 = vand.u32 2147483647, %v650_v28 }
  0xa4   : > { %v655_v41 = vsub.f32 1.0, %v651_v30  ;;  %v656_v7 = vsub.f32 1.0, %v652_v34  ;;  %1309 = vst.msk [vmem:[#allocation3 + $0x3] ss:$4 sm:$0xf] %vm3021_vm7, %v1306_v49 }
  0xa5   : > { %v657_v43 = vsub.f32 1.0, %v653_v31  ;;  %v658_v48 = vsub.f32 1.0, %v654_v35 }
  0xa6   : > { %v3016_v50 = vmax.f32 %v655_v41, 0.0  ;;  %v3027_v53 = vmax.f32 %v656_v7, 0.0 }
  0xa7   : > { %v3018_v51 = vmax.f32 %v657_v43, 0.0  ;;  %v3029_v54 = vmax.f32 %v658_v48, 0.0 }
 0x15a   : > { %v1003_v55 = vpop.f32.mrf.mxu0  ;;  %v1086_v56 = vpop.f32.mrf.mxu1 }
 0x15b   : > { %v1103_v57 = vmul.f32 %v1003_v55, %v3016_v50  ;;  %v1105_v58 = vmul.f32 %v1086_v56, %v3018_v51 }
 0x15c   : > { %v1005_v59 = vpop.f32.mrf.mxu0  ;;  %v1088_v60 = vpop.f32.mrf.mxu1 }
 0x15d   : > { %v1115_v61 = vrot.slane %v1103_v57, 4  ;;  %v1127_v1 = vrot.slane %v1105_v58, 4  ;;  %v1104_v62 = vmul.f32 %v1005_v59, %v3027_v53  ;;  %v1106_v63 = vmul.f32 %v1088_v60, %v3029_v54 }
 0x15e   : > { %v1009_v2 = vpop.f32.mrf.mxu0  ;;  %v1092_v46 = vpop.f32.mrf.mxu1 }
 0x15f   : > { %v1116_v3 = vadd.f32 %v1115_v61, %v1103_v57  ;;  %v1128_v4 = vadd.f32 %v1127_v1, %v1105_v58  ;;  %v1121_v5 = vrot.slane %v1104_v62, 4  ;;  %v1133_v8 = vrot.slane %v1106_v63, 4 }
 0x160   : > { %v1107_v9 = vmul.f32 %v1009_v2, %v3016_v50  ;;  %v1109_v11 = vmul.f32 %v1092_v46, %v3018_v51  ;;  %v1011_v40 = vpop.f32.mrf.mxu0  ;;  %v1094_v42 = vpop.f32.mrf.mxu1 }
 0x161   : > { %v1117_v44 = vrot.slane %v1116_v3, 2  ;;  %v1129_v45 = vrot.slane %v1128_v4, 2  ;;  %v1122_v47 = vadd.f32 %v1121_v5, %v1104_v62  ;;  %v1134_v13 = vadd.f32 %v1133_v8, %v1106_v63 }
 0x162   : > { %v1139_v14 = vrot.slane %v1107_v9, 4  ;;  %v1151_v16 = vrot.slane %v1109_v11, 4  ;;  %v1108_v17 = vmul.f32 %v1011_v40, %v3027_v53  ;;  %v1110_v10 = vmul.f32 %v1094_v42, %v3029_v54 }
 0x163   : > { %v1118_v18 = vadd.f32 %v1117_v44, %v1116_v3  ;;  %v1130_v19 = vadd.f32 %v1129_v45, %v1128_v4  ;;  %v1123_v20 = vrot.slane %v1122_v47, 2  ;;  %v1135_v22 = vrot.slane %v1134_v13, 2 }
 0x164   : > { %v1140_v15 = vadd.f32 %v1139_v14, %v1107_v9  ;;  %v1152_v36 = vadd.f32 %v1151_v16, %v1109_v11  ;;  %v1145_v23 = vrot.slane %v1108_v17, 4  ;;  %v1157_v24 = vrot.slane %v1110_v10, 4 }
 0x165   : > { %v1119_v25 = vrot.slane %v1118_v18, 1  ;;  %v1131_v12 = vrot.slane %v1130_v19, 1  ;;  %v1124_v27 = vadd.f32 %v1123_v20, %v1122_v47  ;;  %v1136_v28 = vadd.f32 %v1135_v22, %v1134_v13 }
 0x166   : > { %v1141_v30 = vrot.slane %v1140_v15, 2  ;;  %v1153_v31 = vrot.slane %v1152_v36, 2  ;;  %v1146_v32 = vadd.f32 %v1145_v23, %v1108_v17  ;;  %v1158_v33 = vadd.f32 %v1157_v24, %v1110_v10 }
 0x167   : > { %v1125_v34 = vrot.slane %v1124_v27, 1  ;;  %v1137_v35 = vrot.slane %v1136_v28, 1  ;;  %v1120_v48 = vadd.f32 %v1119_v25, %v1118_v18  ;;  %v1132_v49 = vadd.f32 %v1131_v12, %v1130_v19 }
 0x168   : > { %v1142_v41 = vadd.f32 %v1141_v30, %v1140_v15  ;;  %v1154_v43 = vadd.f32 %v1153_v31, %v1152_v36  ;;  %v1147_v26 = vrot.slane %v1146_v32, 2  ;;  %v1159_v7 = vrot.slane %v1158_v33, 2 }
 0x169   : > { %v1126_v55 = vadd.f32 %v1125_v34, %v1124_v27  ;;  %v1138_v56 = vadd.f32 %v1137_v35, %v1136_v28 }
 0x16a   : > { %v1143_v57 = vrot.slane %v1142_v41, 1  ;;  %v1155_v58 = vrot.slane %v1154_v43, 1  ;;  %v1148_v59 = vadd.f32 %v1147_v26, %v1146_v32  ;;  %v1160_v60 = vadd.f32 %v1159_v7, %v1158_v33 }
 0x16b   : > { %v1191_v61 = vcombine.low %v1120_v48, %v1126_v55  ;;  %v1192_v1 = vcombine.low %v1132_v49, %v1138_v56 }
 0x16c   : > { %v1149_v62 = vrot.slane %v1148_v59, 1  ;;  %v1161_v63 = vrot.slane %v1160_v60, 1  ;;  %v1144_v3 = vadd.f32 %v1143_v57, %v1142_v41  ;;  %v1156_v4 = vadd.f32 %v1155_v58, %v1154_v43 }
 0x16d   : > { %v1199_v2 = vrot.slane %v1191_v61, %v2869_v6  ;;  %v1206_v46 = vrot.slane %v1192_v1, %v2869_v6 }
 0x16e   : > { %v1150_v5 = vadd.f32 %v1149_v62, %v1148_v59  ;;  %v1162_v8 = vadd.f32 %v1161_v63, %v1160_v60 }
 0x16f   : > { %v1207_v9 = vcombine.low %v1199_v2, %v1206_v46 }
 0x170   : > { %v1225_v11 = vcombine.low %v1144_v3, %v1150_v5  ;;  %v1226_v40 = vcombine.low %v1156_v4, %v1162_v8 }
 0x171   : > { %v1214_v42 = vrot.slane %v1207_v9, %v2869_v6 }
 0x172   : > { %v1233_v44 = vrot.slane %v1225_v11, %v2869_v6  ;;  %v1240_v45 = vrot.slane %v1226_v40, %v2869_v6 }
 0x173   : > { %1220 = vst.msk [vmem:[#allocation3] ss:$4 sm:$0xf] %vm3021_vm7, %v1214_v42 }
 0x174   : > { %v1241_v47 = vcombine.low %v1233_v44, %v1240_v45 }
 0x176   : > { %v1248_v13 = vrot.slane %v1241_v47, %v2869_v6 }
 0x178   : > { %1251 = vst.msk [vmem:[#allocation3 + $0x1] ss:$4 sm:$0xf] %vm3021_vm7, %v1248_v13 }
 0x17a   : > { %v1310_v14 = vld [vmem:[#allocation3] ss:$4 sm:$0xf] }
 0x17b   : > { %v1313_v16 = vadd.f32 1.0, %v1310_v14 }
 0x17d   : > { %v1314_v10 = vmul.f32 4.0, %v1313_v16 }
 0x17f   : > { %v1312_v17 = vld [vmem:[#allocation3 + $0x1] ss:$4 sm:$0xf]  ;;  %v2350_v20 = vadd.f32 -0.5, %v1314_v10 }
 0x180   : > { %v1356_v18 = vadd.f32 1.0, %v1312_v17 }
 0x181   : > { %v1327_v25 = vrot.slane %v2350_v20, %v2877_v37  ;;  %v1335_v12 = vrot.slane %v2350_v20, %v2883_v39  ;;  %v1323_v27 = vrot.slane %v2350_v20, %v2797_v21  ;;  %v1331_v28 = vrot.slane %v2350_v20, %v2880_v38 }
 0x182   : > { %v1357_v19 = vmul.f32 4.0, %v1356_v18 }
 0x183   : > { %v1341_v43 = vsub.f32 %v1327_v25, %v2832_v29  ;;  %v1343_v7 = vsub.f32 %v1335_v12, %v2832_v29  ;;  %v1340_v48 = vsub.f32 %v1323_v27, %v2832_v29  ;;  %v1342_v57 = vsub.f32 %v1331_v28, %v2832_v29 }
 0x184   : > { %v2351_v22 = vadd.f32 -0.5, %v1357_v19 }
 0x185   : > { %v1345_v1 = vand.u32 2147483647, %v1341_v43  ;;  %v1347_v63 = vand.u32 2147483647, %v1343_v7  ;;  %v1344_v46 = vand.u32 2147483647, %v1340_v48 }
 0x186   : > { %v1367_v15 = vrot.slane %v2351_v22, %v2797_v21  ;;  %v1371_v36 = vrot.slane %v2351_v22, %v2877_v37  ;;  %v1375_v23 = vrot.slane %v2351_v22, %v2880_v38  ;;  %v1379_v24 = vrot.slane %v2351_v22, %v2883_v39 }
 0x187   : > { %v1346_v3 = vand.u32 2147483647, %v1342_v57  ;;  %v1349_v40 = vsub.f32 1.0, %v1345_v1  ;;  %v1351_v45 = vsub.f32 1.0, %v1347_v63  ;;  %v1348_v47 = vsub.f32 1.0, %v1344_v46 }
 0x188   : > { %v1384_v30 = vsub.f32 %v1367_v15, %v2832_v29  ;;  %v1385_v31 = vsub.f32 %v1371_v36, %v2832_v29  ;;  %v1386_v32 = vsub.f32 %v1375_v23, %v2832_v29  ;;  %v1387_v33 = vsub.f32 %v1379_v24, %v2832_v29 }
 0x189   : > { %v1350_v13 = vsub.f32 1.0, %v1346_v3  ;;  %v3069_v18 = vmax.f32 %v1349_v40, 0.0  ;;  %v3073_v22 = vmax.f32 %v1351_v45, 0.0  ;;  %v3075_v15 = vmax.f32 %v1348_v47, 0.0 }
 0x18a   : > { %v1388_v34 = vand.u32 2147483647, %v1384_v30  ;;  %v1389_v35 = vand.u32 2147483647, %v1385_v31  ;;  %v1390_v41 = vand.u32 2147483647, %v1386_v32 }
 0x18b   : > { %v1391_v26 = vand.u32 2147483647, %v1387_v33  ;;  %v3077_v36 = vmax.f32 %v1350_v13, 0.0 }
 0x18c   : > { %v1392_v49 = vsub.f32 1.0, %v1388_v34  ;;  %v1393_v55 = vsub.f32 1.0, %v1389_v35  ;;  %v1394_v56 = vsub.f32 1.0, %v1390_v41 }
 0x18d   : > { %v1395_v58 = vsub.f32 1.0, %v1391_v26 }
 0x18e   : > { %v1396_v59 = vmax.f32 %v1392_v49, 0.0  ;;  %v1397_v60 = vmax.f32 %v1393_v55, 0.0  ;;  %v1398_v61 = vmax.f32 %v1394_v56, 0.0 }
 0x18f   : > { %v1399_v62 = vmax.f32 %v1395_v58, 0.0 }
 0x190   : > { %v1405_v2 = vcombine.high %v1396_v59, %v1397_v60  ;;  %v1404_v4 = vcombine.low %v1396_v59, %v1397_v60 }
 0x191   : > { %v1407_v5 = vcombine.high %v1398_v61, %v1399_v62  ;;  %v1406_v8 = vcombine.low %v1398_v61, %v1399_v62 }
 0x192   : > { %v1421_v9 = vrot.slane %v1405_v2, %v2869_v6  ;;  %v1414_v11 = vrot.slane %v1404_v4, %v2869_v6 }
 0x193   : > { %v1435_v42 = vrot.slane %v1407_v5, %v2869_v6  ;;  %v1428_v44 = vrot.slane %v1406_v8, %v2869_v6 }
 0x195   : > { %v1439_v14 = vcombine.high %v1421_v9, %v1435_v42  ;;  %v1438_v16 = vcombine.low %v1421_v9, %v1435_v42  ;;  %v1437_v17 = vcombine.high %v1414_v11, %v1428_v44  ;;  %v1436_v10 = vcombine.low %v1414_v11, %v1428_v44 }
 0x197   : > { %v1467_v19 = vrot.slane %v1439_v14, %v2869_v6  ;;  %v1453_v20 = vrot.slane %v1438_v16, %v2869_v6  ;;  %v3080_v23 = vrot.slane %v1437_v17, %v2869_v6  ;;  %v3084_v27 = vrot.slane %v1436_v10, %v2869_v6 }
 0x199   : > { %v1471_v24 = vcombine.high %v1467_v19, %v1467_v19  ;;  %v1469_v25 = vcombine.high %v1453_v20, %v1453_v20  ;;  %v1559_v12 = vrot.slane %v1467_v19, %v2877_v37  ;;  %v1567_v28 = vrot.slane %v1467_v19, %v2883_v39 }
 0x19a   : > { %v1555_v30 = vrot.slane %v1467_v19, %v2797_v21  ;;  %v1563_v31 = vrot.slane %v1467_v19, %v2880_v38  ;;  %v1543_v32 = vrot.slane %v1453_v20, %v2877_v37  ;;  %v1551_v61 = vrot.slane %v1453_v20, %v2883_v39 }
 0x19b   : > { %v1591_v33 = vrot.slane %v1471_v24, %v2877_v37  ;;  %v1599_v34 = vrot.slane %v1471_v24, %v2883_v39  ;;  %v1587_v35 = vrot.slane %v1471_v24, %v2797_v21  ;;  %v1595_v41 = vrot.slane %v1471_v24, %v2880_v38 }
 0x19c   : > { %v1575_v43 = vrot.slane %v1469_v25, %v2877_v37  ;;  %v1583_v26 = vrot.slane %v1469_v25, %v2883_v39  ;;  %v1571_v7 = vrot.slane %v1469_v25, %v2797_v21  ;;  %v1579_v48 = vrot.slane %v1469_v25, %v2880_v38 }
 0x19d   : > { %v1661_v49 = vmul.f32 %v1591_v33, %v3069_v18  ;;  %v1663_v55 = vmul.f32 %v1599_v34, %v3073_v22  ;;  %v1660_v56 = vmul.f32 %v1587_v35, %v3075_v15  ;;  %v1662_v57 = vmul.f32 %v1595_v41, %v3077_v36 }
 0x19e   : > { %v1657_v58 = vmul.f32 %v1575_v43, %v3069_v18  ;;  %v1659_v59 = vmul.f32 %v1583_v26, %v3073_v22  ;;  %v1656_v60 = vmul.f32 %v1571_v7, %v3075_v15  ;;  %v1658_v1 = vmul.f32 %v1579_v48, %v3077_v36 }
 0x19f   : > { %1713 = vmatprep.subr.mxu0 %v1661_v49  ;;  %1802 = vmatprep.subr.mxu1 %v1663_v55  ;;  %v1653_v62 = vmul.f32 %v1559_v12, %v3069_v18  ;;  %v1655_v63 = vmul.f32 %v1567_v28, %v3073_v22  ;;  %v1652_v2 = vmul.f32 %v1555_v30, %v3075_v15 }
 0x1a0   : > { %1714 = vmatpush1.msra.mxu0 %v1660_v56  ;;  %1803 = vmatpush1.msra.mxu1 %v1662_v57  ;;  %v1654_v46 = vmul.f32 %v1563_v31, %v3077_v36  ;;  %v1649_v3 = vmul.f32 %v1543_v32, %v3069_v18  ;;  %v1539_v4 = vrot.slane %v1453_v20, %v2797_v21 }
 0x1a1   : > { %1715 = vmatprep.subr.mxu0 %v1657_v58  ;;  %1804 = vmatprep.subr.mxu1 %v1659_v59  ;;  %v1547_v5 = vrot.slane %v1453_v20, %v2880_v38  ;;  %v1470_v8 = vcombine.high %v3080_v23, %v3080_v23  ;;  %v1651_v9 = vmul.f32 %v1551_v61, %v3073_v22 }
 0x1a2   : > { %1716 = vmatpush1.msra.mxu0 %v1656_v60  ;;  %1805 = vmatpush1.msra.mxu1 %v1658_v1  ;;  %v1468_v11 = vcombine.high %v3084_v27, %v3084_v27  ;;  %v1495_v40 = vrot.slane %v3080_v23, %v2877_v37  ;;  %v1648_v42 = vmul.f32 %v1539_v4, %v3075_v15  ;;  %v1680_v60 = vld [vmem:[#allocation8] sm:$0xff] }
 0x1a3   : > { %1717 = vmatprep.subr.mxu0 %v1653_v62  ;;  %1806 = vmatprep.subr.mxu1 %v1655_v63  ;;  %v1650_v44 = vmul.f32 %v1547_v5, %v3077_v36  ;;  %v1527_v45 = vrot.slane %v1470_v8, %v2877_v37  ;;  %v1535_v47 = vrot.slane %v1470_v8, %v2883_v39 }
 0x1a4   : > { %1718 = vmatpush1.msra.mxu0 %v1652_v2  ;;  %1807 = vmatpush1.msra.mxu1 %v1654_v46  ;;  %v1523_v13 = vrot.slane %v1470_v8, %v2797_v21  ;;  %v1531_v14 = vrot.slane %v1470_v8, %v2880_v38  ;;  %v1511_v17 = vrot.slane %v1468_v11, %v2877_v37 }
 0x1a5   : > { %1719 = vmatprep.subr.mxu0 %v1649_v3  ;;  %1808 = vmatprep.subr.mxu1 %v1651_v9  ;;  %v1645_v16 = vmul.f32 %v1527_v45, %v3069_v18  ;;  %v1519_v10 = vrot.slane %v1468_v11, %v2883_v39  ;;  %v1647_v19 = vmul.f32 %v1535_v47, %v3073_v22 }
 0x1a6   : > { %1720 = vmatpush1.msra.mxu0 %v1648_v42  ;;  %1809 = vmatpush1.msra.mxu1 %v1650_v44  ;;  %v1644_v20 = vmul.f32 %v1523_v13, %v3075_v15  ;;  %v1503_v24 = vrot.slane %v3080_v23, %v2883_v39  ;;  %v1646_v25 = vmul.f32 %v1531_v14, %v3077_v36 }
 0x1a7   : > { %1721 = vmatprep.subr.mxu0 %v1645_v16  ;;  %v1641_v12 = vmul.f32 %v1511_v17, %v3069_v18  ;;  %v1507_v28 = vrot.slane %v1468_v11, %v2797_v21  ;;  %v1515_v30 = vrot.slane %v1468_v11, %v2880_v38  ;;  %1810 = vmatprep.subr.mxu1 %v1647_v19 }
 0x1a8   : > { %1722 = vmatpush1.msra.mxu0 %v1644_v20  ;;  %v1643_v31 = vmul.f32 %v1519_v10, %v3073_v22  ;;  %v1637_v32 = vmul.f32 %v1495_v40, %v3069_v18  ;;  %v1491_v33 = vrot.slane %v3080_v23, %v2797_v21  ;;  %1811 = vmatpush1.msra.mxu1 %v1646_v25 }
 0x1a9   : > { %1723 = vmatprep.subr.mxu0 %v1641_v12  ;;  %v1640_v34 = vmul.f32 %v1507_v28, %v3075_v15  ;;  %v1642_v35 = vmul.f32 %v1515_v30, %v3077_v36  ;;  %v1499_v41 = vrot.slane %v3080_v23, %v2880_v38  ;;  %v1639_v43 = vmul.f32 %v1503_v24, %v3073_v22 }
 0x1aa   : > { %1812 = vmatprep.subr.mxu1 %v1643_v31  ;;  %v1479_v26 = vrot.slane %v3084_v27, %v2877_v37  ;;  %v1487_v7 = vrot.slane %v3084_v27, %v2883_v39  ;;  %v1475_v48 = vrot.slane %v3084_v27, %v2797_v21  ;;  %v1636_v49 = vmul.f32 %v1491_v33, %v3075_v15 }
 0x1ab   : > { %1724 = vmatpush1.msra.mxu0 %v1640_v34  ;;  %1813 = vmatpush1.msra.mxu1 %v1642_v35  ;;  %v1638_v55 = vmul.f32 %v1499_v41, %v3077_v36  ;;  %v1483_v23 = vrot.slane %v3084_v27, %v2880_v38  ;;  %v1098_v27 = vpop.f32.mrf.mxu1 }
 0x1ac   : > { %1725 = vmatprep.subr.mxu0 %v1637_v32  ;;  %1814 = vmatprep.subr.mxu1 %v1639_v43  ;;  %v1633_v56 = vmul.f32 %v1479_v26, %v3069_v18  ;;  %v1635_v57 = vmul.f32 %v1487_v7, %v3073_v22  ;;  %v1632_v58 = vmul.f32 %v1475_v48, %v3075_v15  ;;  %v1681_v18 = vld [vmem:[#allocation8 + $0x8] sm:$0xff]  ;;  %v1682_v22 = vld [vmem:[#allocation8 + $0x10] sm:$0xff]  ;;  %v1683_v15 = vld [vmem:[#allocation8 + $0x18] sm:$0xff] }
 0x1ad   : > { %1726 = vmatpush1.msra.mxu0 %v1636_v49  ;;  %1815 = vmatpush1.msra.mxu1 %v1638_v55  ;;  %v1634_v59 = vmul.f32 %v1483_v23, %v3077_v36  ;;  %v1015_v36 = vpop.f32.mrf.mxu0  ;;  %v1113_v1 = vmul.f32 %v1098_v27, %v3018_v51  ;;  %v1100_v63 = vpop.f32.mrf.mxu1 }
 0x1ae   : > { %1727 = vmatprep.subr.mxu0 %v1633_v56  ;;  %1816 = vmatprep.subr.mxu1 %v1635_v57  ;;  %v1111_v61 = vmul.f32 %v1015_v36, %v3016_v50  ;;  %v1114_v4 = vmul.f32 %v1100_v63, %v3029_v54 }
 0x1af   : > { %1728 = vmatpush1.msra.mxu0 %v1632_v58  ;;  %1817 = vmatpush1.msra.mxu1 %v1634_v59  ;;  %v1017_v62 = vpop.f32.mrf.mxu0  ;;  %v1175_v46 = vrot.slane %v1113_v1, 4 }
 0x1b0   : > { %2352 = vmatmul.mubr.msk.f32.vlgmr.msra.gmra.mxu0 %vm927_vm6, %v1680_v60  ;;  %2356 = vmatmul.mubr.msk.f32.vlgmr.msra.gmra.mxu1 %vm927_vm6, %v1680_v60  ;;  %v1163_v2 = vrot.slane %v1111_v61, 4  ;;  %v1112_v3 = vmul.f32 %v1017_v62, %v3027_v53  ;;  %v1181_v9 = vrot.slane %v1114_v4, 4 }
 0x1b1   : > { %1767 = vmatprep.mubr.f32.mxu0 %v2579_v0  ;;  %1856 = vmatprep.mubr.f32.mxu1 %v2579_v0  ;;  %v1176_v5 = vadd.f32 %v1175_v46, %v1113_v1 }
 0x1b2   : > { %v1169_v8 = vrot.slane %v1112_v3, 4  ;;  %v1182_v44 = vadd.f32 %v1181_v9, %v1114_v4 }
 0x1b3   : > { %v1177_v40 = vrot.slane %v1176_v5, 2 }
 0x1b4   : > { %2353 = vmatmul.mubr.msk.f32.gmra.mxu0 %vm927_vm6, %v1681_v18  ;;  %2357 = vmatmul.mubr.msk.f32.gmra.mxu1 %vm927_vm6, %v1681_v18  ;;  %v1170_v42 = vadd.f32 %v1169_v8, %v1112_v3  ;;  %v1183_v51 = vrot.slane %v1182_v44, 2 }
 0x1b5   : > { %1773 = vmatprep.mubr.f32.mxu0 %v2579_v0  ;;  %1862 = vmatprep.mubr.f32.mxu1 %v2579_v0  ;;  %v1178_v50 = vadd.f32 %v1177_v40, %v1176_v5 }
 0x1b6   : > { %v1171_v47 = vrot.slane %v1170_v42, 2  ;;  %v1184_v17 = vadd.f32 %v1183_v51, %v1182_v44 }
 0x1b7   : > { %v1179_v14 = vrot.slane %v1178_v50, 1 }
 0x1b8   : > { %2354 = vmatmul.mubr.msk.f32.gmra.mxu0 %vm927_vm6, %v1682_v22  ;;  %2358 = vmatmul.mubr.msk.f32.gmra.mxu1 %vm927_vm6, %v1682_v22  ;;  %v1172_v16 = vadd.f32 %v1171_v47, %v1170_v42  ;;  %v1185_v54 = vrot.slane %v1184_v17, 1 }
 0x1b9   : > { %1779 = vmatprep.mubr.f32.mxu0 %v2579_v0  ;;  %1868 = vmatprep.mubr.f32.mxu1 %v2579_v0  ;;  %v1164_v0 = vadd.f32 %v1163_v2, %v1111_v61  ;;  %v1180_v53 = vadd.f32 %v1179_v14, %v1178_v50 }
 0x1ba   : > { %v1173_v19 = vrot.slane %v1172_v16, 1  ;;  %v1186_v24 = vadd.f32 %v1185_v54, %v1184_v17 }
 0x1bb   : > { %v1165_v11 = vrot.slane %v1164_v0, 2 }
 0x1bc   : > { %2355 = vmatmul.mubr.msk.f32.gmra.mxu0 %vm927_vm6, %v1683_v15  ;;  %2359 = vmatmul.mubr.msk.f32.gmra.mxu1 %vm927_vm6, %v1683_v15  ;;  %v1174_v20 = vadd.f32 %v1173_v19, %v1172_v16  ;;  %v1257_v12 = vcombine.low %v1180_v53, %v1186_v24 }
 0x1bd   : > { %v1166_v45 = vadd.f32 %v1165_v11, %v1164_v0 }
 0x1be   : > { %v1271_v30 = vrot.slane %v1257_v12, %v2869_v6 }
 0x1bf   : > { %v1167_v13 = vrot.slane %v1166_v45, 1 }
 0x1c1   : > { %v1168_v10 = vadd.f32 %v1167_v13, %v1166_v45 }
 0x1c3   : > { %v1256_v25 = vcombine.low %v1168_v10, %v1174_v20 }
 0x1c5   : > { %v1264_v28 = vrot.slane %v1256_v25, %v2869_v6 }
 0x1c7   : > { %v1272_v31 = vcombine.low %v1264_v28, %v1271_v30 }
 0x1c9   : > { %v1279_v32 = vrot.slane %v1272_v31, %v2869_v6 }
 0x1cb   : > { %1282 = vst.msk [vmem:[#allocation3 + $0x2] ss:$4 sm:$0xf] %vm3021_vm7, %v1279_v32 }
 0x1d2   : > { %v1911_v33 = vld [vmem:[#allocation3 + $0x2] ss:$4 sm:$0xf] }
 0x1d3   : > { %v1912_v34 = vadd.f32 1.0, %v1911_v33 }
 0x1d5   : > { %v1913_v35 = vmul.f32 4.0, %v1912_v34 }
 0x1d7   : > { %v2360_v41 = vadd.f32 -0.5, %v1913_v35  ;;  %v2081_v35 = vld [vmem:[#allocation3 + $0x3] ss:$4 sm:$0xf] }
 0x1d9   : > { %v1919_v43 = vrot.slane %v2360_v41, %v2797_v21  ;;  %v1927_v26 = vrot.slane %v2360_v41, %v2880_v38  ;;  %v1923_v7 = vrot.slane %v2360_v41, %v2877_v37  ;;  %v1931_v48 = vrot.slane %v2360_v41, %v2883_v39 }
 0x1db   : > { %v1936_v49 = vsub.f32 %v1919_v43, %v2832_v29  ;;  %v1938_v55 = vsub.f32 %v1927_v26, %v2832_v29  ;;  %v1937_v6 = vsub.f32 %v1923_v7, %v2832_v29  ;;  %v1939_v52 = vsub.f32 %v1931_v48, %v2832_v29 }
 0x1dd   : > { %v1940_v23 = vand.u32 2147483647, %v1936_v49  ;;  %v1942_v56 = vand.u32 2147483647, %v1938_v55  ;;  %v1941_v57 = vand.u32 2147483647, %v1937_v6 }
 0x1de   : > { %v1943_v58 = vand.u32 2147483647, %v1939_v52 }
 0x1df   : > { %v1944_v59 = vsub.f32 1.0, %v1940_v23  ;;  %v1946_v60 = vsub.f32 1.0, %v1942_v56  ;;  %v1945_v18 = vsub.f32 1.0, %v1941_v57  ;;  %v3209_v56 = vrot.slane %v2081_v35, %v2797_v21 }
 0x1e0   : > { %v1947_v22 = vsub.f32 1.0, %v1943_v58  ;;  %v3212_v57 = vrot.slane %v2081_v35, %v2880_v38 }
 0x1e1   : > { %v3192_v15 = vmax.f32 %v1944_v59, 0.0  ;;  %v3194_v36 = vmax.f32 %v1946_v60, 0.0  ;;  %v3196_v27 = vmax.f32 %v1945_v18, 0.0  ;;  %v3217_v60 = vrot.slane %v2081_v35, %v2877_v37 }
 0x1e2   : > { %v3198_v61 = vmax.f32 %v1947_v22, 0.0  ;;  %v3220_v18 = vrot.slane %v2081_v35, %v2883_v39 }
 0x270   : > { %v1763_v1 = vpop.f32.mrf.mxu0  ;;  %v1852_v62 = vpop.f32.mrf.mxu1 }
 0x271   : > { %v1968_v29 = vmul.f32 %v3192_v15, %v1763_v1  ;;  %v1970_v63 = vmul.f32 %v3194_v36, %v1852_v62 }
 0x272   : > { %v1765_v2 = vpop.f32.mrf.mxu0  ;;  %v1854_v46 = vpop.f32.mrf.mxu1 }
 0x273   : > { %v1984_v3 = vrot.slane %v1968_v29, 4  ;;  %v1996_v4 = vrot.slane %v1970_v63, 4  ;;  %v1969_v0 = vmul.f32 %v3196_v27, %v1765_v2  ;;  %v1971_v5 = vmul.f32 %v3198_v61, %v1854_v46 }
 0x274   : > { %v1769_v8 = vpop.f32.mrf.mxu0  ;;  %v1858_v9 = vpop.f32.mrf.mxu1 }
 0x275   : > { %v1972_v11 = vmul.f32 %v3192_v15, %v1769_v8  ;;  %v1974_v40 = vmul.f32 %v3194_v36, %v1858_v9  ;;  %v1985_v45 = vadd.f32 %v1984_v3, %v1968_v29  ;;  %v1997_v50 = vadd.f32 %v1996_v4, %v1970_v63 }
 0x276   : > { %v1771_v42 = vpop.f32.mrf.mxu0  ;;  %v1860_v44 = vpop.f32.mrf.mxu1  ;;  %v1990_v47 = vrot.slane %v1969_v0, 4  ;;  %v2002_v51 = vrot.slane %v1971_v5, 4 }
 0x277   : > { %v2008_v13 = vrot.slane %v1972_v11, 4  ;;  %v2020_v14 = vrot.slane %v1974_v40, 4  ;;  %v1973_v16 = vmul.f32 %v3196_v27, %v1771_v42  ;;  %v1975_v17 = vmul.f32 %v3198_v61, %v1860_v44 }
 0x278   : > { %v1986_v20 = vrot.slane %v1985_v45, 2  ;;  %v1998_v24 = vrot.slane %v1997_v50, 2  ;;  %v1991_v25 = vadd.f32 %v1990_v47, %v1969_v0  ;;  %v2003_v12 = vadd.f32 %v2002_v51, %v1971_v5  ;;  %v1775_v28 = vpop.f32.mrf.mxu0  ;;  %v1864_v30 = vpop.f32.mrf.mxu1 }
 0x279   : > { %v2009_v10 = vadd.f32 %v2008_v13, %v1972_v11  ;;  %v2021_v53 = vadd.f32 %v2020_v14, %v1974_v40  ;;  %v2014_v19 = vrot.slane %v1973_v16, 4  ;;  %v2026_v54 = vrot.slane %v1975_v17, 4 }
 0x27a   : > { %v1987_v26 = vadd.f32 %v1986_v20, %v1985_v45  ;;  %v1999_v7 = vadd.f32 %v1998_v24, %v1997_v50  ;;  %v1777_v48 = vpop.f32.mrf.mxu0  ;;  %v1866_v49 = vpop.f32.mrf.mxu1  ;;  %v1992_v55 = vrot.slane %v1991_v25, 2  ;;  %v2004_v6 = vrot.slane %v2003_v12, 2 }
 0x27b   : > { %v2010_v31 = vrot.slane %v2009_v10, 2  ;;  %v2022_v32 = vrot.slane %v2021_v53, 2  ;;  %v2015_v33 = vadd.f32 %v2014_v19, %v1973_v16  ;;  %v2027_v34 = vadd.f32 %v2026_v54, %v1975_v17 }
 0x27c   : > { %v1976_v58 = vmul.f32 %v3192_v15, %v1775_v28  ;;  %v1978_v59 = vmul.f32 %v3194_v36, %v1864_v30  ;;  %v1988_v62 = vrot.slane %v1987_v26, 1  ;;  %v2000_v29 = vrot.slane %v1999_v7, 1  ;;  %v1781_v2 = vpop.f32.mrf.mxu0  ;;  %v1870_v46 = vpop.f32.mrf.mxu1 }
 0x27d   : > { %v2016_v41 = vrot.slane %v2015_v33, 2  ;;  %v2028_v43 = vrot.slane %v2027_v34, 2  ;;  %v2011_v52 = vadd.f32 %v2010_v31, %v2009_v10  ;;  %v2023_v23 = vadd.f32 %v2022_v32, %v2021_v53 }
 0x27e   : > { %v2032_v63 = vrot.slane %v1976_v58, 4  ;;  %v2044_v21 = vrot.slane %v1978_v59, 4  ;;  %v1993_v38 = vadd.f32 %v1992_v55, %v1991_v25  ;;  %v2005_v3 = vadd.f32 %v2004_v6, %v2003_v12  ;;  %v1872_v35 = vpop.f32.mrf.mxu1 }
 0x27f   : > { %v2017_v22 = vadd.f32 %v2016_v41, %v2015_v33  ;;  %v2029_v1 = vadd.f32 %v2028_v43, %v2027_v34  ;;  %v2012_v4 = vrot.slane %v2011_v52, 1  ;;  %v2024_v0 = vrot.slane %v2023_v23, 1  ;;  %v1783_v34 = vpop.f32.mrf.mxu0 }
 0x280   : > { %v2033_v5 = vadd.f32 %v2032_v63, %v1976_v58  ;;  %v2045_v8 = vadd.f32 %v2044_v21, %v1978_v59  ;;  %v1977_v37 = vmul.f32 %v3196_v27, %v1777_v48  ;;  %v1979_v9 = vmul.f32 %v3198_v61, %v1866_v49 }
 0x281   : > { %v2018_v39 = vrot.slane %v2017_v22, 1  ;;  %v2030_v11 = vrot.slane %v2029_v1, 1  ;;  %v1980_v40 = vmul.f32 %v3192_v15, %v1781_v2  ;;  %v1982_v42 = vmul.f32 %v3194_v36, %v1870_v46 }
 0x282   : > { %v2034_v44 = vrot.slane %v2033_v5, 2  ;;  %v2046_v45 = vrot.slane %v2045_v8, 2  ;;  %v2038_v50 = vrot.slane %v1977_v37, 4  ;;  %v2050_v47 = vrot.slane %v1979_v9, 4 }
 0x283   : > { %v1994_v51 = vrot.slane %v1993_v38, 1  ;;  %v2006_v13 = vrot.slane %v2005_v3, 1  ;;  %v2056_v14 = vrot.slane %v1980_v40, 4  ;;  %v2068_v16 = vrot.slane %v1982_v42, 4 }
 0x284   : > { %v2035_v17 = vadd.f32 %v2034_v44, %v2033_v5  ;;  %v2047_v10 = vadd.f32 %v2046_v45, %v2045_v8  ;;  %v2039_v53 = vadd.f32 %v2038_v50, %v1977_v37  ;;  %v2051_v19 = vadd.f32 %v2050_v47, %v1979_v9 }
 0x285   : > { %v2019_v54 = vadd.f32 %v2018_v39, %v2017_v22  ;;  %v2031_v20 = vadd.f32 %v2030_v11, %v2029_v1  ;;  %v2057_v24 = vadd.f32 %v2056_v14, %v1980_v40  ;;  %v2069_v25 = vadd.f32 %v2068_v16, %v1982_v42 }
 0x286   : > { %v2013_v12 = vadd.f32 %v2012_v4, %v2011_v52  ;;  %v2025_v15 = vadd.f32 %v2024_v0, %v2023_v23  ;;  %v2040_v28 = vrot.slane %v2039_v53, 2  ;;  %v2052_v36 = vrot.slane %v2051_v19, 2 }
 0x287   : > { %v1989_v30 = vadd.f32 %v1988_v62, %v1987_v26  ;;  %v2001_v31 = vadd.f32 %v2000_v29, %v1999_v7  ;;  %v2036_v32 = vrot.slane %v2035_v17, 1  ;;  %v2048_v33 = vrot.slane %v2047_v10, 1 }
 0x288   : > { %v1995_v41 = vadd.f32 %v1994_v51, %v1993_v38  ;;  %v2007_v43 = vadd.f32 %v2006_v13, %v2005_v3  ;;  %v2058_v48 = vrot.slane %v2057_v24, 2  ;;  %v2070_v49 = vrot.slane %v2069_v25, 2 }
 0x289   : > { %v2108_v55 = vmul.f32 %v3217_v60, %v2019_v54  ;;  %v2110_v6 = vmul.f32 %v3220_v18, %v2031_v20  ;;  %v2041_v58 = vadd.f32 %v2040_v28, %v2039_v53  ;;  %v2053_v59 = vadd.f32 %v2052_v36, %v2051_v19 }
 0x28a   : > { %v2107_v52 = vmul.f32 %v3209_v56, %v2013_v12  ;;  %v2109_v23 = vmul.f32 %v3212_v57, %v2025_v15  ;;  %v1981_v26 = vmul.f32 %v3196_v27, %v1783_v34  ;;  %v1983_v7 = vmul.f32 %v3198_v61, %v1872_v35 }
 0x28b   : > { %v2037_v22 = vadd.f32 %v2036_v32, %v2035_v17  ;;  %v2049_v1 = vadd.f32 %v2048_v33, %v2047_v10  ;;  %v2042_v62 = vrot.slane %v2041_v58, 1  ;;  %v2054_v29 = vrot.slane %v2053_v59, 1 }
 0x28c   : > { %v2059_v63 = vadd.f32 %v2058_v48, %v2057_v24  ;;  %v2071_v21 = vadd.f32 %v2070_v49, %v2069_v25  ;;  %v2062_v2 = vrot.slane %v1981_v26, 4  ;;  %v2074_v46 = vrot.slane %v1983_v7, 4 }
 0x28d   : > { %v2137_v38 = vcombine.low %v2107_v52, %v2108_v55  ;;  %v2138_v3 = vcombine.low %v2109_v23, %v2110_v6  ;;  %v2043_v4 = vadd.f32 %v2042_v62, %v2041_v58  ;;  %v2055_v0 = vadd.f32 %v2054_v29, %v2053_v59 }
 0x28e   : > { %v2104_v5 = vmul.f32 %v3217_v60, %v1995_v41  ;;  %v2106_v8 = vmul.f32 %v3220_v18, %v2007_v43  ;;  %v2063_v37 = vadd.f32 %v2062_v2, %v1981_v26  ;;  %v2075_v27 = vadd.f32 %v2074_v46, %v1983_v7 }
 0x28f   : > { %v2111_v61 = vmul.f32 %v3209_v56, %v2037_v22  ;;  %v2113_v9 = vmul.f32 %v3212_v57, %v2049_v1  ;;  %v2112_v39 = vmul.f32 %v3217_v60, %v2043_v4  ;;  %v2114_v11 = vmul.f32 %v3220_v18, %v2055_v0 }
 0x290   : > { %v2060_v40 = vrot.slane %v2059_v63, 1  ;;  %v2072_v42 = vrot.slane %v2071_v21, 1  ;;  %v2064_v44 = vrot.slane %v2063_v37, 2  ;;  %v2076_v45 = vrot.slane %v2075_v27, 2 }
 0x291   : > { %v2103_v50 = vmul.f32 %v3209_v56, %v1989_v30  ;;  %v2105_v47 = vmul.f32 %v3212_v57, %v2001_v31  ;;  %v2143_v51 = vrot.slane %v2137_v38, 7  ;;  %v2158_v13 = vrot.slane %v2138_v3, 7 }
 0x292   : > { %v2139_v14 = vcombine.low %v2111_v61, %v2112_v39  ;;  %v2140_v16 = vcombine.low %v2113_v9, %v2114_v11  ;;  %v2065_v17 = vadd.f32 %v2064_v44, %v2063_v37  ;;  %v2077_v10 = vadd.f32 %v2076_v45, %v2075_v27 }
 0x293   : > { %v2135_v53 = vcombine.low %v2103_v50, %v2104_v5  ;;  %v2136_v19 = vcombine.low %v2105_v47, %v2106_v8  ;;  %v2061_v54 = vadd.f32 %v2060_v40, %v2059_v63  ;;  %v2073_v20 = vadd.f32 %v2072_v42, %v2071_v21 }
 0x294   : > { %v2066_v24 = vrot.slane %v2065_v17, 1  ;;  %v2078_v25 = vrot.slane %v2077_v10, 1  ;;  %v2148_v28 = vrot.slane %v2139_v14, 6  ;;  %v2161_v36 = vrot.slane %v2140_v16, 6 }
 0x295   : > { %v2145_v12 = vsel %vm2144_vm8, %v2143_v51, %v2135_v53  ;;  %v2159_v15 = vsel %vm2144_vm8, %v2158_v13, %v2136_v19  ;;  %v2115_v32 = vmul.f32 %v3209_v56, %v2061_v54  ;;  %v2117_v33 = vmul.f32 %v3212_v57, %v2073_v20 }
 0x296   : > { %v2067_v30 = vadd.f32 %v2066_v24, %v2065_v17  ;;  %v2079_v31 = vadd.f32 %v2078_v25, %v2077_v10  ;;  %v2147_v41 = vsel %vm2146_vm9, %v2143_v51, %v2145_v12  ;;  %v2160_v43 = vsel %vm2146_vm9, %v2158_v13, %v2159_v15 }
 0x297   : > { %v2150_v55 = vsel %vm2149_vm10, %v2148_v28, %v2147_v41  ;;  %v2162_v6 = vsel %vm2149_vm10, %v2161_v36, %v2160_v43 }
 0x298   : > { %v2116_v34 = vmul.f32 %v3217_v60, %v2067_v30  ;;  %v2118_v35 = vmul.f32 %v3220_v18, %v2079_v31  ;;  %v2152_v57 = vsel %vm2151_vm11, %v2148_v28, %v2150_v55  ;;  %v2163_v60 = vsel %vm2151_vm11, %v2161_v36, %v2162_v6 }
 0x29a   : > { %v2141_v48 = vcombine.low %v2115_v32, %v2116_v34  ;;  %v2142_v49 = vcombine.low %v2117_v33, %v2118_v35 }
 0x29c   : > { %v2153_v58 = vrot.slane %v2141_v48, 5  ;;  %v2164_v56 = vrot.slane %v2142_v49, 5 }
 0x29e   : > { %v2155_v59 = vsel %vm2154_vm12, %v2153_v58, %v2152_v57  ;;  %v2165_v18 = vsel %vm2154_vm12, %v2164_v56, %v2163_v60 }
 0x29f   : > { %v2157_v52 = vsel %vm2156_vm13, %v2153_v58, %v2155_v59  ;;  %v2166_v23 = vsel %vm2156_vm13, %v2164_v56, %v2165_v18 }
 0x2a0   : > { %2169 = vst [vmem:[%s277_s25] sm:$0xff] %v2157_v52  ;;  %2170 = vst [vmem:[%s277_s25 + $0x8] sm:$0xff] %v2166_v23 }
 0x2a1   : > { %2502 = shalt.err (!%p2499_p2)
}
 0x2a2   : > { %s2503_s22 = scalar_lea.hbm %s3253_s24, 256  ;;  %s2507_s6 = scalar_lea.hbm %s3305_s4, 512 }
 0x2a3   : > { %p2504_p11 = scmp.ne.s32.totalorder %s3253_s24, %s2503_s22  ;;  %p2508_p9 = scmp.lt.s32.totalorder %s3253_s24, %s3305_s4 }
 0x2a4   : > { %p2509_p4 = scmp.lt.s32.totalorder %s2507_s6, %s2503_s22 }
 0x2a5   : > { %p2505_p13 = pnand %p2504_p11, %p3332_p5 }
 0x2a6   : > { %p2510_p12 = por %p2509_p4, %p2508_p9 }
 0x2a7   : > { %p2506_p3 = pneg %p2505_p13 }
 0x2a9   : > { %p2511_p1 = pnand %p2510_p12, %p2506_p3 }
 0x2ab   : > { %2514 = shalt.err (!%p2511_p1)
}
 0x2ac   : > { %2376 = dma.vmem_to_hbm [thread:$0]  (%p3332_p5), %s3255_s13, 256, %s3253_s24, %s2172_s18  }
 0x2ad PF: > { %p2391_p6 = scmp.ge.s32.totalorder %s2573_s20, 2  ;;  %s2200_s7 = sand.u32 1, %s2553_s15  }
 0x2ae   : > { %p3333_p7 = scmp.ne.s32.totalorder %s3316_s29, 0  ;;  %s2201_s0 = scalar_lea.sflag [#allocation6], %s2200_s7 }
 0x2b0   : > { %p2386_p0 = pnand %p2391_p6, %p3333_p7 }
 0x2b2   : > { %p2387_p10 = pneg %p2386_p0 }
 0x2b4   : > { %2548 = dma.done.wait (%p2387_p10), %s2201_s0, 256  }
 0x2b5   : > { %2550 = vsyncadd (%p2387_p10), %s2201_s0, 4294967040  ;;  %s19_s20 = sadd.s32 1, %s2573_s20   ;;  %s3334_s15 = smov %s2557_s16 }
 0x2b6   : > { %p16_p8 = scmp.ge.s32.totalorder %s19_s20, 4   ;;  %s3335_s16 = smov %s2561_s17 }
 0x2b7   : > { %s3336_s17 = smov %s2669_s30  ;;  %s3337_s18 = smov %s2569_s19 }
 0x2b8   : > { %s3338_s19 = smov %s3340_s23  ;;  %18 = sbr.rel (!%p16_p8) target bundleno = 8 (0x8), region = 99 }
 0x2bd   :  { %2206 = vsyncpa [#allocation5], 1 }
 0x2be   :  { %2208 = vsyncpa [#allocation5 + $0x1], 1 }
 0x2bf   :  { %2209 = vsyncpa [#allocation6], 1 }
 0x2c0   :  { %2211 = vsyncpa [#allocation6 + $0x1], 1 }
 0x2c1   :  { %2212 = vsyncpa [#allocation7], 1 }
 0x2c2   :  { %2214 = vsyncpa [#allocation7 + $0x1], 1 }

// kernel: tpu_custom_call.1
= control target key start
LH: loop header
LB: loop body
LE: loop exit
PB: predicated region body
PF: predicated region fallthrough
CT: control target
= control target key end

     0   :  { %s3333_s0 = inlined_call_operand.vmem [shape: f32[2,15], index: 0, kind: input, shape index: {}]   ;;  %s3334_s1 = inlined_call_operand.vmem [shape: f32[2,3,512], index: 1, kind: input, shape index: {}]   ;;  %s3335_s2 = inlined_call_operand.vmem [shape: f32[2,24,64], index: 2, kind: input, shape index: {}]   ;;  %s3336_s3 = inlined_call_operand.hbm [shape: f32[2,32,64], index: 3, kind: input, shape index: {}]   ;;  %s3337_s4 = inlined_call_operand.hbm [shape: f32[2,4,512], index: 4, kind: output, shape index: {}]  }
   0x1   :  { %3341 = sst [smem:[#allocation14_spill]] %s3333_s0 }
   0x2   :  { %3342 = sst [smem:[#allocation15_spill]] %s3336_s3 }
   0x3   :  { %9 = vsyncpa [#allocation7], 0 }
   0x4   :  { %10 = vsyncpa [#allocation5], 0 }
   0x5   :  { %12 = vsyncpa [#allocation5 + $0x1], 0 }
   0x6   :  { %13 = vsyncpa [#allocation6], 0 }
   0x7   :  { %15 = vsyncpa [#allocation6 + $0x1], 0  ;;  %s2633_s15 = smov 0   ;;  %s2635_s16 = smov 0  }
   0x8   :  { %s2637_s17 = smov 0   ;;  %s2639_s18 = smov 0  }
   0x9   :  { %s2641_s19 = smov 0   ;;  %s2643_s20 = smov 0  }
   0xa LB: > { %3343 = sst [smem:[#allocation13_spill]] %s2599_s20  ;;  %s2333_s21 = sadd.s32 4294967295, %s2599_s20   ;;  %s2599_s20 = sphi %s2643_s20, %s21_s20   ;;  %s2595_s19 = sphi %s2641_s19, %s3371_s19   ;;  %s2591_s18 = sphi %s2639_s18, %s3370_s18   ;;  %s2587_s17 = sphi %s2637_s17, %s3369_s17   ;;  %s2583_s16 = sphi %s2635_s16, %s3368_s16   ;;  %s2579_s15 = sphi %s2633_s15, %s3367_s15  }
   0xb   : > { %s2334_s22 = sadd.s32 4294967294, %s2599_s20   ;;  %s124_s23 = sadd.s32 1, %s2587_s17 }
   0xc   : > { %p131_p0 = scmp.ne.s32.totalorder %s2587_s17, %s2583_s16  ;;  %p132_p1 = scmp.eq.s32.totalorder %s2599_s20, 0 }
   0xd   : > { %p137_p2 = scmp.ne.s32.totalorder %s2583_s16, %s2579_s15  ;;  %p2671_p3 = scmp.eq.s32.totalorder %s2333_s21, 0 }
   0xe   : > { %p163_p4 = scmp.eq.s32.totalorder %s2333_s21, 1  ;;  %p2675_p5 = por %p132_p1, %p131_p0 }
   0xf   : > { %p169_p6 = scmp.eq.s32.totalorder %s2334_s22, 1  ;;  %p2681_p7 = por %p2671_p3, %p137_p2 }
  0x10   : > { %p2685_p8 = por %p163_p4, %p131_p0  ;;  %p2335_p10 = scmp.ge.s32.totalorder %s2599_s20, 1 }
  0x11   : > { %p2689_p9 = por %p169_p6, %p137_p2  ;;  %p176_p11 = scmp.lt.s32.totalorder %s2599_s20, 3 }
  0x12   : > { %s3347_s27 = scalar_select %p2685_p8, 1, 0 }
  0x13   : > { %s3348_s28 = scalar_select %p2689_p9, 1, 0 }
  0x14   : > { %s3349_s0 = sld [smem:[#allocation14_spill]]  ;;  %p2698_p12 = pnand %p2335_p10, %p176_p11 }
  0x15   : > { %p2416_p0 = scmp.lt.s32.totalorder %s2599_s20, 2  ;;  %s40_s9 = sadd.s32 1, %s2595_s19 }
  0x16   : > { %p2403_p1 = pneg %p2698_p12  ;;  %p2719_p6 = scmp.ge.s32.totalorder %s40_s9, 2 }
  0x17   : > { %p2708_p2 = pnand %p2416_p0, %p2675_p5  ;;  %s221_s11 = sand.u32 1, %s2587_s17  }
  0x18   : > { %p2714_p4 = pnand %p2403_p1, %p2671_p3 }
  0x1a   : > { %s189_s5 = sshll.u32 %s3349_s0, 4  ;;  %p2474_p11 = pneg %p2714_p4  ;;  %s190_s5 = int_to_ptr.vmem [resolvable:$true] %s189_s5 }
  0x1b   : > { %s2472_s12 = scalar_lea.vmem %s190_s5, 32  ;;  %p2480_p13 = scmp.lt.s32.totalorder %s190_s5, %s190_s5 }
  0x1c   : > { %p2473_p10 = scmp.ne.s32.totalorder %s190_s5, %s2472_s12  ;;  %p2481_p9 = scmp.lt.s32.totalorder %s2472_s12, %s2472_s12 }
  0x1e   : > { %p2475_p5 = pnand %p2474_p11, %p2473_p10  ;;  %p2482_p8 = por %p2481_p9, %p2480_p13 }
  0x20   : > { %p2476_p0 = pneg %p2475_p5 }
  0x22   : > { %p2483_p1 = pnand %p2482_p8, %p2476_p0 }
  0x24   : > { %2486 = shalt.err (!%p2483_p1)
}
  0x25   : > { %s2601_s13 = smov [#allocation4]   ;;  %s3373_s9 = smov (%p2719_p6, %s40_s9), 0 }
  0x26   : > { %2406 = dma.vmem_to_smem (!%p2714_p4), %s190_s5, 32, %s2601_s13, [#allocation7]  }
  0x27   : > { %s2338_s14 = sshll.u32 %s221_s11, 5  ;;  %s119_s21 = ssub.s32 %s2595_s19, %s3373_s9 }
  0x28   : > { %p122_p10 = scmp.eq.s32.totalorder %s119_s21, 0  ;;  %s2391_s22 = sshll.u32 %s2595_s19, 9 }
  0x29   : > { %s3354_s3 = sld [smem:[#allocation15_spill]]  ;;  %s225_s8 = scalar_lea.vmem [#allocation8], %s2338_s14 }
  0x2a   : > { %s233_s12 = sshll.u32 %s225_s8, 4  ;;  %s222_s20 = scalar_lea.sflag [#allocation5], %s221_s11  ;;  %s234_s12 = int_to_ptr.vmem [resolvable:$true] %s233_s12 }
  0x2b   : > { %s2741_s0 = scalar_select %p122_p10, %s2587_s17, %s124_s23  }
  0x2c   : > { %p2489_p8 = pneg %p2708_p2  ;;  %s2500_s5 = scalar_lea.vmem %s234_s12, 512 }
  0x2d   : > { %p2501_p9 = scmp.ne.s32.totalorder %s234_s12, %s2500_s5  ;;  %s2602_s10 = smov [#allocation8]  }
  0x2e   : > { %s2505_s13 = sshll.u32 %s2602_s10, 4  ;;  %s2506_s13 = int_to_ptr.vmem [resolvable:$false] %s2505_s13 }
  0x2f   : > { %s232_s30 = scalar_lea.hbm %s3354_s3, %s2391_s22  ;;  %p2503_p13 = pnand %p2501_p9, %p2489_p8 }
  0x30   : > { %s2507_s21 = scalar_lea.vmem %s2506_s13, 1024  ;;  %p2508_p6 = scmp.lt.s32.totalorder %s234_s12, %s2506_s13 }
  0x31   : > { %p2504_p4 = pneg %p2503_p13  ;;  %p2509_p11 = scmp.lt.s32.totalorder %s2507_s21, %s2500_s5 }
  0x33   : > { %p2510_p5 = por %p2509_p11, %p2508_p6 }
  0x35   : > { %p2511_p0 = pnand %p2510_p5, %p2504_p4 }
  0x37   : > { %2514 = shalt.err (!%p2511_p0)
}
  0x38   : > { %s2603_s14 = smov 128   ;;  %s2604_s23 = smov 8  }
  0x39   : > { %2410 = dma.hbm_to_vmem [thread:$0]  (!%p2708_p2), %s232_s30, 512, %s234_s12, %s222_s20, %s2603_s14, %s2603_s14, %s2604_s23  }
  0x3a   : > { %245 = sbr.rel (%p2698_p12) target bundleno = 680 (0x2a8), region = 36 }
  0x3f   : > { %2566 = dma.done.wait (%p2671_p3), [#allocation7], 32  }
  0x40   : > { %2568 = vsyncadd (%p2671_p3), [#allocation7], 4294967264  ;;  %s2754_s11 = sand.u32 1, %s2583_s16  }
  0x41   : > { %s2343_s22 = sshll.u32 %s2754_s11, 5  ;;  %s252_s25 = scalar_lea.sflag [#allocation5], %s2754_s11 }
  0x42   : > { %s2758_s29 = scalar_lea.vmem [#allocation8], %s2343_s22 }
  0x43   : > { %2570 = dma.done.wait (%p2681_p7), %s252_s25, 512  }
  0x44   : > { %2572 = vsyncadd (%p2681_p7), %s252_s25, 4294966784 }
  0x45   : > { %260 = sfence }
  0x46   : > { %p296_p3 = scmp.lt.s32.totalorder %s2591_s18, 1  ;;  %s2766_s20 = sshll.u32 %s2591_s18, 7  ;;  %v2605_v0 = vmov 0.0   ;;  %v503_v1 = vlaneseq }
  0x47   : > { %s2769_s24 = sld [smem:[#allocation4 + %s2766_s20]]  ;;  %s338_s6 = sadd.s32 1, %s2766_s20  ;;  %1018 = vmatprep.mubr.f32.mxu0 %v2605_v0  ;;  %1101 = vmatprep.mubr.f32.mxu1 %v2605_v0 }
  0x48   : > { %s2775_s26 = scalar_select %p296_p3, %s2591_s18, 1  ;;  %v2806_v7 = vshrl.u32 %v503_v1, 7 }
  0x49   : > { %s339_s7 = sld [smem:[#allocation4 + %s338_s6]]  ;;  %s343_s30 = sadd.s32 2, %s2766_s20 }
  0x4a   : > { %s2392_s8 = sshll.u32 %s2775_s26, 4  ;;  %s2779_s12 = sld [smem:[#allocation4 + %s343_s30]]  ;;  %v2827_v21 = vsub.s32 0, %v2806_v7 }
  0x4b   : > { %s303_s13 = scalar_lea.vmem %s3334_s1, %s2392_s8  ;;  %s348_s21 = sadd.s32 6, %s2766_s20 }
  0x4c   : > { %s2785_s14 = sld [smem:[#allocation4 + %s348_s21]]  ;;  %s353_s23 = sadd.s32 7, %s2766_s20  ;;  %v331_v2 = vld [vmem:[%s303_s13] sm:$0x77]  ;;  %v332_v3 = vld [vmem:[%s303_s13 + $0x8] sm:$0x77] }
  0x4d   : > { %s2788_s22 = sld [smem:[#allocation4 + %s353_s23]]  ;;  %s368_s25 = sadd.s32 8, %s2766_s20  ;;  %v335_v4 = vstv %s2769_s24 }
  0x4e   : > { %s2791_s6 = sld [smem:[#allocation4 + %s368_s25]]  ;;  %s383_s3 = sadd.s32 3, %s2766_s20  ;;  %v336_v8 = vsub.f32 %v331_v2, %v335_v4  ;;  %v337_v12 = vsub.f32 %v332_v3, %v335_v4 }
  0x4f   : > { %v340_v5 = vstv %s339_s7  ;;  %s2795_s30 = sld [smem:[#allocation4 + %s383_s3]]  ;;  %s388_s8 = sadd.s32 9, %s2766_s20 }
  0x50   : > { %v345_v6 = vstv %s2779_s12  ;;  %s2799_s5 = sld [smem:[#allocation4 + %s388_s8]]  ;;  %s393_s10 = sadd.s32 10, %s2766_s20  ;;  %v341_v9 = vsub.f32 %v331_v2, %v340_v5  ;;  %v2808_v10 = vsub.f32 %v332_v3, %v340_v5 }
  0x51   : > { %s2802_s21 = sld [smem:[#allocation4 + %s393_s10]]  ;;  %s408_s23 = sadd.s32 11, %s2766_s20  ;;  %v346_v13 = vsub.f32 %v331_v2, %v345_v6  ;;  %v347_v19 = vsub.f32 %v332_v3, %v345_v6 }
  0x52   : > { %v350_v11 = vstv %s2785_s14  ;;  %s2811_s3 = sld [smem:[#allocation4 + %s408_s23]]  ;;  %s423_s24 = sadd.s32 4, %s2766_s20 }
  0x53   : > { %v355_v14 = vstv %s2788_s22  ;;  %s2815_s7 = sld [smem:[#allocation4 + %s423_s24]]  ;;  %s428_s12 = sadd.s32 12, %s2766_s20  ;;  %v351_v15 = vmul.f32 %v350_v11, %v336_v8  ;;  %v352_v22 = vmul.f32 %v350_v11, %v337_v12 }
  0x54   : > { %v356_v16 = vmul.f32 %v355_v14, %v341_v9  ;;  %v370_v17 = vstv %s2791_s6  ;;  %s2819_s13 = sld [smem:[#allocation4 + %s428_s12]]  ;;  %s433_s25 = sadd.s32 13, %s2766_s20  ;;  %v357_v18 = vmul.f32 %v355_v14, %v2808_v10 }
  0x55   : > { %v371_v20 = vmul.f32 %v370_v17, %v346_v13  ;;  %s2823_s14 = sld [smem:[#allocation4 + %s433_s25]]  ;;  %s448_s22 = sadd.s32 14, %s2766_s20  ;;  %v385_v24 = vstv %s2795_s30  ;;  %v372_v38 = vmul.f32 %v370_v17, %v347_v19 }
  0x56   : > { %v2349_v23 = vrot.slane %v356_v16, 9  ;;  %v390_v25 = vstv %s2799_s5  ;;  %s2831_s6 = sld [smem:[#allocation4 + %s448_s22]]  ;;  %s463_s8 = sadd.s32 5, %s2766_s20  ;;  %v2350_v26 = vrot.slane %v357_v18, 9 }
  0x57   : > { %v2351_v27 = vrot.slane %v371_v20, 10  ;;  %v391_v28 = vmul.f32 %v390_v25, %v336_v8  ;;  %v392_v29 = vmul.f32 %v390_v25, %v337_v12  ;;  %v395_v30 = vstv %s2802_s21  ;;  %s2837_s30 = sld [smem:[#allocation4 + %s463_s8]]  ;;  %s2394_s20 = smul.u32 24, %s2775_s26 }
  0x58   : > { %v366_v31 = vadd.f32 %v2349_v23, %v351_v15  ;;  %v396_v32 = vmul.f32 %v395_v30, %v341_v9  ;;  %v397_v33 = vmul.f32 %v395_v30, %v2808_v10  ;;  %v410_v34 = vstv %s2811_s3  ;;  %s2393_s21 = sshll.u32 %s2591_s18, 8  ;;  %s2189_s18 = scalar_lea.sflag [#allocation6], %s2754_s11 }
  0x59   : > { %v411_v35 = vmul.f32 %v410_v34, %v346_v13  ;;  %v412_v36 = vmul.f32 %v410_v34, %v347_v19  ;;  %v367_v37 = vadd.f32 %v2350_v26, %v352_v22  ;;  %v425_v51 = vstv %s2815_s7  ;;  %s309_s10 = scalar_lea.vmem %s3335_s2, %s2394_s20  ;;  %s3285_s12 = scalar_lea.hbm %s3337_s4, %s2393_s21 }
  0x5a   : > { %v381_v39 = vadd.f32 %v2351_v27, %v366_v31  ;;  %v2353_v40 = vrot.slane %v396_v32, 9  ;;  %v2354_v41 = vrot.slane %v397_v33, 9  ;;  %v430_v42 = vstv %s2819_s13  ;;  %p3363_p12 = scmp.ne.s32.totalorder %s3347_s27, 0  ;;  %s2607_s25 = smov [#allocation9]  }
  0x5b   : > { %v2355_v43 = vrot.slane %v411_v35, 10  ;;  %v2356_v44 = vrot.slane %v412_v36, 10  ;;  %v431_v45 = vmul.f32 %v430_v42, %v336_v8  ;;  %v435_v46 = vstv %s2823_s14  ;;  %s2519_s14 = sshll.u32 %s2607_s25, 4  ;;  %s2520_s14 = int_to_ptr.vmem [resolvable:$false] %s2519_s14 }
  0x5c   : > { %v386_v47 = vmul.f32 %v385_v24, %v381_v39  ;;  %v406_v48 = vadd.f32 %v2353_v40, %v391_v28  ;;  %v407_v49 = vadd.f32 %v2354_v41, %v392_v29  ;;  %v436_v50 = vmul.f32 %v435_v46, %v341_v9  ;;  %s2521_s22 = scalar_lea.vmem %s2520_s14, 512 }
  0x5d   : > { %v450_v52 = vstv %s2831_s6  ;;  %v2352_v53 = vrot.slane %v372_v38, 10  ;;  %v432_v54 = vmul.f32 %v430_v42, %v337_v12  ;;  %v465_v3 = vstv %s2837_s30 }
  0x5e   : > { %v421_v55 = vadd.f32 %v2355_v43, %v406_v48  ;;  %v422_v56 = vadd.f32 %v2356_v44, %v407_v49  ;;  %v2357_v57 = vrot.slane %v436_v50, 9  ;;  %v451_v58 = vmul.f32 %v450_v52, %v346_v13 }
  0x5f   : > { %vm468_vm0 = vcmp.gt.f32.partialorder %v386_v47, -1.0  ;;  %vm470_vm1 = vcmp.lt.f32.partialorder %v386_v47, 1.0  ;;  %v497_v59 = vadd.f32 1.0, %v386_v47  ;;  %v382_v60 = vadd.f32 %v2352_v53, %v367_v37 }
  0x60   : > { %v426_v61 = vmul.f32 %v425_v51, %v421_v55  ;;  %v427_v62 = vmul.f32 %v425_v51, %v422_v56  ;;  %v446_v63 = vadd.f32 %v2357_v57, %v431_v45  ;;  %v2359_v2 = vrot.slane %v451_v58, 10  ;;  %vm472_vm2 = vmand %vm468_vm0, %vm470_vm1 }
  0x61   : > { %v499_v4 = vmul.f32 4.0, %v497_v59  ;;  %v437_v5 = vmul.f32 %v435_v46, %v2808_v10  ;;  %v452_v6 = vmul.f32 %v450_v52, %v347_v19  ;;  %v387_v9 = vmul.f32 %v385_v24, %v382_v60 }
  0x62   : > { %v461_v8 = vadd.f32 %v2359_v2, %v446_v63  ;;  %vm474_vm3 = vcmp.gt.f32.partialorder %v426_v61, -1.0  ;;  %vm478_vm4 = vcmp.lt.f32.partialorder %v426_v61, 1.0  ;;  %v2846_v12 = vsub.s32 4, %v2806_v7 }
  0x63   : > { %vm476_vm5 = vmand %vm472_vm2, %vm474_vm3  ;;  %v2363_v11 = vadd.f32 -0.5, %v499_v4  ;;  %v560_v13 = vadd.f32 1.0, %v426_v61  ;;  %v561_v14 = vadd.f32 1.0, %v427_v62  ;;  %v2358_v16 = vrot.slane %v437_v5, 9 }
  0x64   : > { %v2848_v15 = vmul.f32 %v465_v3, %v461_v8  ;;  %vm480_vm6 = vmand %vm476_vm5, %vm478_vm4  ;;  %v2360_v17 = vrot.slane %v452_v6, 10  ;;  %vm469_vm7 = vcmp.gt.f32.partialorder %v387_v9, -1.0  ;;  %vm475_vm8 = vcmp.gt.f32.partialorder %v427_v62, -1.0 }
  0x65   : > { %v562_v10 = vmul.f32 4.0, %v560_v13  ;;  %v563_v18 = vmul.f32 4.0, %v561_v14  ;;  %vm471_vm9 = vcmp.lt.f32.partialorder %v387_v9, 1.0  ;;  %v447_v19 = vadd.f32 %v2358_v16, %v432_v54 }
  0x66   : > { %vm482_vm10 = vcmp.gt.f32.partialorder %v2848_v15, -1.0  ;;  %vm486_vm11 = vcmp.lt.f32.partialorder %v2848_v15, 1.0  ;;  %vm2852_vm12 = vmand %vm469_vm7, %vm471_vm9  ;;  %v498_v22 = vadd.f32 1.0, %v387_v9  ;;  %vm479_vm13 = vcmp.lt.f32.partialorder %v427_v62, 1.0 }
  0x67   : > { %vm484_vm14 = vmand %vm480_vm6, %vm482_vm10  ;;  %v515_v23 = vrot.slane %v2363_v11, %v2846_v12  ;;  %v2365_v24 = vadd.f32 -0.5, %v562_v10  ;;  %v2366_v25 = vadd.f32 -0.5, %v563_v18  ;;  %v462_v27 = vadd.f32 %v2360_v17, %v447_v19 }
  0x68   : > { %vm2857_vm15 = vmand %vm484_vm14, %vm486_vm11  ;;  %v500_v28 = vmul.f32 4.0, %v498_v22  ;;  %v2862_v29 = vcvt.s32.f32 %v2806_v7  ;;  %v2606_v32 = vmov 1966171168   ;;  %v511_v37 = vrot.slane %v2363_v11, %v2827_v21 }
  0x69   : > { %v571_v30 = vrot.slane %v2365_v24, %v2827_v21  ;;  %v575_v31 = vrot.slane %v2365_v24, %v2846_v12  ;;  %v689_v33 = vunpack.c.l.s4 %v2606_v32  ;;  %vm477_vm0 = vmand %vm2852_vm12, %vm475_vm8  ;;  %v579_v34 = vrot.slane %v2366_v25, %v2827_v21 }
  0x6a   : > { %v583_v35 = vrot.slane %v2366_v25, %v2846_v12  ;;  %v2871_v36 = vmul.f32 %v465_v3, %v462_v27  ;;  %vm481_vm1 = vmand %vm477_vm0, %vm479_vm13  ;;  %v535_v38 = vrot.slane %v515_v23, %v2827_v21  ;;  %v2364_v41 = vadd.f32 -0.5, %v500_v28 }
  0x6b   : > { %v591_v39 = vrot.slane %v571_v30, %v2827_v21  ;;  %v595_v40 = vrot.slane %v575_v31, %v2827_v21  ;;  %v599_v42 = vrot.slane %v579_v34, %v2827_v21  ;;  %v531_v50 = vrot.slane %v511_v37, %v2827_v21 }
  0x6c   : > { %v603_v43 = vrot.slane %v583_v35, %v2827_v21  ;;  %vm483_vm2 = vcmp.gt.f32.partialorder %v2871_v36, -1.0  ;;  %vm487_vm3 = vcmp.lt.f32.partialorder %v2871_v36, 1.0  ;;  %v523_v46 = vrot.slane %v2364_v41, %v2846_v12 }
  0x6d   : > { %v604_v44 = vsub.f32 %v591_v39, %v2862_v29  ;;  %v605_v45 = vsub.f32 %v595_v40, %v2862_v29  ;;  %vm485_vm4 = vmand %vm481_vm1, %vm483_vm2  ;;  %v606_v47 = vsub.f32 %v599_v42, %v2862_v29  ;;  %v519_v51 = vrot.slane %v2364_v41, %v2827_v21 }
  0x6e   : > { %v607_v48 = vsub.f32 %v603_v43, %v2862_v29  ;;  %vm2887_vm5 = vmand %vm485_vm4, %vm487_vm3  ;;  %v690_v54 = vunpack.c.0.s8 %v689_v33  ;;  %v545_v55 = vsub.f32 %v535_v38, %v2862_v29  ;;  %v543_v58 = vrot.slane %v523_v46, %v2827_v21 }
  0x6f   : > { %v608_v52 = vand.u32 2147483647, %v604_v44  ;;  %v609_v53 = vand.u32 2147483647, %v605_v45  ;;  %v610_v56 = vand.u32 2147483647, %v606_v47  ;;  %v544_v61 = vsub.f32 %v531_v50, %v2862_v29 }
  0x70   : > { %v611_v57 = vand.u32 2147483647, %v607_v48  ;;  %v539_v62 = vrot.slane %v519_v51, %v2827_v21  ;;  %v547_v3 = vsub.f32 %v543_v58, %v2862_v29  ;;  %v2899_v6 = vsub.s32 %v690_v54, %v2806_v7 }
  0x71   : > { %v612_v59 = vsub.f32 1.0, %v608_v52  ;;  %v613_v60 = vsub.f32 1.0, %v609_v53  ;;  %v614_v63 = vsub.f32 1.0, %v610_v56  ;;  %v549_v9 = vand.u32 2147483647, %v545_v55 }
  0x72   : > { %v615_v2 = vsub.f32 1.0, %v611_v57  ;;  %v546_v8 = vsub.f32 %v539_v62, %v2862_v29  ;;  %v548_v14 = vand.u32 2147483647, %v544_v61  ;;  %v551_v17 = vand.u32 2147483647, %v547_v3 }
  0x73   : > { %v616_v4 = vmax.f32 %v612_v59, 0.0  ;;  %v617_v5 = vmax.f32 %v613_v60, 0.0  ;;  %v618_v11 = vmax.f32 %v614_v63, 0.0  ;;  %v553_v24 = vsub.f32 1.0, %v549_v9 }
  0x74   : > { %v619_v13 = vmax.f32 %v615_v2, 0.0  ;;  %v550_v10 = vand.u32 2147483647, %v546_v8  ;;  %v552_v27 = vsub.f32 1.0, %v548_v14  ;;  %v555_v30 = vsub.f32 1.0, %v551_v17 }
  0x75   : > { %v685_v16 = vcombine.high %v616_v4, %v617_v5  ;;  %v684_v18 = vcombine.low %v616_v4, %v617_v5  ;;  %v2907_v37 = vsub.s32 1, %v2806_v7  ;;  %v2910_v38 = vsub.s32 2, %v2806_v7 }
  0x76   : > { %v687_v19 = vcombine.high %v618_v11, %v619_v13  ;;  %v686_v20 = vcombine.low %v618_v11, %v619_v13  ;;  %v554_v31 = vsub.f32 1.0, %v550_v10  ;;  %v2913_v39 = vsub.s32 3, %v2806_v7 }
  0x77   : > { %v701_v22 = vrot.slane %v685_v16, %v2899_v6  ;;  %v694_v23 = vrot.slane %v684_v18, %v2899_v6  ;;  %v2915_v40 = vmax.f32 %v553_v24, 0.0  ;;  %v2918_v42 = vmax.f32 %v552_v27, 0.0 }
  0x78   : > { %v715_v25 = vrot.slane %v687_v19, %v2899_v6  ;;  %v708_v28 = vrot.slane %v686_v20, %v2899_v6  ;;  %v2921_v44 = vmax.f32 %v555_v30, 0.0  ;;  %v2923_v45 = vmax.f32 %v554_v31, 0.0 }
  0x79   : > { %vm944_vm6 = vcmask 523264   ;;  %vm3051_vm7 = vcmp.lt.s32.totalorder %v503_v1, 512  ;;  %vm2161_vm8 = vcmask 1041409   ;;  %vm2163_vm9 = vcmask 1045509  }
  0x7a   : > { %v719_v32 = vcombine.high %v701_v22, %v715_v25  ;;  %v718_v33 = vcombine.low %v701_v22, %v715_v25  ;;  %v717_v34 = vcombine.high %v694_v23, %v708_v28  ;;  %v716_v35 = vcombine.low %v694_v23, %v708_v28 }
  0x7b   : > { %vm2166_vm10 = vcmask 1042434   ;;  %vm2168_vm11 = vcmask 1046534   ;;  %vm2171_vm12 = vcmask 1043459   ;;  %vm2173_vm13 = vcmask 1047559  }
  0x7c   : > { %v747_v41 = vrot.slane %v719_v32, %v2899_v6  ;;  %v733_v43 = vrot.slane %v718_v33, %v2899_v6  ;;  %v2926_v46 = vrot.slane %v717_v34, %v2899_v6  ;;  %v2929_v47 = vrot.slane %v716_v35, %v2899_v6 }
  0x7e   : > { %v751_v7 = vcombine.high %v747_v41, %v747_v41  ;;  %v749_v48 = vcombine.high %v733_v43, %v733_v43  ;;  %v839_v50 = vrot.slane %v747_v41, %v2907_v37  ;;  %v847_v51 = vrot.slane %v747_v41, %v2913_v39 }
  0x7f   : > { %v835_v52 = vrot.slane %v747_v41, %v2827_v21  ;;  %v843_v53 = vrot.slane %v747_v41, %v2910_v38  ;;  %v823_v54 = vrot.slane %v733_v43, %v2907_v37  ;;  %v831_v55 = vrot.slane %v733_v43, %v2913_v39 }
  0x80   : > { %v871_v56 = vrot.slane %v751_v7, %v2907_v37  ;;  %v879_v57 = vrot.slane %v751_v7, %v2913_v39  ;;  %v867_v58 = vrot.slane %v751_v7, %v2827_v21  ;;  %v875_v59 = vrot.slane %v751_v7, %v2910_v38 }
  0x81   : > { %v855_v60 = vrot.slane %v749_v48, %v2907_v37  ;;  %v863_v61 = vrot.slane %v749_v48, %v2913_v39  ;;  %v851_v62 = vrot.slane %v749_v48, %v2827_v21  ;;  %v859_v63 = vrot.slane %v749_v48, %v2910_v38 }
  0x82   : > { %v941_v2 = vmul.f32 %v871_v56, %v2915_v40  ;;  %v943_v3 = vmul.f32 %v879_v57, %v2921_v44  ;;  %v940_v4 = vmul.f32 %v867_v58, %v2918_v42  ;;  %v942_v5 = vmul.f32 %v875_v59, %v2923_v45 }
  0x83   : > { %v937_v8 = vmul.f32 %v855_v60, %v2915_v40  ;;  %v939_v9 = vmul.f32 %v863_v61, %v2921_v44  ;;  %v936_v11 = vmul.f32 %v851_v62, %v2918_v42  ;;  %v938_v13 = vmul.f32 %v859_v63, %v2923_v45 }
  0x84   : > { %970 = vmatprep.subr.mxu0 %v941_v2  ;;  %1053 = vmatprep.subr.mxu1 %v943_v3  ;;  %v933_v14 = vmul.f32 %v839_v50, %v2915_v40  ;;  %v935_v16 = vmul.f32 %v847_v51, %v2921_v44  ;;  %v932_v17 = vmul.f32 %v835_v52, %v2918_v42 }
  0x85   : > { %971 = vmatpush1.msra.mxu0 %v940_v4  ;;  %1054 = vmatpush1.msra.mxu1 %v942_v5  ;;  %v934_v10 = vmul.f32 %v843_v53, %v2923_v45  ;;  %v929_v18 = vmul.f32 %v823_v54, %v2915_v40  ;;  %v931_v19 = vmul.f32 %v831_v55, %v2921_v44 }
  0x86   : > { %972 = vmatprep.subr.mxu0 %v937_v8  ;;  %1055 = vmatprep.subr.mxu1 %v939_v9  ;;  %v819_v20 = vrot.slane %v733_v43, %v2827_v21  ;;  %v827_v22 = vrot.slane %v733_v43, %v2910_v38  ;;  %v750_v23 = vcombine.high %v2926_v46, %v2926_v46 }
  0x87   : > { %973 = vmatpush1.msra.mxu0 %v936_v11  ;;  %1056 = vmatpush1.msra.mxu1 %v938_v13  ;;  %v748_v24 = vcombine.high %v2929_v47, %v2929_v47  ;;  %v775_v25 = vrot.slane %v2926_v46, %v2907_v37  ;;  %v783_v27 = vrot.slane %v2926_v46, %v2913_v39  ;;  %v494_v11 = vld [vmem:[%s309_s10] sm:$0xff] }
  0x88   : > { %974 = vmatprep.subr.mxu0 %v933_v14  ;;  %1057 = vmatprep.subr.mxu1 %v935_v16  ;;  %v928_v28 = vmul.f32 %v819_v20, %v2918_v42  ;;  %v930_v30 = vmul.f32 %v827_v22, %v2923_v45  ;;  %v807_v31 = vrot.slane %v750_v23, %v2907_v37 }
  0x89   : > { %975 = vmatpush1.msra.mxu0 %v932_v17  ;;  %1058 = vmatpush1.msra.mxu1 %v934_v10  ;;  %v815_v32 = vrot.slane %v750_v23, %v2913_v39  ;;  %v803_v33 = vrot.slane %v750_v23, %v2827_v21  ;;  %v811_v34 = vrot.slane %v750_v23, %v2910_v38 }
  0x8a   : > { %976 = vmatprep.subr.mxu0 %v929_v18  ;;  %1059 = vmatprep.subr.mxu1 %v931_v19  ;;  %v925_v35 = vmul.f32 %v807_v31, %v2915_v40  ;;  %v791_v41 = vrot.slane %v748_v24, %v2907_v37  ;;  %v799_v43 = vrot.slane %v748_v24, %v2913_v39 }
  0x8b   : > { %977 = vmatpush1.msra.mxu0 %v928_v28  ;;  %1060 = vmatpush1.msra.mxu1 %v930_v30  ;;  %v927_v7 = vmul.f32 %v815_v32, %v2921_v44  ;;  %v924_v48 = vmul.f32 %v803_v33, %v2918_v42  ;;  %v926_v50 = vmul.f32 %v811_v34, %v2923_v45 }
  0x8c   : > { %978 = vmatprep.subr.mxu0 %v925_v35  ;;  %v921_v51 = vmul.f32 %v791_v41, %v2915_v40  ;;  %v923_v52 = vmul.f32 %v799_v43, %v2921_v44  ;;  %v787_v53 = vrot.slane %v748_v24, %v2827_v21  ;;  %v795_v54 = vrot.slane %v748_v24, %v2910_v38 }
  0x8d   : > { %1061 = vmatprep.subr.mxu1 %v927_v7  ;;  %979 = vmatpush1.msra.mxu0 %v924_v48  ;;  %v917_v55 = vmul.f32 %v775_v25, %v2915_v40  ;;  %v919_v56 = vmul.f32 %v783_v27, %v2921_v44  ;;  %v771_v57 = vrot.slane %v2926_v46, %v2827_v21  ;;  %v2361_v25 = vsel %vm2857_vm15, 1.0, %v2605_v0 }
  0x8e   : > { %1062 = vmatpush1.msra.mxu1 %v926_v50  ;;  %980 = vmatprep.subr.mxu0 %v921_v51  ;;  %v920_v58 = vmul.f32 %v787_v53, %v2918_v42  ;;  %v922_v59 = vmul.f32 %v795_v54, %v2923_v45  ;;  %v779_v60 = vrot.slane %v2926_v46, %v2910_v38 }
  0x8f   : > { %1063 = vmatprep.subr.mxu1 %v923_v52  ;;  %v916_v61 = vmul.f32 %v771_v57, %v2918_v42  ;;  %v759_v62 = vrot.slane %v2929_v47, %v2907_v37  ;;  %v767_v63 = vrot.slane %v2929_v47, %v2913_v39  ;;  %v755_v2 = vrot.slane %v2929_v47, %v2827_v21 }
  0x90   : > { %981 = vmatpush1.msra.mxu0 %v920_v58  ;;  %1064 = vmatpush1.msra.mxu1 %v922_v59  ;;  %v918_v46 = vmul.f32 %v779_v60, %v2923_v45  ;;  %v763_v3 = vrot.slane %v2929_v47, %v2910_v38  ;;  %v1308_v32 = vrot.slane %v2361_v25, %v2899_v6 }
  0x91   : > { %982 = vmatprep.subr.mxu0 %v917_v55  ;;  %1065 = vmatprep.subr.mxu1 %v919_v56  ;;  %v913_v4 = vmul.f32 %v759_v62, %v2915_v40  ;;  %v915_v5 = vmul.f32 %v767_v63, %v2921_v44  ;;  %v912_v8 = vmul.f32 %v755_v2, %v2918_v42  ;;  %v495_v40 = vld [vmem:[%s309_s10 + $0x8] sm:$0xff]  ;;  %v496_v42 = vld [vmem:[%s309_s10 + $0x10] sm:$0xff]  ;;  %v620_v44 = vadd.f32 1.0, %v2848_v15 }
  0x92   : > { %983 = vmatpush1.msra.mxu0 %v916_v61  ;;  %1066 = vmatpush1.msra.mxu1 %v918_v46  ;;  %v914_v9 = vmul.f32 %v763_v3, %v2923_v45  ;;  %v621_v45 = vadd.f32 1.0, %v2871_v36 }
  0x93   : > { %984 = vmatprep.subr.mxu0 %v913_v4  ;;  %1067 = vmatprep.subr.mxu1 %v915_v5  ;;  %v622_v47 = vmul.f32 4.0, %v620_v44 }
  0x94   : > { %985 = vmatpush1.msra.mxu0 %v912_v8  ;;  %1068 = vmatpush1.msra.mxu1 %v914_v9  ;;  %v623_v13 = vmul.f32 4.0, %v621_v45 }
  0x95   : > { %2369 = vmatmul.mubr.msk.f32.vlgmr.msra.gmra.mxu0 %vm944_vm6, %v494_v11  ;;  %2372 = vmatmul.mubr.msk.f32.vlgmr.msra.gmra.mxu1 %vm944_vm6, %v494_v11  ;;  %v2367_v14 = vadd.f32 -0.5, %v622_v47 }
  0x96   : > { %1024 = vmatprep.mubr.f32.mxu0 %v2605_v0  ;;  %1107 = vmatprep.mubr.f32.mxu1 %v2605_v0  ;;  %v2368_v16 = vadd.f32 -0.5, %v623_v13 }
  0x97   : > { %v631_v17 = vrot.slane %v2367_v14, %v2827_v21  ;;  %v635_v18 = vrot.slane %v2367_v14, %v2846_v12 }
  0x98   : > { %v639_v10 = vrot.slane %v2368_v16, %v2827_v21  ;;  %v643_v19 = vrot.slane %v2368_v16, %v2846_v12  ;;  %v2362_v12 = vsel %vm2887_vm5, 1.0, %v2605_v0 }
  0x99   : > { %2370 = vmatmul.mubr.msk.f32.gmra.mxu0 %vm944_vm6, %v495_v40  ;;  %2373 = vmatmul.mubr.msk.f32.gmra.mxu1 %vm944_vm6, %v495_v40  ;;  %v651_v20 = vrot.slane %v631_v17, %v2827_v21  ;;  %v655_v15 = vrot.slane %v635_v18, %v2827_v21  ;;  %v1315_v33 = vrot.slane %v2362_v12, %v2899_v6 }
  0x9a   : > { %1030 = vmatprep.mubr.f32.mxu0 %v2605_v0  ;;  %1113 = vmatprep.mubr.f32.mxu1 %v2605_v0  ;;  %v659_v22 = vrot.slane %v639_v10, %v2827_v21  ;;  %v663_v36 = vrot.slane %v643_v19, %v2827_v21 }
  0x9b   : > { %v664_v23 = vsub.f32 %v651_v20, %v2862_v29  ;;  %v665_v27 = vsub.f32 %v655_v15, %v2862_v29  ;;  %v1316_v26 = vcombine.low %v1308_v32, %v1315_v33 }
  0x9c   : > { %v666_v24 = vsub.f32 %v659_v22, %v2862_v29  ;;  %v667_v28 = vsub.f32 %v663_v36, %v2862_v29 }
  0x9d   : > { %2371 = vmatmul.mubr.msk.f32.gmra.mxu0 %vm944_vm6, %v496_v42  ;;  %2374 = vmatmul.mubr.msk.f32.gmra.mxu1 %vm944_vm6, %v496_v42  ;;  %v668_v30 = vand.u32 2147483647, %v664_v23  ;;  %v669_v34 = vand.u32 2147483647, %v665_v27  ;;  %v1323_v49 = vrot.slane %v1316_v26, %v2899_v6 }
  0x9e   : > { %1778 = vmatprep.mubr.f32.mxu0 %v2605_v0  ;;  %1867 = vmatprep.mubr.f32.mxu1 %v2605_v0  ;;  %v670_v31 = vand.u32 2147483647, %v666_v24  ;;  %v671_v35 = vand.u32 2147483647, %v667_v28 }
  0x9f   : > { %v672_v41 = vsub.f32 1.0, %v668_v30  ;;  %v673_v7 = vsub.f32 1.0, %v669_v34  ;;  %1326 = vst.msk [vmem:[#allocation3 + $0x3] ss:$4 sm:$0xf] %vm3051_vm7, %v1323_v49 }
  0xa0   : > { %v674_v43 = vsub.f32 1.0, %v670_v31  ;;  %v675_v48 = vsub.f32 1.0, %v671_v35 }
  0xa1   : > { %v3046_v50 = vmax.f32 %v672_v41, 0.0  ;;  %v3057_v53 = vmax.f32 %v673_v7, 0.0 }
  0xa2   : > { %v3048_v51 = vmax.f32 %v674_v43, 0.0  ;;  %v3059_v54 = vmax.f32 %v675_v48, 0.0 }
 0x155   : > { %v1020_v55 = vpop.f32.mrf.mxu0  ;;  %v1103_v56 = vpop.f32.mrf.mxu1 }
 0x156   : > { %v1120_v57 = vmul.f32 %v1020_v55, %v3046_v50  ;;  %v1122_v58 = vmul.f32 %v1103_v56, %v3048_v51 }
 0x157   : > { %v1022_v59 = vpop.f32.mrf.mxu0  ;;  %v1105_v60 = vpop.f32.mrf.mxu1 }
 0x158   : > { %v1132_v61 = vrot.slane %v1120_v57, 4  ;;  %v1144_v1 = vrot.slane %v1122_v58, 4  ;;  %v1121_v62 = vmul.f32 %v1022_v59, %v3057_v53  ;;  %v1123_v63 = vmul.f32 %v1105_v60, %v3059_v54 }
 0x159   : > { %v1026_v2 = vpop.f32.mrf.mxu0  ;;  %v1109_v46 = vpop.f32.mrf.mxu1 }
 0x15a   : > { %v1133_v3 = vadd.f32 %v1132_v61, %v1120_v57  ;;  %v1145_v4 = vadd.f32 %v1144_v1, %v1122_v58  ;;  %v1138_v5 = vrot.slane %v1121_v62, 4  ;;  %v1150_v8 = vrot.slane %v1123_v63, 4 }
 0x15b   : > { %v1124_v9 = vmul.f32 %v1026_v2, %v3046_v50  ;;  %v1126_v11 = vmul.f32 %v1109_v46, %v3048_v51  ;;  %v1028_v40 = vpop.f32.mrf.mxu0  ;;  %v1111_v42 = vpop.f32.mrf.mxu1 }
 0x15c   : > { %v1134_v44 = vrot.slane %v1133_v3, 2  ;;  %v1146_v45 = vrot.slane %v1145_v4, 2  ;;  %v1139_v47 = vadd.f32 %v1138_v5, %v1121_v62  ;;  %v1151_v13 = vadd.f32 %v1150_v8, %v1123_v63 }
 0x15d   : > { %v1156_v14 = vrot.slane %v1124_v9, 4  ;;  %v1168_v16 = vrot.slane %v1126_v11, 4  ;;  %v1125_v17 = vmul.f32 %v1028_v40, %v3057_v53  ;;  %v1127_v10 = vmul.f32 %v1111_v42, %v3059_v54 }
 0x15e   : > { %v1135_v18 = vadd.f32 %v1134_v44, %v1133_v3  ;;  %v1147_v19 = vadd.f32 %v1146_v45, %v1145_v4  ;;  %v1140_v20 = vrot.slane %v1139_v47, 2  ;;  %v1152_v22 = vrot.slane %v1151_v13, 2 }
 0x15f   : > { %v1157_v15 = vadd.f32 %v1156_v14, %v1124_v9  ;;  %v1169_v36 = vadd.f32 %v1168_v16, %v1126_v11  ;;  %v1162_v23 = vrot.slane %v1125_v17, 4  ;;  %v1174_v24 = vrot.slane %v1127_v10, 4 }
 0x160   : > { %v1136_v25 = vrot.slane %v1135_v18, 1  ;;  %v1148_v12 = vrot.slane %v1147_v19, 1  ;;  %v1141_v27 = vadd.f32 %v1140_v20, %v1139_v47  ;;  %v1153_v28 = vadd.f32 %v1152_v22, %v1151_v13 }
 0x161   : > { %v1158_v30 = vrot.slane %v1157_v15, 2  ;;  %v1170_v31 = vrot.slane %v1169_v36, 2  ;;  %v1163_v32 = vadd.f32 %v1162_v23, %v1125_v17  ;;  %v1175_v33 = vadd.f32 %v1174_v24, %v1127_v10 }
 0x162   : > { %v1142_v34 = vrot.slane %v1141_v27, 1  ;;  %v1154_v35 = vrot.slane %v1153_v28, 1  ;;  %v1137_v48 = vadd.f32 %v1136_v25, %v1135_v18  ;;  %v1149_v49 = vadd.f32 %v1148_v12, %v1147_v19 }
 0x163   : > { %v1159_v41 = vadd.f32 %v1158_v30, %v1157_v15  ;;  %v1171_v43 = vadd.f32 %v1170_v31, %v1169_v36  ;;  %v1164_v26 = vrot.slane %v1163_v32, 2  ;;  %v1176_v7 = vrot.slane %v1175_v33, 2 }
 0x164   : > { %v1143_v55 = vadd.f32 %v1142_v34, %v1141_v27  ;;  %v1155_v56 = vadd.f32 %v1154_v35, %v1153_v28 }
 0x165   : > { %v1160_v57 = vrot.slane %v1159_v41, 1  ;;  %v1172_v58 = vrot.slane %v1171_v43, 1  ;;  %v1165_v59 = vadd.f32 %v1164_v26, %v1163_v32  ;;  %v1177_v60 = vadd.f32 %v1176_v7, %v1175_v33 }
 0x166   : > { %v1208_v61 = vcombine.low %v1137_v48, %v1143_v55  ;;  %v1209_v1 = vcombine.low %v1149_v49, %v1155_v56 }
 0x167   : > { %v1166_v62 = vrot.slane %v1165_v59, 1  ;;  %v1178_v63 = vrot.slane %v1177_v60, 1  ;;  %v1161_v3 = vadd.f32 %v1160_v57, %v1159_v41  ;;  %v1173_v4 = vadd.f32 %v1172_v58, %v1171_v43 }
 0x168   : > { %v1216_v2 = vrot.slane %v1208_v61, %v2899_v6  ;;  %v1223_v46 = vrot.slane %v1209_v1, %v2899_v6 }
 0x169   : > { %v1167_v5 = vadd.f32 %v1166_v62, %v1165_v59  ;;  %v1179_v8 = vadd.f32 %v1178_v63, %v1177_v60 }
 0x16a   : > { %v1224_v9 = vcombine.low %v1216_v2, %v1223_v46 }
 0x16b   : > { %v1242_v11 = vcombine.low %v1161_v3, %v1167_v5  ;;  %v1243_v40 = vcombine.low %v1173_v4, %v1179_v8 }
 0x16c   : > { %v1231_v42 = vrot.slane %v1224_v9, %v2899_v6 }
 0x16d   : > { %v1250_v44 = vrot.slane %v1242_v11, %v2899_v6  ;;  %v1257_v45 = vrot.slane %v1243_v40, %v2899_v6 }
 0x16e   : > { %1237 = vst.msk [vmem:[#allocation3] ss:$4 sm:$0xf] %vm3051_vm7, %v1231_v42 }
 0x16f   : > { %v1258_v47 = vcombine.low %v1250_v44, %v1257_v45 }
 0x171   : > { %v1265_v13 = vrot.slane %v1258_v47, %v2899_v6 }
 0x173   : > { %1268 = vst.msk [vmem:[#allocation3 + $0x1] ss:$4 sm:$0xf] %vm3051_vm7, %v1265_v13 }
 0x175   : > { %v1327_v14 = vld [vmem:[#allocation3] ss:$4 sm:$0xf] }
 0x176   : > { %v1330_v16 = vadd.f32 1.0, %v1327_v14 }
 0x178   : > { %v1331_v10 = vmul.f32 4.0, %v1330_v16 }
 0x17a   : > { %v1329_v17 = vld [vmem:[#allocation3 + $0x1] ss:$4 sm:$0xf]  ;;  %v2375_v20 = vadd.f32 -0.5, %v1331_v10 }
 0x17b   : > { %v1373_v18 = vadd.f32 1.0, %v1329_v17 }
 0x17c   : > { %v1344_v25 = vrot.slane %v2375_v20, %v2907_v37  ;;  %v1352_v12 = vrot.slane %v2375_v20, %v2913_v39  ;;  %v1340_v27 = vrot.slane %v2375_v20, %v2827_v21  ;;  %v1348_v28 = vrot.slane %v2375_v20, %v2910_v38 }
 0x17d   : > { %v1374_v19 = vmul.f32 4.0, %v1373_v18 }
 0x17e   : > { %v1358_v43 = vsub.f32 %v1344_v25, %v2862_v29  ;;  %v1360_v7 = vsub.f32 %v1352_v12, %v2862_v29  ;;  %v1357_v48 = vsub.f32 %v1340_v27, %v2862_v29  ;;  %v1359_v57 = vsub.f32 %v1348_v28, %v2862_v29 }
 0x17f   : > { %v2376_v22 = vadd.f32 -0.5, %v1374_v19 }
 0x180   : > { %v1362_v1 = vand.u32 2147483647, %v1358_v43  ;;  %v1364_v63 = vand.u32 2147483647, %v1360_v7  ;;  %v1361_v46 = vand.u32 2147483647, %v1357_v48 }
 0x181   : > { %v1384_v15 = vrot.slane %v2376_v22, %v2827_v21  ;;  %v1388_v36 = vrot.slane %v2376_v22, %v2907_v37  ;;  %v1392_v23 = vrot.slane %v2376_v22, %v2910_v38  ;;  %v1396_v24 = vrot.slane %v2376_v22, %v2913_v39 }
 0x182   : > { %v1363_v3 = vand.u32 2147483647, %v1359_v57  ;;  %v1366_v40 = vsub.f32 1.0, %v1362_v1  ;;  %v1368_v45 = vsub.f32 1.0, %v1364_v63  ;;  %v1365_v47 = vsub.f32 1.0, %v1361_v46 }
 0x183   : > { %v1401_v30 = vsub.f32 %v1384_v15, %v2862_v29  ;;  %v1402_v31 = vsub.f32 %v1388_v36, %v2862_v29  ;;  %v1403_v32 = vsub.f32 %v1392_v23, %v2862_v29  ;;  %v1404_v33 = vsub.f32 %v1396_v24, %v2862_v29 }
 0x184   : > { %v1367_v13 = vsub.f32 1.0, %v1363_v3  ;;  %v3099_v18 = vmax.f32 %v1366_v40, 0.0  ;;  %v3103_v22 = vmax.f32 %v1368_v45, 0.0  ;;  %v3105_v15 = vmax.f32 %v1365_v47, 0.0 }
 0x185   : > { %v1405_v34 = vand.u32 2147483647, %v1401_v30  ;;  %v1406_v35 = vand.u32 2147483647, %v1402_v31  ;;  %v1407_v41 = vand.u32 2147483647, %v1403_v32 }
 0x186   : > { %v1408_v26 = vand.u32 2147483647, %v1404_v33  ;;  %v3107_v36 = vmax.f32 %v1367_v13, 0.0 }
 0x187   : > { %v1409_v49 = vsub.f32 1.0, %v1405_v34  ;;  %v1410_v55 = vsub.f32 1.0, %v1406_v35  ;;  %v1411_v56 = vsub.f32 1.0, %v1407_v41 }
 0x188   : > { %v1412_v58 = vsub.f32 1.0, %v1408_v26 }
 0x189   : > { %v1413_v59 = vmax.f32 %v1409_v49, 0.0  ;;  %v1414_v60 = vmax.f32 %v1410_v55, 0.0  ;;  %v1415_v61 = vmax.f32 %v1411_v56, 0.0 }
 0x18a   : > { %v1416_v62 = vmax.f32 %v1412_v58, 0.0 }
 0x18b   : > { %v1422_v2 = vcombine.high %v1413_v59, %v1414_v60  ;;  %v1421_v4 = vcombine.low %v1413_v59, %v1414_v60 }
 0x18c   : > { %v1424_v5 = vcombine.high %v1415_v61, %v1416_v62  ;;  %v1423_v8 = vcombine.low %v1415_v61, %v1416_v62 }
 0x18d   : > { %v1438_v9 = vrot.slane %v1422_v2, %v2899_v6  ;;  %v1431_v11 = vrot.slane %v1421_v4, %v2899_v6 }
 0x18e   : > { %v1452_v42 = vrot.slane %v1424_v5, %v2899_v6  ;;  %v1445_v44 = vrot.slane %v1423_v8, %v2899_v6 }
 0x190   : > { %v1456_v14 = vcombine.high %v1438_v9, %v1452_v42  ;;  %v1455_v16 = vcombine.low %v1438_v9, %v1452_v42  ;;  %v1454_v17 = vcombine.high %v1431_v11, %v1445_v44  ;;  %v1453_v10 = vcombine.low %v1431_v11, %v1445_v44 }
 0x192   : > { %v1484_v19 = vrot.slane %v1456_v14, %v2899_v6  ;;  %v1470_v20 = vrot.slane %v1455_v16, %v2899_v6  ;;  %v3110_v23 = vrot.slane %v1454_v17, %v2899_v6  ;;  %v3114_v27 = vrot.slane %v1453_v10, %v2899_v6 }
 0x194   : > { %v1488_v24 = vcombine.high %v1484_v19, %v1484_v19  ;;  %v1486_v25 = vcombine.high %v1470_v20, %v1470_v20  ;;  %v1576_v12 = vrot.slane %v1484_v19, %v2907_v37  ;;  %v1584_v28 = vrot.slane %v1484_v19, %v2913_v39 }
 0x195   : > { %v1572_v30 = vrot.slane %v1484_v19, %v2827_v21  ;;  %v1580_v31 = vrot.slane %v1484_v19, %v2910_v38  ;;  %v1560_v32 = vrot.slane %v1470_v20, %v2907_v37  ;;  %v1568_v61 = vrot.slane %v1470_v20, %v2913_v39 }
 0x196   : > { %v1608_v33 = vrot.slane %v1488_v24, %v2907_v37  ;;  %v1616_v34 = vrot.slane %v1488_v24, %v2913_v39  ;;  %v1604_v35 = vrot.slane %v1488_v24, %v2827_v21  ;;  %v1612_v41 = vrot.slane %v1488_v24, %v2910_v38 }
 0x197   : > { %v1592_v43 = vrot.slane %v1486_v25, %v2907_v37  ;;  %v1600_v26 = vrot.slane %v1486_v25, %v2913_v39  ;;  %v1588_v7 = vrot.slane %v1486_v25, %v2827_v21  ;;  %v1596_v48 = vrot.slane %v1486_v25, %v2910_v38 }
 0x198   : > { %v1678_v49 = vmul.f32 %v1608_v33, %v3099_v18  ;;  %v1680_v55 = vmul.f32 %v1616_v34, %v3103_v22  ;;  %v1677_v56 = vmul.f32 %v1604_v35, %v3105_v15  ;;  %v1679_v57 = vmul.f32 %v1612_v41, %v3107_v36 }
 0x199   : > { %v1674_v58 = vmul.f32 %v1592_v43, %v3099_v18  ;;  %v1676_v59 = vmul.f32 %v1600_v26, %v3103_v22  ;;  %v1673_v60 = vmul.f32 %v1588_v7, %v3105_v15  ;;  %v1675_v1 = vmul.f32 %v1596_v48, %v3107_v36 }
 0x19a   : > { %1730 = vmatprep.subr.mxu0 %v1678_v49  ;;  %1819 = vmatprep.subr.mxu1 %v1680_v55  ;;  %v1670_v62 = vmul.f32 %v1576_v12, %v3099_v18  ;;  %v1672_v63 = vmul.f32 %v1584_v28, %v3103_v22  ;;  %v1669_v2 = vmul.f32 %v1572_v30, %v3105_v15 }
 0x19b   : > { %1731 = vmatpush1.msra.mxu0 %v1677_v56  ;;  %1820 = vmatpush1.msra.mxu1 %v1679_v57  ;;  %v1671_v46 = vmul.f32 %v1580_v31, %v3107_v36  ;;  %v1666_v3 = vmul.f32 %v1560_v32, %v3099_v18  ;;  %v1556_v4 = vrot.slane %v1470_v20, %v2827_v21 }
 0x19c   : > { %1732 = vmatprep.subr.mxu0 %v1674_v58  ;;  %1821 = vmatprep.subr.mxu1 %v1676_v59  ;;  %v1564_v5 = vrot.slane %v1470_v20, %v2910_v38  ;;  %v1487_v8 = vcombine.high %v3110_v23, %v3110_v23  ;;  %v1668_v9 = vmul.f32 %v1568_v61, %v3103_v22 }
 0x19d   : > { %1733 = vmatpush1.msra.mxu0 %v1673_v60  ;;  %1822 = vmatpush1.msra.mxu1 %v1675_v1  ;;  %v1485_v11 = vcombine.high %v3114_v27, %v3114_v27  ;;  %v1512_v40 = vrot.slane %v3110_v23, %v2907_v37  ;;  %v1665_v42 = vmul.f32 %v1556_v4, %v3105_v15  ;;  %v1697_v60 = vld [vmem:[%s2758_s29] sm:$0xff] }
 0x19e   : > { %1734 = vmatprep.subr.mxu0 %v1670_v62  ;;  %1823 = vmatprep.subr.mxu1 %v1672_v63  ;;  %v1667_v44 = vmul.f32 %v1564_v5, %v3107_v36  ;;  %v1544_v45 = vrot.slane %v1487_v8, %v2907_v37  ;;  %v1552_v47 = vrot.slane %v1487_v8, %v2913_v39 }
 0x19f   : > { %1735 = vmatpush1.msra.mxu0 %v1669_v2  ;;  %1824 = vmatpush1.msra.mxu1 %v1671_v46  ;;  %v1540_v13 = vrot.slane %v1487_v8, %v2827_v21  ;;  %v1548_v14 = vrot.slane %v1487_v8, %v2910_v38  ;;  %v1528_v17 = vrot.slane %v1485_v11, %v2907_v37 }
 0x1a0   : > { %1736 = vmatprep.subr.mxu0 %v1666_v3  ;;  %1825 = vmatprep.subr.mxu1 %v1668_v9  ;;  %v1662_v16 = vmul.f32 %v1544_v45, %v3099_v18  ;;  %v1536_v10 = vrot.slane %v1485_v11, %v2913_v39  ;;  %v1664_v19 = vmul.f32 %v1552_v47, %v3103_v22 }
 0x1a1   : > { %1737 = vmatpush1.msra.mxu0 %v1665_v42  ;;  %1826 = vmatpush1.msra.mxu1 %v1667_v44  ;;  %v1661_v20 = vmul.f32 %v1540_v13, %v3105_v15  ;;  %v1520_v24 = vrot.slane %v3110_v23, %v2913_v39  ;;  %v1663_v25 = vmul.f32 %v1548_v14, %v3107_v36 }
 0x1a2   : > { %1738 = vmatprep.subr.mxu0 %v1662_v16  ;;  %v1658_v12 = vmul.f32 %v1528_v17, %v3099_v18  ;;  %v1524_v28 = vrot.slane %v1485_v11, %v2827_v21  ;;  %v1532_v30 = vrot.slane %v1485_v11, %v2910_v38  ;;  %1827 = vmatprep.subr.mxu1 %v1664_v19 }
 0x1a3   : > { %1739 = vmatpush1.msra.mxu0 %v1661_v20  ;;  %v1660_v31 = vmul.f32 %v1536_v10, %v3103_v22  ;;  %v1654_v32 = vmul.f32 %v1512_v40, %v3099_v18  ;;  %v1508_v33 = vrot.slane %v3110_v23, %v2827_v21  ;;  %1828 = vmatpush1.msra.mxu1 %v1663_v25 }
 0x1a4   : > { %1740 = vmatprep.subr.mxu0 %v1658_v12  ;;  %v1657_v34 = vmul.f32 %v1524_v28, %v3105_v15  ;;  %v1659_v35 = vmul.f32 %v1532_v30, %v3107_v36  ;;  %v1516_v41 = vrot.slane %v3110_v23, %v2910_v38  ;;  %v1656_v43 = vmul.f32 %v1520_v24, %v3103_v22 }
 0x1a5   : > { %1829 = vmatprep.subr.mxu1 %v1660_v31  ;;  %v1496_v26 = vrot.slane %v3114_v27, %v2907_v37  ;;  %v1504_v7 = vrot.slane %v3114_v27, %v2913_v39  ;;  %v1492_v48 = vrot.slane %v3114_v27, %v2827_v21  ;;  %v1653_v49 = vmul.f32 %v1508_v33, %v3105_v15 }
 0x1a6   : > { %1741 = vmatpush1.msra.mxu0 %v1657_v34  ;;  %1830 = vmatpush1.msra.mxu1 %v1659_v35  ;;  %v1655_v55 = vmul.f32 %v1516_v41, %v3107_v36  ;;  %v1500_v23 = vrot.slane %v3114_v27, %v2910_v38  ;;  %v1115_v27 = vpop.f32.mrf.mxu1 }
 0x1a7   : > { %1742 = vmatprep.subr.mxu0 %v1654_v32  ;;  %1831 = vmatprep.subr.mxu1 %v1656_v43  ;;  %v1650_v56 = vmul.f32 %v1496_v26, %v3099_v18  ;;  %v1652_v57 = vmul.f32 %v1504_v7, %v3103_v22  ;;  %v1649_v58 = vmul.f32 %v1492_v48, %v3105_v15  ;;  %v1698_v18 = vld [vmem:[%s2758_s29 + $0x8] sm:$0xff]  ;;  %v1699_v22 = vld [vmem:[%s2758_s29 + $0x10] sm:$0xff]  ;;  %v1700_v15 = vld [vmem:[%s2758_s29 + $0x18] sm:$0xff]  ;;  %s2344_s29 = sshll.u32 %s2754_s11, 4 }
 0x1a8   : > { %1743 = vmatpush1.msra.mxu0 %v1653_v49  ;;  %1832 = vmatpush1.msra.mxu1 %v1655_v55  ;;  %v1651_v59 = vmul.f32 %v1500_v23, %v3107_v36  ;;  %v1032_v36 = vpop.f32.mrf.mxu0  ;;  %v1130_v1 = vmul.f32 %v1115_v27, %v3048_v51  ;;  %v1117_v63 = vpop.f32.mrf.mxu1  ;;  %s294_s23 = scalar_lea.vmem [#allocation9], %s2344_s29 }
 0x1a9   : > { %1744 = vmatprep.subr.mxu0 %v1650_v56  ;;  %1833 = vmatprep.subr.mxu1 %v1652_v57  ;;  %v1128_v61 = vmul.f32 %v1032_v36, %v3046_v50  ;;  %v1131_v4 = vmul.f32 %v1117_v63, %v3059_v54  ;;  %s2205_s3 = sshll.u32 %s294_s23, 4  ;;  %s3287_s3 = int_to_ptr.vmem [resolvable:$true] %s2205_s3 }
 0x1aa   : > { %1745 = vmatpush1.msra.mxu0 %v1649_v58  ;;  %1834 = vmatpush1.msra.mxu1 %v1651_v59  ;;  %v1034_v62 = vpop.f32.mrf.mxu0  ;;  %v1192_v46 = vrot.slane %v1130_v1, 4  ;;  %s2515_s13 = scalar_lea.vmem %s3287_s3, 256  ;;  %p2522_p10 = scmp.lt.s32.totalorder %s3287_s3, %s2520_s14 }
 0x1ab   : > { %2377 = vmatmul.mubr.msk.f32.vlgmr.msra.gmra.mxu0 %vm944_vm6, %v1697_v60  ;;  %2381 = vmatmul.mubr.msk.f32.vlgmr.msra.gmra.mxu1 %vm944_vm6, %v1697_v60  ;;  %v1180_v2 = vrot.slane %v1128_v61, 4  ;;  %v1129_v3 = vmul.f32 %v1034_v62, %v3057_v53  ;;  %v1198_v9 = vrot.slane %v1131_v4, 4  ;;  %p2516_p7 = scmp.ne.s32.totalorder %s3287_s3, %s2515_s13  ;;  %p2523_p8 = scmp.lt.s32.totalorder %s2521_s22, %s2515_s13 }
 0x1ac   : > { %1784 = vmatprep.mubr.f32.mxu0 %v2605_v0  ;;  %1873 = vmatprep.mubr.f32.mxu1 %v2605_v0  ;;  %v1193_v5 = vadd.f32 %v1192_v46, %v1130_v1 }
 0x1ad   : > { %v1186_v8 = vrot.slane %v1129_v3, 4  ;;  %v1199_v44 = vadd.f32 %v1198_v9, %v1131_v4  ;;  %p2517_p2 = pnand %p2516_p7, %p3363_p12  ;;  %p2524_p9 = por %p2523_p8, %p2522_p10 }
 0x1ae   : > { %v1194_v40 = vrot.slane %v1193_v5, 2 }
 0x1af   : > { %2378 = vmatmul.mubr.msk.f32.gmra.mxu0 %vm944_vm6, %v1698_v18  ;;  %2382 = vmatmul.mubr.msk.f32.gmra.mxu1 %vm944_vm6, %v1698_v18  ;;  %v1187_v42 = vadd.f32 %v1186_v8, %v1129_v3  ;;  %v1200_v51 = vrot.slane %v1199_v44, 2  ;;  %p2518_p1 = pneg %p2517_p2 }
 0x1b0   : > { %1790 = vmatprep.mubr.f32.mxu0 %v2605_v0  ;;  %1879 = vmatprep.mubr.f32.mxu1 %v2605_v0  ;;  %v1195_v50 = vadd.f32 %v1194_v40, %v1193_v5 }
 0x1b1   : > { %v1188_v47 = vrot.slane %v1187_v42, 2  ;;  %v1201_v17 = vadd.f32 %v1200_v51, %v1199_v44  ;;  %p2525_p13 = pnand %p2524_p9, %p2518_p1 }
 0x1b2   : > { %v1196_v14 = vrot.slane %v1195_v50, 1 }
 0x1b3   : > { %2379 = vmatmul.mubr.msk.f32.gmra.mxu0 %vm944_vm6, %v1699_v22  ;;  %2383 = vmatmul.mubr.msk.f32.gmra.mxu1 %vm944_vm6, %v1699_v22  ;;  %v1189_v16 = vadd.f32 %v1188_v47, %v1187_v42  ;;  %v1202_v54 = vrot.slane %v1201_v17, 1 }
 0x1b4   : > { %1796 = vmatprep.mubr.f32.mxu0 %v2605_v0  ;;  %1885 = vmatprep.mubr.f32.mxu1 %v2605_v0  ;;  %v1181_v0 = vadd.f32 %v1180_v2, %v1128_v61  ;;  %v1197_v53 = vadd.f32 %v1196_v14, %v1195_v50 }
 0x1b5   : > { %v1190_v19 = vrot.slane %v1189_v16, 1  ;;  %v1203_v24 = vadd.f32 %v1202_v54, %v1201_v17 }
 0x1b6   : > { %v1182_v11 = vrot.slane %v1181_v0, 2 }
 0x1b7   : > { %2380 = vmatmul.mubr.msk.f32.gmra.mxu0 %vm944_vm6, %v1700_v15  ;;  %2384 = vmatmul.mubr.msk.f32.gmra.mxu1 %vm944_vm6, %v1700_v15  ;;  %v1191_v20 = vadd.f32 %v1190_v19, %v1189_v16  ;;  %v1274_v12 = vcombine.low %v1197_v53, %v1203_v24 }
 0x1b8   : > { %v1183_v45 = vadd.f32 %v1182_v11, %v1181_v0 }
 0x1b9   : > { %v1288_v30 = vrot.slane %v1274_v12, %v2899_v6 }
 0x1ba   : > { %v1184_v13 = vrot.slane %v1183_v45, 1 }
 0x1bc   : > { %v1185_v10 = vadd.f32 %v1184_v13, %v1183_v45 }
 0x1be   : > { %v1273_v25 = vcombine.low %v1185_v10, %v1191_v20 }
 0x1c0   : > { %v1281_v28 = vrot.slane %v1273_v25, %v2899_v6 }
 0x1c2   : > { %v1289_v31 = vcombine.low %v1281_v28, %v1288_v30 }
 0x1c4   : > { %v1296_v32 = vrot.slane %v1289_v31, %v2899_v6 }
 0x1c6   : > { %1299 = vst.msk [vmem:[#allocation3 + $0x2] ss:$4 sm:$0xf] %vm3051_vm7, %v1296_v32 }
 0x1cd   : > { %v1928_v33 = vld [vmem:[#allocation3 + $0x2] ss:$4 sm:$0xf] }
 0x1ce   : > { %v1929_v34 = vadd.f32 1.0, %v1928_v33 }
 0x1d0   : > { %v1930_v35 = vmul.f32 4.0, %v1929_v34 }
 0x1d2   : > { %v2385_v41 = vadd.f32 -0.5, %v1930_v35  ;;  %v2098_v35 = vld [vmem:[#allocation3 + $0x3] ss:$4 sm:$0xf] }
 0x1d4   : > { %v1936_v43 = vrot.slane %v2385_v41, %v2827_v21  ;;  %v1944_v26 = vrot.slane %v2385_v41, %v2910_v38  ;;  %v1940_v7 = vrot.slane %v2385_v41, %v2907_v37  ;;  %v1948_v48 = vrot.slane %v2385_v41, %v2913_v39 }
 0x1d6   : > { %v1953_v49 = vsub.f32 %v1936_v43, %v2862_v29  ;;  %v1955_v55 = vsub.f32 %v1944_v26, %v2862_v29  ;;  %v1954_v6 = vsub.f32 %v1940_v7, %v2862_v29  ;;  %v1956_v52 = vsub.f32 %v1948_v48, %v2862_v29 }
 0x1d8   : > { %v1957_v23 = vand.u32 2147483647, %v1953_v49  ;;  %v1959_v56 = vand.u32 2147483647, %v1955_v55  ;;  %v1958_v57 = vand.u32 2147483647, %v1954_v6 }
 0x1d9   : > { %v1960_v58 = vand.u32 2147483647, %v1956_v52 }
 0x1da   : > { %v1961_v59 = vsub.f32 1.0, %v1957_v23  ;;  %v1963_v60 = vsub.f32 1.0, %v1959_v56  ;;  %v1962_v18 = vsub.f32 1.0, %v1958_v57  ;;  %v3243_v56 = vrot.slane %v2098_v35, %v2827_v21 }
 0x1db   : > { %v1964_v22 = vsub.f32 1.0, %v1960_v58  ;;  %v3246_v57 = vrot.slane %v2098_v35, %v2910_v38 }
 0x1dc   : > { %v3226_v15 = vmax.f32 %v1961_v59, 0.0  ;;  %v3228_v36 = vmax.f32 %v1963_v60, 0.0  ;;  %v3230_v27 = vmax.f32 %v1962_v18, 0.0  ;;  %v3251_v60 = vrot.slane %v2098_v35, %v2907_v37 }
 0x1dd   : > { %v3232_v61 = vmax.f32 %v1964_v22, 0.0  ;;  %v3254_v18 = vrot.slane %v2098_v35, %v2913_v39 }
 0x26b   : > { %v1780_v1 = vpop.f32.mrf.mxu0  ;;  %v1869_v62 = vpop.f32.mrf.mxu1 }
 0x26c   : > { %v1985_v29 = vmul.f32 %v3226_v15, %v1780_v1  ;;  %v1987_v63 = vmul.f32 %v3228_v36, %v1869_v62 }
 0x26d   : > { %v1782_v2 = vpop.f32.mrf.mxu0  ;;  %v1871_v46 = vpop.f32.mrf.mxu1 }
 0x26e   : > { %v2001_v3 = vrot.slane %v1985_v29, 4  ;;  %v2013_v4 = vrot.slane %v1987_v63, 4  ;;  %v1986_v0 = vmul.f32 %v3230_v27, %v1782_v2  ;;  %v1988_v5 = vmul.f32 %v3232_v61, %v1871_v46 }
 0x26f   : > { %v1786_v8 = vpop.f32.mrf.mxu0  ;;  %v1875_v9 = vpop.f32.mrf.mxu1 }
 0x270   : > { %v1989_v11 = vmul.f32 %v3226_v15, %v1786_v8  ;;  %v1991_v40 = vmul.f32 %v3228_v36, %v1875_v9  ;;  %v2002_v45 = vadd.f32 %v2001_v3, %v1985_v29  ;;  %v2014_v50 = vadd.f32 %v2013_v4, %v1987_v63 }
 0x271   : > { %v1788_v42 = vpop.f32.mrf.mxu0  ;;  %v1877_v44 = vpop.f32.mrf.mxu1  ;;  %v2007_v47 = vrot.slane %v1986_v0, 4  ;;  %v2019_v51 = vrot.slane %v1988_v5, 4 }
 0x272   : > { %v2025_v13 = vrot.slane %v1989_v11, 4  ;;  %v2037_v14 = vrot.slane %v1991_v40, 4  ;;  %v1990_v16 = vmul.f32 %v3230_v27, %v1788_v42  ;;  %v1992_v17 = vmul.f32 %v3232_v61, %v1877_v44 }
 0x273   : > { %v2003_v20 = vrot.slane %v2002_v45, 2  ;;  %v2015_v24 = vrot.slane %v2014_v50, 2  ;;  %v2008_v25 = vadd.f32 %v2007_v47, %v1986_v0  ;;  %v2020_v12 = vadd.f32 %v2019_v51, %v1988_v5  ;;  %v1792_v28 = vpop.f32.mrf.mxu0  ;;  %v1881_v30 = vpop.f32.mrf.mxu1 }
 0x274   : > { %v2026_v10 = vadd.f32 %v2025_v13, %v1989_v11  ;;  %v2038_v53 = vadd.f32 %v2037_v14, %v1991_v40  ;;  %v2031_v19 = vrot.slane %v1990_v16, 4  ;;  %v2043_v54 = vrot.slane %v1992_v17, 4 }
 0x275   : > { %v2004_v26 = vadd.f32 %v2003_v20, %v2002_v45  ;;  %v2016_v7 = vadd.f32 %v2015_v24, %v2014_v50  ;;  %v1794_v48 = vpop.f32.mrf.mxu0  ;;  %v1883_v49 = vpop.f32.mrf.mxu1  ;;  %v2009_v55 = vrot.slane %v2008_v25, 2  ;;  %v2021_v6 = vrot.slane %v2020_v12, 2 }
 0x276   : > { %v2027_v31 = vrot.slane %v2026_v10, 2  ;;  %v2039_v32 = vrot.slane %v2038_v53, 2  ;;  %v2032_v33 = vadd.f32 %v2031_v19, %v1990_v16  ;;  %v2044_v34 = vadd.f32 %v2043_v54, %v1992_v17 }
 0x277   : > { %v1993_v58 = vmul.f32 %v3226_v15, %v1792_v28  ;;  %v1995_v59 = vmul.f32 %v3228_v36, %v1881_v30  ;;  %v2005_v62 = vrot.slane %v2004_v26, 1  ;;  %v2017_v29 = vrot.slane %v2016_v7, 1  ;;  %v1798_v2 = vpop.f32.mrf.mxu0  ;;  %v1887_v46 = vpop.f32.mrf.mxu1 }
 0x278   : > { %v2033_v41 = vrot.slane %v2032_v33, 2  ;;  %v2045_v43 = vrot.slane %v2044_v34, 2  ;;  %v2028_v52 = vadd.f32 %v2027_v31, %v2026_v10  ;;  %v2040_v23 = vadd.f32 %v2039_v32, %v2038_v53 }
 0x279   : > { %v2049_v63 = vrot.slane %v1993_v58, 4  ;;  %v2061_v21 = vrot.slane %v1995_v59, 4  ;;  %v2010_v38 = vadd.f32 %v2009_v55, %v2008_v25  ;;  %v2022_v3 = vadd.f32 %v2021_v6, %v2020_v12  ;;  %v1889_v35 = vpop.f32.mrf.mxu1 }
 0x27a   : > { %v2034_v22 = vadd.f32 %v2033_v41, %v2032_v33  ;;  %v2046_v1 = vadd.f32 %v2045_v43, %v2044_v34  ;;  %v2029_v4 = vrot.slane %v2028_v52, 1  ;;  %v2041_v0 = vrot.slane %v2040_v23, 1  ;;  %v1800_v34 = vpop.f32.mrf.mxu0 }
 0x27b   : > { %v2050_v5 = vadd.f32 %v2049_v63, %v1993_v58  ;;  %v2062_v8 = vadd.f32 %v2061_v21, %v1995_v59  ;;  %v1994_v37 = vmul.f32 %v3230_v27, %v1794_v48  ;;  %v1996_v9 = vmul.f32 %v3232_v61, %v1883_v49 }
 0x27c   : > { %v2035_v39 = vrot.slane %v2034_v22, 1  ;;  %v2047_v11 = vrot.slane %v2046_v1, 1  ;;  %v1997_v40 = vmul.f32 %v3226_v15, %v1798_v2  ;;  %v1999_v42 = vmul.f32 %v3228_v36, %v1887_v46 }
 0x27d   : > { %v2051_v44 = vrot.slane %v2050_v5, 2  ;;  %v2063_v45 = vrot.slane %v2062_v8, 2  ;;  %v2055_v50 = vrot.slane %v1994_v37, 4  ;;  %v2067_v47 = vrot.slane %v1996_v9, 4 }
 0x27e   : > { %v2011_v51 = vrot.slane %v2010_v38, 1  ;;  %v2023_v13 = vrot.slane %v2022_v3, 1  ;;  %v2073_v14 = vrot.slane %v1997_v40, 4  ;;  %v2085_v16 = vrot.slane %v1999_v42, 4 }
 0x27f   : > { %v2052_v17 = vadd.f32 %v2051_v44, %v2050_v5  ;;  %v2064_v10 = vadd.f32 %v2063_v45, %v2062_v8  ;;  %v2056_v53 = vadd.f32 %v2055_v50, %v1994_v37  ;;  %v2068_v19 = vadd.f32 %v2067_v47, %v1996_v9 }
 0x280   : > { %v2036_v54 = vadd.f32 %v2035_v39, %v2034_v22  ;;  %v2048_v20 = vadd.f32 %v2047_v11, %v2046_v1  ;;  %v2074_v24 = vadd.f32 %v2073_v14, %v1997_v40  ;;  %v2086_v25 = vadd.f32 %v2085_v16, %v1999_v42 }
 0x281   : > { %v2030_v12 = vadd.f32 %v2029_v4, %v2028_v52  ;;  %v2042_v15 = vadd.f32 %v2041_v0, %v2040_v23  ;;  %v2057_v28 = vrot.slane %v2056_v53, 2  ;;  %v2069_v36 = vrot.slane %v2068_v19, 2 }
 0x282   : > { %v2006_v30 = vadd.f32 %v2005_v62, %v2004_v26  ;;  %v2018_v31 = vadd.f32 %v2017_v29, %v2016_v7  ;;  %v2053_v32 = vrot.slane %v2052_v17, 1  ;;  %v2065_v33 = vrot.slane %v2064_v10, 1 }
 0x283   : > { %v2012_v41 = vadd.f32 %v2011_v51, %v2010_v38  ;;  %v2024_v43 = vadd.f32 %v2023_v13, %v2022_v3  ;;  %v2075_v48 = vrot.slane %v2074_v24, 2  ;;  %v2087_v49 = vrot.slane %v2086_v25, 2 }
 0x284   : > { %v2125_v55 = vmul.f32 %v3251_v60, %v2036_v54  ;;  %v2127_v6 = vmul.f32 %v3254_v18, %v2048_v20  ;;  %v2058_v58 = vadd.f32 %v2057_v28, %v2056_v53  ;;  %v2070_v59 = vadd.f32 %v2069_v36, %v2068_v19 }
 0x285   : > { %v2124_v52 = vmul.f32 %v3243_v56, %v2030_v12  ;;  %v2126_v23 = vmul.f32 %v3246_v57, %v2042_v15  ;;  %v1998_v26 = vmul.f32 %v3230_v27, %v1800_v34  ;;  %v2000_v7 = vmul.f32 %v3232_v61, %v1889_v35 }
 0x286   : > { %v2054_v22 = vadd.f32 %v2053_v32, %v2052_v17  ;;  %v2066_v1 = vadd.f32 %v2065_v33, %v2064_v10  ;;  %v2059_v62 = vrot.slane %v2058_v58, 1  ;;  %v2071_v29 = vrot.slane %v2070_v59, 1 }
 0x287   : > { %v2076_v63 = vadd.f32 %v2075_v48, %v2074_v24  ;;  %v2088_v21 = vadd.f32 %v2087_v49, %v2086_v25  ;;  %v2079_v2 = vrot.slane %v1998_v26, 4  ;;  %v2091_v46 = vrot.slane %v2000_v7, 4 }
 0x288   : > { %v2154_v38 = vcombine.low %v2124_v52, %v2125_v55  ;;  %v2155_v3 = vcombine.low %v2126_v23, %v2127_v6  ;;  %v2060_v4 = vadd.f32 %v2059_v62, %v2058_v58  ;;  %v2072_v0 = vadd.f32 %v2071_v29, %v2070_v59 }
 0x289   : > { %v2121_v5 = vmul.f32 %v3251_v60, %v2012_v41  ;;  %v2123_v8 = vmul.f32 %v3254_v18, %v2024_v43  ;;  %v2080_v37 = vadd.f32 %v2079_v2, %v1998_v26  ;;  %v2092_v27 = vadd.f32 %v2091_v46, %v2000_v7 }
 0x28a   : > { %v2128_v61 = vmul.f32 %v3243_v56, %v2054_v22  ;;  %v2130_v9 = vmul.f32 %v3246_v57, %v2066_v1  ;;  %v2129_v39 = vmul.f32 %v3251_v60, %v2060_v4  ;;  %v2131_v11 = vmul.f32 %v3254_v18, %v2072_v0 }
 0x28b   : > { %v2077_v40 = vrot.slane %v2076_v63, 1  ;;  %v2089_v42 = vrot.slane %v2088_v21, 1  ;;  %v2081_v44 = vrot.slane %v2080_v37, 2  ;;  %v2093_v45 = vrot.slane %v2092_v27, 2 }
 0x28c   : > { %v2120_v50 = vmul.f32 %v3243_v56, %v2006_v30  ;;  %v2122_v47 = vmul.f32 %v3246_v57, %v2018_v31  ;;  %v2160_v51 = vrot.slane %v2154_v38, 7  ;;  %v2175_v13 = vrot.slane %v2155_v3, 7 }
 0x28d   : > { %v2156_v14 = vcombine.low %v2128_v61, %v2129_v39  ;;  %v2157_v16 = vcombine.low %v2130_v9, %v2131_v11  ;;  %v2082_v17 = vadd.f32 %v2081_v44, %v2080_v37  ;;  %v2094_v10 = vadd.f32 %v2093_v45, %v2092_v27 }
 0x28e   : > { %v2152_v53 = vcombine.low %v2120_v50, %v2121_v5  ;;  %v2153_v19 = vcombine.low %v2122_v47, %v2123_v8  ;;  %v2078_v54 = vadd.f32 %v2077_v40, %v2076_v63  ;;  %v2090_v20 = vadd.f32 %v2089_v42, %v2088_v21 }
 0x28f   : > { %v2083_v24 = vrot.slane %v2082_v17, 1  ;;  %v2095_v25 = vrot.slane %v2094_v10, 1  ;;  %v2165_v28 = vrot.slane %v2156_v14, 6  ;;  %v2178_v36 = vrot.slane %v2157_v16, 6 }
 0x290   : > { %v2162_v12 = vsel %vm2161_vm8, %v2160_v51, %v2152_v53  ;;  %v2176_v15 = vsel %vm2161_vm8, %v2175_v13, %v2153_v19  ;;  %v2132_v32 = vmul.f32 %v3243_v56, %v2078_v54  ;;  %v2134_v33 = vmul.f32 %v3246_v57, %v2090_v20 }
 0x291   : > { %v2084_v30 = vadd.f32 %v2083_v24, %v2082_v17  ;;  %v2096_v31 = vadd.f32 %v2095_v25, %v2094_v10  ;;  %v2164_v41 = vsel %vm2163_vm9, %v2160_v51, %v2162_v12  ;;  %v2177_v43 = vsel %vm2163_vm9, %v2175_v13, %v2176_v15 }
 0x292   : > { %v2167_v55 = vsel %vm2166_vm10, %v2165_v28, %v2164_v41  ;;  %v2179_v6 = vsel %vm2166_vm10, %v2178_v36, %v2177_v43 }
 0x293   : > { %v2133_v34 = vmul.f32 %v3251_v60, %v2084_v30  ;;  %v2135_v35 = vmul.f32 %v3254_v18, %v2096_v31  ;;  %v2169_v57 = vsel %vm2168_vm11, %v2165_v28, %v2167_v55  ;;  %v2180_v60 = vsel %vm2168_vm11, %v2178_v36, %v2179_v6 }
 0x295   : > { %v2158_v48 = vcombine.low %v2132_v32, %v2133_v34  ;;  %v2159_v49 = vcombine.low %v2134_v33, %v2135_v35 }
 0x297   : > { %v2170_v58 = vrot.slane %v2158_v48, 5  ;;  %v2181_v56 = vrot.slane %v2159_v49, 5 }
 0x299   : > { %v2172_v59 = vsel %vm2171_vm12, %v2170_v58, %v2169_v57  ;;  %v2182_v18 = vsel %vm2171_vm12, %v2181_v56, %v2180_v60 }
 0x29a   : > { %v2174_v52 = vsel %vm2173_vm13, %v2170_v58, %v2172_v59  ;;  %v2183_v23 = vsel %vm2173_vm13, %v2181_v56, %v2182_v18 }
 0x29b   : > { %2186 = vst [vmem:[%s294_s23] sm:$0xff] %v2174_v52  ;;  %2187 = vst [vmem:[%s294_s23 + $0x8] sm:$0xff] %v2183_v23 }
 0x29c   : > { %2528 = shalt.err (!%p2525_p13)
}
 0x29d   : > { %s2529_s6 = scalar_lea.hbm %s3285_s12, 256  ;;  %s2533_s30 = scalar_lea.hbm %s3337_s4, 512 }
 0x29e   : > { %p2530_p4 = scmp.ne.s32.totalorder %s3285_s12, %s2529_s6  ;;  %p2534_p5 = scmp.lt.s32.totalorder %s3285_s12, %s3337_s4 }
 0x29f   : > { %p2535_p0 = scmp.lt.s32.totalorder %s2533_s30, %s2529_s6 }
 0x2a0   : > { %p2531_p6 = pnand %p2530_p4, %p3363_p12 }
 0x2a1   : > { %p2536_p3 = por %p2535_p0, %p2534_p5 }
 0x2a2   : > { %p2532_p11 = pneg %p2531_p6 }
 0x2a4   : > { %p2537_p7 = pnand %p2536_p3, %p2532_p11 }
 0x2a6   : > { %2540 = shalt.err (!%p2537_p7)
}
 0x2a7   : > { %2401 = dma.vmem_to_hbm [thread:$0]  (%p3363_p12), %s3287_s3, 256, %s3285_s12, %s2189_s18  }
 0x2a8 PF: > { %s3364_s5 = sld [smem:[#allocation13_spill]]  ;;  %s2217_s10 = sand.u32 1, %s2579_s15  }
 0x2a9   : > { %p3365_p2 = scmp.ne.s32.totalorder %s3348_s28, 0  ;;  %s2218_s29 = scalar_lea.sflag [#allocation6], %s2217_s10 }
 0x2ae   : > { %p3366_p1 = scmp.ge.s32.totalorder %s3364_s5, 2 }
 0x2b0   : > { %p2412_p10 = pnand %p3366_p1, %p3365_p2 }
 0x2b2   : > { %p2413_p8 = pneg %p2412_p10 }
 0x2b4   : > { %2574 = dma.done.wait (%p2413_p8), %s2218_s29, 256  }
 0x2b5   : > { %2576 = vsyncadd (%p2413_p8), %s2218_s29, 4294967040  ;;  %s21_s20 = sadd.s32 1, %s3364_s5   ;;  %s3367_s15 = smov %s2583_s16 }
 0x2b6   : > { %p18_p9 = scmp.ge.s32.totalorder %s21_s20, 4   ;;  %s3368_s16 = smov %s2587_s17 }
 0x2b7   : > { %s3369_s17 = smov %s2741_s0  ;;  %s3370_s18 = smov %s2595_s19 }
 0x2b8   : > { %s3371_s19 = smov %s3373_s9  ;;  %20 = sbr.rel (!%p18_p9) target bundleno = 10 (0xa), region = 106 }
 0x2bd   :  { %2223 = vsyncpa [#allocation5], 1 }
 0x2be   :  { %2225 = vsyncpa [#allocation5 + $0x1], 1 }
 0x2bf   :  { %2226 = vsyncpa [#allocation6], 1 }
 0x2c0   :  { %2228 = vsyncpa [#allocation6 + $0x1], 1 }
 0x2c1   :  { %2229 = vsyncpa [#allocation7], 1 }
 0x2c2   :  { %2231 = vsyncpa [#allocation7 + $0x1], 1 }

</bundles_post_ra>
